<compile_context>
chip_gen: v7x
topology: tpu7x:2x2x1
jax: 0.10.0
libtpu: 0.0.40
codegen_flags: <defaults>
</compile_context>

<pallas_src>
import jax
import jax.numpy as jnp
from jax import lax
from jax.experimental import pallas as pl
from jax.experimental.pallas import tpu as pltpu


def _cbow_kernel(idx_ref, emb_hbm, w_ref, out_ref, rows_buf, sem):
    """Fused CBOW forward for one vocab tile.

    idx_ref : (B, C) int32   SMEM (scalar prefetch)
    emb_hbm : (V, E)         HBM (pl.ANY) -- only the B*C needed rows are DMA'd
    w_ref   : (TV, E)        VMEM tile of the untransposed Linear weight
    out_ref : (B, TV)        VMEM output tile
    rows_buf: (C*B, E)       VMEM gather scratch; row c*B + b = emb[idx[b, c]]
    sem     : ()             single shared DMA semaphore
    """
    B, C = idx_ref.shape

    # Build every gather descriptor once (all SMEM index reads happen before
    # any wait), start them all so they are concurrently in flight, then wait
    # on the same objects.  One shared semaphore suffices: each wait consumes
    # exactly one (1, E)-row's worth of completion signal, and rows_buf is
    # only read after all B*C waits have returned.
    copies = []
    for c in range(C):
        for b in range(B):
            copies.append(
                pltpu.make_async_copy(
                    emb_hbm.at[pl.ds(idx_ref[b, c], 1), :],   # (1, E) row in HBM
                    rows_buf.at[pl.ds(c * B + b, 1), :],      # (1, E) VMEM slot
                    sem,
                )
            )
    for cp in copies:
        cp.start()
    for cp in copies:
        cp.wait()

    # Mean over the context dim: C static (B, E) slabs summed on the VPU
    # (all slab starts are multiples of 8 sublanes -> no hidden re-layouts).
    acc = rows_buf[pl.ds(0, B), :].astype(jnp.float32)
    for c in range(1, C):
        acc = acc + rows_buf[pl.ds(c * B, B), :].astype(jnp.float32)
    mean = acc * (1.0 / C)

    # logits tile = mean @ W_tile^T  (contract E with E; torch Linear layout,
    # so no wrapper-side transpose and no extra HBM pass over W).
    out_ref[...] = lax.dot_general(
        mean, w_ref[...],
        dimension_numbers=(((1,), (1,)), ((), ())),
        preferred_element_type=jnp.float32,
    ).astype(out_ref.dtype)


def _pick_tv(V, E, itemsize):
    """Vocab tile size: whole W if it is small, else lane-dense ~2 MiB tiles."""
    if V * E * itemsize <= (4 << 20):
        return V                              # single grid step, W fully resident
    tv = (2 << 20) // (E * itemsize)          # ~2 MiB W tile (x2 pipeline buffers)
    tv = max(512, min(tv, 4096))
    return max(128, (tv // 128) * 128)        # lane-dense multiple of 128


def cbow_forward(indices, emb_table, lin_weight, *, tv=None):
    """indices (B, C) int; emb_table (V, E); lin_weight (V, E) torch-Linear layout.

    Returns logits (B, V) = mean_c(emb_table[indices]) @ lin_weight.T
    """
    B, C = indices.shape
    V, E = emb_table.shape
    assert lin_weight.shape == (V, E)
    out_dtype = jnp.promote_types(emb_table.dtype, lin_weight.dtype)

    # Pad the batch to a sublane multiple of 8 (padded rows gather index 0 and
    # are sliced off at the end).
    B_pad = max(8, ((B + 7) // 8) * 8)
    idx = indices.astype(jnp.int32)
    if B_pad != B:
        idx = jnp.zeros((B_pad, C), jnp.int32).at[:B, :].set(idx)

    w_itemsize = jnp.dtype(lin_weight.dtype).itemsize
    if tv is None:
        tv = _pick_tv(V, E, w_itemsize)
    tv = min(tv, V)
    grid = (pl.cdiv(V, tv),)

    # Explicit VMEM budget (double-buffered W + out tiles, gather scratch).
    # Only override the scoped limit when we'd exceed the most conservative
    # default (16 MiB on v5e); any override stays far below v7x's 64 MiB.
    need = (2 * tv * E * w_itemsize
            + 2 * B_pad * tv * jnp.dtype(out_dtype).itemsize
            + C * B_pad * E * jnp.dtype(emb_table.dtype).itemsize)
    compiler_kwargs = dict(dimension_semantics=("parallel",))
    if need > (12 << 20):
        compiler_kwargs["vmem_limit_bytes"] = int(need + (8 << 20))

    out = pl.pallas_call(
        _cbow_kernel,
        out_shape=jax.ShapeDtypeStruct((B_pad, V), out_dtype),
        grid_spec=pltpu.PrefetchScalarGridSpec(
            num_scalar_prefetch=1,                               # indices -> SMEM
            grid=grid,
            in_specs=[
                pl.BlockSpec(memory_space=pl.ANY),               # emb table in HBM
                pl.BlockSpec((tv, E), lambda j, idx_ref: (j, 0)),  # W vocab tile
            ],
            out_specs=pl.BlockSpec((B_pad, tv), lambda j, idx_ref: (0, j)),
            scratch_shapes=[
                pltpu.VMEM((C * B_pad, E), emb_table.dtype),     # gathered rows
                pltpu.SemaphoreType.DMA(()),                     # shared DMA sem
            ],
        ),
        compiler_params=pltpu.CompilerParams(**compiler_kwargs),
    )(idx, emb_table, lin_weight)
    return out[:B]


if __name__ == "__main__":
    # Shapes consistent with CBOW(voc, emb): voc=1024, emb=256, batch=8, C=4.
    VOC, EMB = 1024, 256
    B, C = 8, 4

    key = jax.random.PRNGKey(0)
    k_idx, k_emb, k_lin = jax.random.split(key, 3)

    indices = jax.random.randint(k_idx, (B, C), 0, VOC, dtype=jnp.int32)
    emb_table = jax.random.normal(k_emb, (VOC, EMB), dtype=jnp.float32) * 0.02
    lin_weight = jax.random.normal(k_lin, (VOC, EMB), dtype=jnp.float32) * 0.02

    out = jax.block_until_ready(cbow_forward(indices, emb_table, lin_weight))

    # Pure-JAX reference (same semantics as the torch module).
    ref = jnp.take(emb_table, indices, axis=0).mean(axis=1) @ lin_weight.T
    assert out.shape == (B, VOC)
    assert jnp.allclose(out, ref, atol=1e-4, rtol=1e-4), float(
        jnp.max(jnp.abs(out - ref)))

    print("KERNEL_OK")
</pallas_src>

<mosaic_0001>
module attributes {stable_mosaic.version = 11 : i64} {
  func.func @_cbow_kernel(%arg0: i32, %arg1: memref<8x4xi32, #tpu.memory_space<smem>>, %arg2: memref<1024x256xf32, #tpu.memory_space<any>>, %arg3: memref<1024x256xf32, #tpu.memory_space<vmem>>, %arg4: memref<8x1024xf32, #tpu.memory_space<vmem>>, %arg5: memref<32x256xf32, #tpu.memory_space<vmem>>, %arg6: memref<!tpu.dma_semaphore, #tpu.memory_space<semaphore_mem>>) attributes {dimension_semantics = [#tpu.dimension_semantics<parallel>], iteration_bounds = array<i64: 1>, scalar_prefetch = 1 : i64, scratch_operands = 2 : i64, tpu.core_type = #tpu.core_type<tc>, window_params = [{}, {transform_indices = @transform_1, window_bounds = array<i64: 1024, 256>}, {transform_indices = @transform_2, window_bounds = array<i64: 8, 1024>}]} {
    %c0 = arith.constant 0 : index
    %c0_0 = arith.constant 0 : index
    %0 = memref.load %arg1[%c0, %c0_0] : memref<8x4xi32, #tpu.memory_space<smem>>
    %c1 = arith.constant 1 : index
    %c0_1 = arith.constant 0 : index
    %1 = memref.load %arg1[%c1, %c0_1] : memref<8x4xi32, #tpu.memory_space<smem>>
    %c2 = arith.constant 2 : index
    %c0_2 = arith.constant 0 : index
    %2 = memref.load %arg1[%c2, %c0_2] : memref<8x4xi32, #tpu.memory_space<smem>>
    %c3 = arith.constant 3 : index
    %c0_3 = arith.constant 0 : index
    %3 = memref.load %arg1[%c3, %c0_3] : memref<8x4xi32, #tpu.memory_space<smem>>
    %c4 = arith.constant 4 : index
    %c0_4 = arith.constant 0 : index
    %4 = memref.load %arg1[%c4, %c0_4] : memref<8x4xi32, #tpu.memory_space<smem>>
    %c5 = arith.constant 5 : index
    %c0_5 = arith.constant 0 : index
    %5 = memref.load %arg1[%c5, %c0_5] : memref<8x4xi32, #tpu.memory_space<smem>>
    %c6 = arith.constant 6 : index
    %c0_6 = arith.constant 0 : index
    %6 = memref.load %arg1[%c6, %c0_6] : memref<8x4xi32, #tpu.memory_space<smem>>
    %c7 = arith.constant 7 : index
    %c0_7 = arith.constant 0 : index
    %7 = memref.load %arg1[%c7, %c0_7] : memref<8x4xi32, #tpu.memory_space<smem>>
    %c0_8 = arith.constant 0 : index
    %c1_9 = arith.constant 1 : index
    %8 = memref.load %arg1[%c0_8, %c1_9] : memref<8x4xi32, #tpu.memory_space<smem>>
    %c1_10 = arith.constant 1 : index
    %c1_11 = arith.constant 1 : index
    %9 = memref.load %arg1[%c1_10, %c1_11] : memref<8x4xi32, #tpu.memory_space<smem>>
    %c2_12 = arith.constant 2 : index
    %c1_13 = arith.constant 1 : index
    %10 = memref.load %arg1[%c2_12, %c1_13] : memref<8x4xi32, #tpu.memory_space<smem>>
    %c3_14 = arith.constant 3 : index
    %c1_15 = arith.constant 1 : index
    %11 = memref.load %arg1[%c3_14, %c1_15] : memref<8x4xi32, #tpu.memory_space<smem>>
    %c4_16 = arith.constant 4 : index
    %c1_17 = arith.constant 1 : index
    %12 = memref.load %arg1[%c4_16, %c1_17] : memref<8x4xi32, #tpu.memory_space<smem>>
    %c5_18 = arith.constant 5 : index
    %c1_19 = arith.constant 1 : index
    %13 = memref.load %arg1[%c5_18, %c1_19] : memref<8x4xi32, #tpu.memory_space<smem>>
    %c6_20 = arith.constant 6 : index
    %c1_21 = arith.constant 1 : index
    %14 = memref.load %arg1[%c6_20, %c1_21] : memref<8x4xi32, #tpu.memory_space<smem>>
    %c7_22 = arith.constant 7 : index
    %c1_23 = arith.constant 1 : index
    %15 = memref.load %arg1[%c7_22, %c1_23] : memref<8x4xi32, #tpu.memory_space<smem>>
    %c0_24 = arith.constant 0 : index
    %c2_25 = arith.constant 2 : index
    %16 = memref.load %arg1[%c0_24, %c2_25] : memref<8x4xi32, #tpu.memory_space<smem>>
    %c1_26 = arith.constant 1 : index
    %c2_27 = arith.constant 2 : index
    %17 = memref.load %arg1[%c1_26, %c2_27] : memref<8x4xi32, #tpu.memory_space<smem>>
    %c2_28 = arith.constant 2 : index
    %c2_29 = arith.constant 2 : index
    %18 = memref.load %arg1[%c2_28, %c2_29] : memref<8x4xi32, #tpu.memory_space<smem>>
    %c3_30 = arith.constant 3 : index
    %c2_31 = arith.constant 2 : index
    %19 = memref.load %arg1[%c3_30, %c2_31] : memref<8x4xi32, #tpu.memory_space<smem>>
    %c4_32 = arith.constant 4 : index
    %c2_33 = arith.constant 2 : index
    %20 = memref.load %arg1[%c4_32, %c2_33] : memref<8x4xi32, #tpu.memory_space<smem>>
    %c5_34 = arith.constant 5 : index
    %c2_35 = arith.constant 2 : index
    %21 = memref.load %arg1[%c5_34, %c2_35] : memref<8x4xi32, #tpu.memory_space<smem>>
    %c6_36 = arith.constant 6 : index
    %c2_37 = arith.constant 2 : index
    %22 = memref.load %arg1[%c6_36, %c2_37] : memref<8x4xi32, #tpu.memory_space<smem>>
    %c7_38 = arith.constant 7 : index
    %c2_39 = arith.constant 2 : index
    %23 = memref.load %arg1[%c7_38, %c2_39] : memref<8x4xi32, #tpu.memory_space<smem>>
    %c0_40 = arith.constant 0 : index
    %c3_41 = arith.constant 3 : index
    %24 = memref.load %arg1[%c0_40, %c3_41] : memref<8x4xi32, #tpu.memory_space<smem>>
    %c1_42 = arith.constant 1 : index
    %c3_43 = arith.constant 3 : index
    %25 = memref.load %arg1[%c1_42, %c3_43] : memref<8x4xi32, #tpu.memory_space<smem>>
    %c2_44 = arith.constant 2 : index
    %c3_45 = arith.constant 3 : index
    %26 = memref.load %arg1[%c2_44, %c3_45] : memref<8x4xi32, #tpu.memory_space<smem>>
    %c3_46 = arith.constant 3 : index
    %c3_47 = arith.constant 3 : index
    %27 = memref.load %arg1[%c3_46, %c3_47] : memref<8x4xi32, #tpu.memory_space<smem>>
    %c4_48 = arith.constant 4 : index
    %c3_49 = arith.constant 3 : index
    %28 = memref.load %arg1[%c4_48, %c3_49] : memref<8x4xi32, #tpu.memory_space<smem>>
    %c5_50 = arith.constant 5 : index
    %c3_51 = arith.constant 3 : index
    %29 = memref.load %arg1[%c5_50, %c3_51] : memref<8x4xi32, #tpu.memory_space<smem>>
    %c6_52 = arith.constant 6 : index
    %c3_53 = arith.constant 3 : index
    %30 = memref.load %arg1[%c6_52, %c3_53] : memref<8x4xi32, #tpu.memory_space<smem>>
    %c7_54 = arith.constant 7 : index
    %c3_55 = arith.constant 3 : index
    %31 = memref.load %arg1[%c7_54, %c3_55] : memref<8x4xi32, #tpu.memory_space<smem>>
    %c0_i32 = arith.constant 0 : i32
    %32 = tpu.memref_slice %arg2[%0, %c0_i32] : memref<1024x256xf32, #tpu.memory_space<any>> -> memref<1x256xf32, #tpu.memory_space<any>>
    %c0_i32_56 = arith.constant 0 : i32
    %c0_i32_57 = arith.constant 0 : i32
    %33 = tpu.memref_slice %arg5[%c0_i32_56, %c0_i32_57] : memref<32x256xf32, #tpu.memory_space<vmem>> -> memref<1x256xf32, #tpu.memory_space<vmem>>
    tpu.enqueue_dma source(%32 : memref<1x256xf32, #tpu.memory_space<any>>) target(%33 : memref<1x256xf32, #tpu.memory_space<vmem>>) target_semaphore(%arg6 : memref<!tpu.dma_semaphore, #tpu.memory_space<semaphore_mem>>)
    %c0_i32_58 = arith.constant 0 : i32
    %34 = tpu.memref_slice %arg2[%1, %c0_i32_58] : memref<1024x256xf32, #tpu.memory_space<any>> -> memref<1x256xf32, #tpu.memory_space<any>>
    %c1_i32 = arith.constant 1 : i32
    %c0_i32_59 = arith.constant 0 : i32
    %35 = tpu.memref_slice %arg5[%c1_i32, %c0_i32_59] : memref<32x256xf32, #tpu.memory_space<vmem>> -> memref<1x256xf32, #tpu.memory_space<vmem>>
    tpu.enqueue_dma source(%34 : memref<1x256xf32, #tpu.memory_space<any>>) target(%35 : memref<1x256xf32, #tpu.memory_space<vmem>>) target_semaphore(%arg6 : memref<!tpu.dma_semaphore, #tpu.memory_space<semaphore_mem>>)
    %c0_i32_60 = arith.constant 0 : i32
    %36 = tpu.memref_slice %arg2[%2, %c0_i32_60] : memref<1024x256xf32, #tpu.memory_space<any>> -> memref<1x256xf32, #tpu.memory_space<any>>
    %c2_i32 = arith.constant 2 : i32
    %c0_i32_61 = arith.constant 0 : i32
    %37 = tpu.memref_slice %arg5[%c2_i32, %c0_i32_61] : memref<32x256xf32, #tpu.memory_space<vmem>> -> memref<1x256xf32, #tpu.memory_space<vmem>>
    tpu.enqueue_dma source(%36 : memref<1x256xf32, #tpu.memory_space<any>>) target(%37 : memref<1x256xf32, #tpu.memory_space<vmem>>) target_semaphore(%arg6 : memref<!tpu.dma_semaphore, #tpu.memory_space<semaphore_mem>>)
    %c0_i32_62 = arith.constant 0 : i32
    %38 = tpu.memref_slice %arg2[%3, %c0_i32_62] : memref<1024x256xf32, #tpu.memory_space<any>> -> memref<1x256xf32, #tpu.memory_space<any>>
    %c3_i32 = arith.constant 3 : i32
    %c0_i32_63 = arith.constant 0 : i32
    %39 = tpu.memref_slice %arg5[%c3_i32, %c0_i32_63] : memref<32x256xf32, #tpu.memory_space<vmem>> -> memref<1x256xf32, #tpu.memory_space<vmem>>
    tpu.enqueue_dma source(%38 : memref<1x256xf32, #tpu.memory_space<any>>) target(%39 : memref<1x256xf32, #tpu.memory_space<vmem>>) target_semaphore(%arg6 : memref<!tpu.dma_semaphore, #tpu.memory_space<semaphore_mem>>)
    %c0_i32_64 = arith.constant 0 : i32
    %40 = tpu.memref_slice %arg2[%4, %c0_i32_64] : memref<1024x256xf32, #tpu.memory_space<any>> -> memref<1x256xf32, #tpu.memory_space<any>>
    %c4_i32 = arith.constant 4 : i32
    %c0_i32_65 = arith.constant 0 : i32
    %41 = tpu.memref_slice %arg5[%c4_i32, %c0_i32_65] : memref<32x256xf32, #tpu.memory_space<vmem>> -> memref<1x256xf32, #tpu.memory_space<vmem>>
    tpu.enqueue_dma source(%40 : memref<1x256xf32, #tpu.memory_space<any>>) target(%41 : memref<1x256xf32, #tpu.memory_space<vmem>>) target_semaphore(%arg6 : memref<!tpu.dma_semaphore, #tpu.memory_space<semaphore_mem>>)
    %c0_i32_66 = arith.constant 0 : i32
    %42 = tpu.memref_slice %arg2[%5, %c0_i32_66] : memref<1024x256xf32, #tpu.memory_space<any>> -> memref<1x256xf32, #tpu.memory_space<any>>
    %c5_i32 = arith.constant 5 : i32
    %c0_i32_67 = arith.constant 0 : i32
    %43 = tpu.memref_slice %arg5[%c5_i32, %c0_i32_67] : memref<32x256xf32, #tpu.memory_space<vmem>> -> memref<1x256xf32, #tpu.memory_space<vmem>>
    tpu.enqueue_dma source(%42 : memref<1x256xf32, #tpu.memory_space<any>>) target(%43 : memref<1x256xf32, #tpu.memory_space<vmem>>) target_semaphore(%arg6 : memref<!tpu.dma_semaphore, #tpu.memory_space<semaphore_mem>>)
    %c0_i32_68 = arith.constant 0 : i32
    %44 = tpu.memref_slice %arg2[%6, %c0_i32_68] : memref<1024x256xf32, #tpu.memory_space<any>> -> memref<1x256xf32, #tpu.memory_space<any>>
    %c6_i32 = arith.constant 6 : i32
    %c0_i32_69 = arith.constant 0 : i32
    %45 = tpu.memref_slice %arg5[%c6_i32, %c0_i32_69] : memref<32x256xf32, #tpu.memory_space<vmem>> -> memref<1x256xf32, #tpu.memory_space<vmem>>
    tpu.enqueue_dma source(%44 : memref<1x256xf32, #tpu.memory_space<any>>) target(%45 : memref<1x256xf32, #tpu.memory_space<vmem>>) target_semaphore(%arg6 : memref<!tpu.dma_semaphore, #tpu.memory_space<semaphore_mem>>)
    %c0_i32_70 = arith.constant 0 : i32
    %46 = tpu.memref_slice %arg2[%7, %c0_i32_70] : memref<1024x256xf32, #tpu.memory_space<any>> -> memref<1x256xf32, #tpu.memory_space<any>>
    %c7_i32 = arith.constant 7 : i32
    %c0_i32_71 = arith.constant 0 : i32
    %47 = tpu.memref_slice %arg5[%c7_i32, %c0_i32_71] : memref<32x256xf32, #tpu.memory_space<vmem>> -> memref<1x256xf32, #tpu.memory_space<vmem>>
    tpu.enqueue_dma source(%46 : memref<1x256xf32, #tpu.memory_space<any>>) target(%47 : memref<1x256xf32, #tpu.memory_space<vmem>>) target_semaphore(%arg6 : memref<!tpu.dma_semaphore, #tpu.memory_space<semaphore_mem>>)
    %c0_i32_72 = arith.constant 0 : i32
    %48 = tpu.memref_slice %arg2[%8, %c0_i32_72] : memref<1024x256xf32, #tpu.memory_space<any>> -> memref<1x256xf32, #tpu.memory_space<any>>
    %c8_i32 = arith.constant 8 : i32
    %c0_i32_73 = arith.constant 0 : i32
    %49 = tpu.memref_slice %arg5[%c8_i32, %c0_i32_73] : memref<32x256xf32, #tpu.memory_space<vmem>> -> memref<1x256xf32, #tpu.memory_space<vmem>>
    tpu.enqueue_dma source(%48 : memref<1x256xf32, #tpu.memory_space<any>>) target(%49 : memref<1x256xf32, #tpu.memory_space<vmem>>) target_semaphore(%arg6 : memref<!tpu.dma_semaphore, #tpu.memory_space<semaphore_mem>>)
    %c0_i32_74 = arith.constant 0 : i32
    %50 = tpu.memref_slice %arg2[%9, %c0_i32_74] : memref<1024x256xf32, #tpu.memory_space<any>> -> memref<1x256xf32, #tpu.memory_space<any>>
    %c9_i32 = arith.constant 9 : i32
    %c0_i32_75 = arith.constant 0 : i32
    %51 = tpu.memref_slice %arg5[%c9_i32, %c0_i32_75] : memref<32x256xf32, #tpu.memory_space<vmem>> -> memref<1x256xf32, #tpu.memory_space<vmem>>
    tpu.enqueue_dma source(%50 : memref<1x256xf32, #tpu.memory_space<any>>) target(%51 : memref<1x256xf32, #tpu.memory_space<vmem>>) target_semaphore(%arg6 : memref<!tpu.dma_semaphore, #tpu.memory_space<semaphore_mem>>)
    %c0_i32_76 = arith.constant 0 : i32
    %52 = tpu.memref_slice %arg2[%10, %c0_i32_76] : memref<1024x256xf32, #tpu.memory_space<any>> -> memref<1x256xf32, #tpu.memory_space<any>>
    %c10_i32 = arith.constant 10 : i32
    %c0_i32_77 = arith.constant 0 : i32
    %53 = tpu.memref_slice %arg5[%c10_i32, %c0_i32_77] : memref<32x256xf32, #tpu.memory_space<vmem>> -> memref<1x256xf32, #tpu.memory_space<vmem>>
    tpu.enqueue_dma source(%52 : memref<1x256xf32, #tpu.memory_space<any>>) target(%53 : memref<1x256xf32, #tpu.memory_space<vmem>>) target_semaphore(%arg6 : memref<!tpu.dma_semaphore, #tpu.memory_space<semaphore_mem>>)
    %c0_i32_78 = arith.constant 0 : i32
    %54 = tpu.memref_slice %arg2[%11, %c0_i32_78] : memref<1024x256xf32, #tpu.memory_space<any>> -> memref<1x256xf32, #tpu.memory_space<any>>
    %c11_i32 = arith.constant 11 : i32
    %c0_i32_79 = arith.constant 0 : i32
    %55 = tpu.memref_slice %arg5[%c11_i32, %c0_i32_79] : memref<32x256xf32, #tpu.memory_space<vmem>> -> memref<1x256xf32, #tpu.memory_space<vmem>>
    tpu.enqueue_dma source(%54 : memref<1x256xf32, #tpu.memory_space<any>>) target(%55 : memref<1x256xf32, #tpu.memory_space<vmem>>) target_semaphore(%arg6 : memref<!tpu.dma_semaphore, #tpu.memory_space<semaphore_mem>>)
    %c0_i32_80 = arith.constant 0 : i32
    %56 = tpu.memref_slice %arg2[%12, %c0_i32_80] : memref<1024x256xf32, #tpu.memory_space<any>> -> memref<1x256xf32, #tpu.memory_space<any>>
    %c12_i32 = arith.constant 12 : i32
    %c0_i32_81 = arith.constant 0 : i32
    %57 = tpu.memref_slice %arg5[%c12_i32, %c0_i32_81] : memref<32x256xf32, #tpu.memory_space<vmem>> -> memref<1x256xf32, #tpu.memory_space<vmem>>
    tpu.enqueue_dma source(%56 : memref<1x256xf32, #tpu.memory_space<any>>) target(%57 : memref<1x256xf32, #tpu.memory_space<vmem>>) target_semaphore(%arg6 : memref<!tpu.dma_semaphore, #tpu.memory_space<semaphore_mem>>)
    %c0_i32_82 = arith.constant 0 : i32
    %58 = tpu.memref_slice %arg2[%13, %c0_i32_82] : memref<1024x256xf32, #tpu.memory_space<any>> -> memref<1x256xf32, #tpu.memory_space<any>>
    %c13_i32 = arith.constant 13 : i32
    %c0_i32_83 = arith.constant 0 : i32
    %59 = tpu.memref_slice %arg5[%c13_i32, %c0_i32_83] : memref<32x256xf32, #tpu.memory_space<vmem>> -> memref<1x256xf32, #tpu.memory_space<vmem>>
    tpu.enqueue_dma source(%58 : memref<1x256xf32, #tpu.memory_space<any>>) target(%59 : memref<1x256xf32, #tpu.memory_space<vmem>>) target_semaphore(%arg6 : memref<!tpu.dma_semaphore, #tpu.memory_space<semaphore_mem>>)
    %c0_i32_84 = arith.constant 0 : i32
    %60 = tpu.memref_slice %arg2[%14, %c0_i32_84] : memref<1024x256xf32, #tpu.memory_space<any>> -> memref<1x256xf32, #tpu.memory_space<any>>
    %c14_i32 = arith.constant 14 : i32
    %c0_i32_85 = arith.constant 0 : i32
    %61 = tpu.memref_slice %arg5[%c14_i32, %c0_i32_85] : memref<32x256xf32, #tpu.memory_space<vmem>> -> memref<1x256xf32, #tpu.memory_space<vmem>>
    tpu.enqueue_dma source(%60 : memref<1x256xf32, #tpu.memory_space<any>>) target(%61 : memref<1x256xf32, #tpu.memory_space<vmem>>) target_semaphore(%arg6 : memref<!tpu.dma_semaphore, #tpu.memory_space<semaphore_mem>>)
    %c0_i32_86 = arith.constant 0 : i32
    %62 = tpu.memref_slice %arg2[%15, %c0_i32_86] : memref<1024x256xf32, #tpu.memory_space<any>> -> memref<1x256xf32, #tpu.memory_space<any>>
    %c15_i32 = arith.constant 15 : i32
    %c0_i32_87 = arith.constant 0 : i32
    %63 = tpu.memref_slice %arg5[%c15_i32, %c0_i32_87] : memref<32x256xf32, #tpu.memory_space<vmem>> -> memref<1x256xf32, #tpu.memory_space<vmem>>
    tpu.enqueue_dma source(%62 : memref<1x256xf32, #tpu.memory_space<any>>) target(%63 : memref<1x256xf32, #tpu.memory_space<vmem>>) target_semaphore(%arg6 : memref<!tpu.dma_semaphore, #tpu.memory_space<semaphore_mem>>)
    %c0_i32_88 = arith.constant 0 : i32
    %64 = tpu.memref_slice %arg2[%16, %c0_i32_88] : memref<1024x256xf32, #tpu.memory_space<any>> -> memref<1x256xf32, #tpu.memory_space<any>>
    %c16_i32 = arith.constant 16 : i32
    %c0_i32_89 = arith.constant 0 : i32
    %65 = tpu.memref_slice %arg5[%c16_i32, %c0_i32_89] : memref<32x256xf32, #tpu.memory_space<vmem>> -> memref<1x256xf32, #tpu.memory_space<vmem>>
    tpu.enqueue_dma source(%64 : memref<1x256xf32, #tpu.memory_space<any>>) target(%65 : memref<1x256xf32, #tpu.memory_space<vmem>>) target_semaphore(%arg6 : memref<!tpu.dma_semaphore, #tpu.memory_space<semaphore_mem>>)
    %c0_i32_90 = arith.constant 0 : i32
    %66 = tpu.memref_slice %arg2[%17, %c0_i32_90] : memref<1024x256xf32, #tpu.memory_space<any>> -> memref<1x256xf32, #tpu.memory_space<any>>
    %c17_i32 = arith.constant 17 : i32
    %c0_i32_91 = arith.constant 0 : i32
    %67 = tpu.memref_slice %arg5[%c17_i32, %c0_i32_91] : memref<32x256xf32, #tpu.memory_space<vmem>> -> memref<1x256xf32, #tpu.memory_space<vmem>>
    tpu.enqueue_dma source(%66 : memref<1x256xf32, #tpu.memory_space<any>>) target(%67 : memref<1x256xf32, #tpu.memory_space<vmem>>) target_semaphore(%arg6 : memref<!tpu.dma_semaphore, #tpu.memory_space<semaphore_mem>>)
    %c0_i32_92 = arith.constant 0 : i32
    %68 = tpu.memref_slice %arg2[%18, %c0_i32_92] : memref<1024x256xf32, #tpu.memory_space<any>> -> memref<1x256xf32, #tpu.memory_space<any>>
    %c18_i32 = arith.constant 18 : i32
    %c0_i32_93 = arith.constant 0 : i32
    %69 = tpu.memref_slice %arg5[%c18_i32, %c0_i32_93] : memref<32x256xf32, #tpu.memory_space<vmem>> -> memref<1x256xf32, #tpu.memory_space<vmem>>
    tpu.enqueue_dma source(%68 : memref<1x256xf32, #tpu.memory_space<any>>) target(%69 : memref<1x256xf32, #tpu.memory_space<vmem>>) target_semaphore(%arg6 : memref<!tpu.dma_semaphore, #tpu.memory_space<semaphore_mem>>)
    %c0_i32_94 = arith.constant 0 : i32
    %70 = tpu.memref_slice %arg2[%19, %c0_i32_94] : memref<1024x256xf32, #tpu.memory_space<any>> -> memref<1x256xf32, #tpu.memory_space<any>>
    %c19_i32 = arith.constant 19 : i32
    %c0_i32_95 = arith.constant 0 : i32
    %71 = tpu.memref_slice %arg5[%c19_i32, %c0_i32_95] : memref<32x256xf32, #tpu.memory_space<vmem>> -> memref<1x256xf32, #tpu.memory_space<vmem>>
    tpu.enqueue_dma source(%70 : memref<1x256xf32, #tpu.memory_space<any>>) target(%71 : memref<1x256xf32, #tpu.memory_space<vmem>>) target_semaphore(%arg6 : memref<!tpu.dma_semaphore, #tpu.memory_space<semaphore_mem>>)
    %c0_i32_96 = arith.constant 0 : i32
    %72 = tpu.memref_slice %arg2[%20, %c0_i32_96] : memref<1024x256xf32, #tpu.memory_space<any>> -> memref<1x256xf32, #tpu.memory_space<any>>
    %c20_i32 = arith.constant 20 : i32
    %c0_i32_97 = arith.constant 0 : i32
    %73 = tpu.memref_slice %arg5[%c20_i32, %c0_i32_97] : memref<32x256xf32, #tpu.memory_space<vmem>> -> memref<1x256xf32, #tpu.memory_space<vmem>>
    tpu.enqueue_dma source(%72 : memref<1x256xf32, #tpu.memory_space<any>>) target(%73 : memref<1x256xf32, #tpu.memory_space<vmem>>) target_semaphore(%arg6 : memref<!tpu.dma_semaphore, #tpu.memory_space<semaphore_mem>>)
    %c0_i32_98 = arith.constant 0 : i32
    %74 = tpu.memref_slice %arg2[%21, %c0_i32_98] : memref<1024x256xf32, #tpu.memory_space<any>> -> memref<1x256xf32, #tpu.memory_space<any>>
    %c21_i32 = arith.constant 21 : i32
    %c0_i32_99 = arith.constant 0 : i32
    %75 = tpu.memref_slice %arg5[%c21_i32, %c0_i32_99] : memref<32x256xf32, #tpu.memory_space<vmem>> -> memref<1x256xf32, #tpu.memory_space<vmem>>
    tpu.enqueue_dma source(%74 : memref<1x256xf32, #tpu.memory_space<any>>) target(%75 : memref<1x256xf32, #tpu.memory_space<vmem>>) target_semaphore(%arg6 : memref<!tpu.dma_semaphore, #tpu.memory_space<semaphore_mem>>)
    %c0_i32_100 = arith.constant 0 : i32
    %76 = tpu.memref_slice %arg2[%22, %c0_i32_100] : memref<1024x256xf32, #tpu.memory_space<any>> -> memref<1x256xf32, #tpu.memory_space<any>>
    %c22_i32 = arith.constant 22 : i32
    %c0_i32_101 = arith.constant 0 : i32
    %77 = tpu.memref_slice %arg5[%c22_i32, %c0_i32_101] : memref<32x256xf32, #tpu.memory_space<vmem>> -> memref<1x256xf32, #tpu.memory_space<vmem>>
    tpu.enqueue_dma source(%76 : memref<1x256xf32, #tpu.memory_space<any>>) target(%77 : memref<1x256xf32, #tpu.memory_space<vmem>>) target_semaphore(%arg6 : memref<!tpu.dma_semaphore, #tpu.memory_space<semaphore_mem>>)
    %c0_i32_102 = arith.constant 0 : i32
    %78 = tpu.memref_slice %arg2[%23, %c0_i32_102] : memref<1024x256xf32, #tpu.memory_space<any>> -> memref<1x256xf32, #tpu.memory_space<any>>
    %c23_i32 = arith.constant 23 : i32
    %c0_i32_103 = arith.constant 0 : i32
    %79 = tpu.memref_slice %arg5[%c23_i32, %c0_i32_103] : memref<32x256xf32, #tpu.memory_space<vmem>> -> memref<1x256xf32, #tpu.memory_space<vmem>>
    tpu.enqueue_dma source(%78 : memref<1x256xf32, #tpu.memory_space<any>>) target(%79 : memref<1x256xf32, #tpu.memory_space<vmem>>) target_semaphore(%arg6 : memref<!tpu.dma_semaphore, #tpu.memory_space<semaphore_mem>>)
    %c0_i32_104 = arith.constant 0 : i32
    %80 = tpu.memref_slice %arg2[%24, %c0_i32_104] : memref<1024x256xf32, #tpu.memory_space<any>> -> memref<1x256xf32, #tpu.memory_space<any>>
    %c24_i32 = arith.constant 24 : i32
    %c0_i32_105 = arith.constant 0 : i32
    %81 = tpu.memref_slice %arg5[%c24_i32, %c0_i32_105] : memref<32x256xf32, #tpu.memory_space<vmem>> -> memref<1x256xf32, #tpu.memory_space<vmem>>
    tpu.enqueue_dma source(%80 : memref<1x256xf32, #tpu.memory_space<any>>) target(%81 : memref<1x256xf32, #tpu.memory_space<vmem>>) target_semaphore(%arg6 : memref<!tpu.dma_semaphore, #tpu.memory_space<semaphore_mem>>)
    %c0_i32_106 = arith.constant 0 : i32
    %82 = tpu.memref_slice %arg2[%25, %c0_i32_106] : memref<1024x256xf32, #tpu.memory_space<any>> -> memref<1x256xf32, #tpu.memory_space<any>>
    %c25_i32 = arith.constant 25 : i32
    %c0_i32_107 = arith.constant 0 : i32
    %83 = tpu.memref_slice %arg5[%c25_i32, %c0_i32_107] : memref<32x256xf32, #tpu.memory_space<vmem>> -> memref<1x256xf32, #tpu.memory_space<vmem>>
    tpu.enqueue_dma source(%82 : memref<1x256xf32, #tpu.memory_space<any>>) target(%83 : memref<1x256xf32, #tpu.memory_space<vmem>>) target_semaphore(%arg6 : memref<!tpu.dma_semaphore, #tpu.memory_space<semaphore_mem>>)
    %c0_i32_108 = arith.constant 0 : i32
    %84 = tpu.memref_slice %arg2[%26, %c0_i32_108] : memref<1024x256xf32, #tpu.memory_space<any>> -> memref<1x256xf32, #tpu.memory_space<any>>
    %c26_i32 = arith.constant 26 : i32
    %c0_i32_109 = arith.constant 0 : i32
    %85 = tpu.memref_slice %arg5[%c26_i32, %c0_i32_109] : memref<32x256xf32, #tpu.memory_space<vmem>> -> memref<1x256xf32, #tpu.memory_space<vmem>>
    tpu.enqueue_dma source(%84 : memref<1x256xf32, #tpu.memory_space<any>>) target(%85 : memref<1x256xf32, #tpu.memory_space<vmem>>) target_semaphore(%arg6 : memref<!tpu.dma_semaphore, #tpu.memory_space<semaphore_mem>>)
    %c0_i32_110 = arith.constant 0 : i32
    %86 = tpu.memref_slice %arg2[%27, %c0_i32_110] : memref<1024x256xf32, #tpu.memory_space<any>> -> memref<1x256xf32, #tpu.memory_space<any>>
    %c27_i32 = arith.constant 27 : i32
    %c0_i32_111 = arith.constant 0 : i32
    %87 = tpu.memref_slice %arg5[%c27_i32, %c0_i32_111] : memref<32x256xf32, #tpu.memory_space<vmem>> -> memref<1x256xf32, #tpu.memory_space<vmem>>
    tpu.enqueue_dma source(%86 : memref<1x256xf32, #tpu.memory_space<any>>) target(%87 : memref<1x256xf32, #tpu.memory_space<vmem>>) target_semaphore(%arg6 : memref<!tpu.dma_semaphore, #tpu.memory_space<semaphore_mem>>)
    %c0_i32_112 = arith.constant 0 : i32
    %88 = tpu.memref_slice %arg2[%28, %c0_i32_112] : memref<1024x256xf32, #tpu.memory_space<any>> -> memref<1x256xf32, #tpu.memory_space<any>>
    %c28_i32 = arith.constant 28 : i32
    %c0_i32_113 = arith.constant 0 : i32
    %89 = tpu.memref_slice %arg5[%c28_i32, %c0_i32_113] : memref<32x256xf32, #tpu.memory_space<vmem>> -> memref<1x256xf32, #tpu.memory_space<vmem>>
    tpu.enqueue_dma source(%88 : memref<1x256xf32, #tpu.memory_space<any>>) target(%89 : memref<1x256xf32, #tpu.memory_space<vmem>>) target_semaphore(%arg6 : memref<!tpu.dma_semaphore, #tpu.memory_space<semaphore_mem>>)
    %c0_i32_114 = arith.constant 0 : i32
    %90 = tpu.memref_slice %arg2[%29, %c0_i32_114] : memref<1024x256xf32, #tpu.memory_space<any>> -> memref<1x256xf32, #tpu.memory_space<any>>
    %c29_i32 = arith.constant 29 : i32
    %c0_i32_115 = arith.constant 0 : i32
    %91 = tpu.memref_slice %arg5[%c29_i32, %c0_i32_115] : memref<32x256xf32, #tpu.memory_space<vmem>> -> memref<1x256xf32, #tpu.memory_space<vmem>>
    tpu.enqueue_dma source(%90 : memref<1x256xf32, #tpu.memory_space<any>>) target(%91 : memref<1x256xf32, #tpu.memory_space<vmem>>) target_semaphore(%arg6 : memref<!tpu.dma_semaphore, #tpu.memory_space<semaphore_mem>>)
    %c0_i32_116 = arith.constant 0 : i32
    %92 = tpu.memref_slice %arg2[%30, %c0_i32_116] : memref<1024x256xf32, #tpu.memory_space<any>> -> memref<1x256xf32, #tpu.memory_space<any>>
    %c30_i32 = arith.constant 30 : i32
    %c0_i32_117 = arith.constant 0 : i32
    %93 = tpu.memref_slice %arg5[%c30_i32, %c0_i32_117] : memref<32x256xf32, #tpu.memory_space<vmem>> -> memref<1x256xf32, #tpu.memory_space<vmem>>
    tpu.enqueue_dma source(%92 : memref<1x256xf32, #tpu.memory_space<any>>) target(%93 : memref<1x256xf32, #tpu.memory_space<vmem>>) target_semaphore(%arg6 : memref<!tpu.dma_semaphore, #tpu.memory_space<semaphore_mem>>)
    %c0_i32_118 = arith.constant 0 : i32
    %94 = tpu.memref_slice %arg2[%31, %c0_i32_118] : memref<1024x256xf32, #tpu.memory_space<any>> -> memref<1x256xf32, #tpu.memory_space<any>>
    %c31_i32 = arith.constant 31 : i32
    %c0_i32_119 = arith.constant 0 : i32
    %95 = tpu.memref_slice %arg5[%c31_i32, %c0_i32_119] : memref<32x256xf32, #tpu.memory_space<vmem>> -> memref<1x256xf32, #tpu.memory_space<vmem>>
    tpu.enqueue_dma source(%94 : memref<1x256xf32, #tpu.memory_space<any>>) target(%95 : memref<1x256xf32, #tpu.memory_space<vmem>>) target_semaphore(%arg6 : memref<!tpu.dma_semaphore, #tpu.memory_space<semaphore_mem>>)
    %c0_i32_120 = arith.constant 0 : i32
    %96 = tpu.memref_slice %arg2[%0, %c0_i32_120] : memref<1024x256xf32, #tpu.memory_space<any>> -> memref<1x256xf32, #tpu.memory_space<any>>
    %c0_i32_121 = arith.constant 0 : i32
    %c0_i32_122 = arith.constant 0 : i32
    %97 = tpu.memref_slice %arg5[%c0_i32_121, %c0_i32_122] : memref<32x256xf32, #tpu.memory_space<vmem>> -> memref<1x256xf32, #tpu.memory_space<vmem>>
    tpu.wait_dma2 semaphore(%arg6 : memref<!tpu.dma_semaphore, #tpu.memory_space<semaphore_mem>>) src(%96 : memref<1x256xf32, #tpu.memory_space<any>>) dst(%97 : memref<1x256xf32, #tpu.memory_space<vmem>>)
    %c0_i32_123 = arith.constant 0 : i32
    %98 = tpu.memref_slice %arg2[%1, %c0_i32_123] : memref<1024x256xf32, #tpu.memory_space<any>> -> memref<1x256xf32, #tpu.memory_space<any>>
    %c1_i32_124 = arith.constant 1 : i32
    %c0_i32_125 = arith.constant 0 : i32
    %99 = tpu.memref_slice %arg5[%c1_i32_124, %c0_i32_125] : memref<32x256xf32, #tpu.memory_space<vmem>> -> memref<1x256xf32, #tpu.memory_space<vmem>>
    tpu.wait_dma2 semaphore(%arg6 : memref<!tpu.dma_semaphore, #tpu.memory_space<semaphore_mem>>) src(%98 : memref<1x256xf32, #tpu.memory_space<any>>) dst(%99 : memref<1x256xf32, #tpu.memory_space<vmem>>)
    %c0_i32_126 = arith.constant 0 : i32
    %100 = tpu.memref_slice %arg2[%2, %c0_i32_126] : memref<1024x256xf32, #tpu.memory_space<any>> -> memref<1x256xf32, #tpu.memory_space<any>>
    %c2_i32_127 = arith.constant 2 : i32
    %c0_i32_128 = arith.constant 0 : i32
    %101 = tpu.memref_slice %arg5[%c2_i32_127, %c0_i32_128] : memref<32x256xf32, #tpu.memory_space<vmem>> -> memref<1x256xf32, #tpu.memory_space<vmem>>
    tpu.wait_dma2 semaphore(%arg6 : memref<!tpu.dma_semaphore, #tpu.memory_space<semaphore_mem>>) src(%100 : memref<1x256xf32, #tpu.memory_space<any>>) dst(%101 : memref<1x256xf32, #tpu.memory_space<vmem>>)
    %c0_i32_129 = arith.constant 0 : i32
    %102 = tpu.memref_slice %arg2[%3, %c0_i32_129] : memref<1024x256xf32, #tpu.memory_space<any>> -> memref<1x256xf32, #tpu.memory_space<any>>
    %c3_i32_130 = arith.constant 3 : i32
    %c0_i32_131 = arith.constant 0 : i32
    %103 = tpu.memref_slice %arg5[%c3_i32_130, %c0_i32_131] : memref<32x256xf32, #tpu.memory_space<vmem>> -> memref<1x256xf32, #tpu.memory_space<vmem>>
    tpu.wait_dma2 semaphore(%arg6 : memref<!tpu.dma_semaphore, #tpu.memory_space<semaphore_mem>>) src(%102 : memref<1x256xf32, #tpu.memory_space<any>>) dst(%103 : memref<1x256xf32, #tpu.memory_space<vmem>>)
    %c0_i32_132 = arith.constant 0 : i32
    %104 = tpu.memref_slice %arg2[%4, %c0_i32_132] : memref<1024x256xf32, #tpu.memory_space<any>> -> memref<1x256xf32, #tpu.memory_space<any>>
    %c4_i32_133 = arith.constant 4 : i32
    %c0_i32_134 = arith.constant 0 : i32
    %105 = tpu.memref_slice %arg5[%c4_i32_133, %c0_i32_134] : memref<32x256xf32, #tpu.memory_space<vmem>> -> memref<1x256xf32, #tpu.memory_space<vmem>>
    tpu.wait_dma2 semaphore(%arg6 : memref<!tpu.dma_semaphore, #tpu.memory_space<semaphore_mem>>) src(%104 : memref<1x256xf32, #tpu.memory_space<any>>) dst(%105 : memref<1x256xf32, #tpu.memory_space<vmem>>)
    %c0_i32_135 = arith.constant 0 : i32
    %106 = tpu.memref_slice %arg2[%5, %c0_i32_135] : memref<1024x256xf32, #tpu.memory_space<any>> -> memref<1x256xf32, #tpu.memory_space<any>>
    %c5_i32_136 = arith.constant 5 : i32
    %c0_i32_137 = arith.constant 0 : i32
    %107 = tpu.memref_slice %arg5[%c5_i32_136, %c0_i32_137] : memref<32x256xf32, #tpu.memory_space<vmem>> -> memref<1x256xf32, #tpu.memory_space<vmem>>
    tpu.wait_dma2 semaphore(%arg6 : memref<!tpu.dma_semaphore, #tpu.memory_space<semaphore_mem>>) src(%106 : memref<1x256xf32, #tpu.memory_space<any>>) dst(%107 : memref<1x256xf32, #tpu.memory_space<vmem>>)
    %c0_i32_138 = arith.constant 0 : i32
    %108 = tpu.memref_slice %arg2[%6, %c0_i32_138] : memref<1024x256xf32, #tpu.memory_space<any>> -> memref<1x256xf32, #tpu.memory_space<any>>
    %c6_i32_139 = arith.constant 6 : i32
    %c0_i32_140 = arith.constant 0 : i32
    %109 = tpu.memref_slice %arg5[%c6_i32_139, %c0_i32_140] : memref<32x256xf32, #tpu.memory_space<vmem>> -> memref<1x256xf32, #tpu.memory_space<vmem>>
    tpu.wait_dma2 semaphore(%arg6 : memref<!tpu.dma_semaphore, #tpu.memory_space<semaphore_mem>>) src(%108 : memref<1x256xf32, #tpu.memory_space<any>>) dst(%109 : memref<1x256xf32, #tpu.memory_space<vmem>>)
    %c0_i32_141 = arith.constant 0 : i32
    %110 = tpu.memref_slice %arg2[%7, %c0_i32_141] : memref<1024x256xf32, #tpu.memory_space<any>> -> memref<1x256xf32, #tpu.memory_space<any>>
    %c7_i32_142 = arith.constant 7 : i32
    %c0_i32_143 = arith.constant 0 : i32
    %111 = tpu.memref_slice %arg5[%c7_i32_142, %c0_i32_143] : memref<32x256xf32, #tpu.memory_space<vmem>> -> memref<1x256xf32, #tpu.memory_space<vmem>>
    tpu.wait_dma2 semaphore(%arg6 : memref<!tpu.dma_semaphore, #tpu.memory_space<semaphore_mem>>) src(%110 : memref<1x256xf32, #tpu.memory_space<any>>) dst(%111 : memref<1x256xf32, #tpu.memory_space<vmem>>)
    %c0_i32_144 = arith.constant 0 : i32
    %112 = tpu.memref_slice %arg2[%8, %c0_i32_144] : memref<1024x256xf32, #tpu.memory_space<any>> -> memref<1x256xf32, #tpu.memory_space<any>>
    %c8_i32_145 = arith.constant 8 : i32
    %c0_i32_146 = arith.constant 0 : i32
    %113 = tpu.memref_slice %arg5[%c8_i32_145, %c0_i32_146] : memref<32x256xf32, #tpu.memory_space<vmem>> -> memref<1x256xf32, #tpu.memory_space<vmem>>
    tpu.wait_dma2 semaphore(%arg6 : memref<!tpu.dma_semaphore, #tpu.memory_space<semaphore_mem>>) src(%112 : memref<1x256xf32, #tpu.memory_space<any>>) dst(%113 : memref<1x256xf32, #tpu.memory_space<vmem>>)
    %c0_i32_147 = arith.constant 0 : i32
    %114 = tpu.memref_slice %arg2[%9, %c0_i32_147] : memref<1024x256xf32, #tpu.memory_space<any>> -> memref<1x256xf32, #tpu.memory_space<any>>
    %c9_i32_148 = arith.constant 9 : i32
    %c0_i32_149 = arith.constant 0 : i32
    %115 = tpu.memref_slice %arg5[%c9_i32_148, %c0_i32_149] : memref<32x256xf32, #tpu.memory_space<vmem>> -> memref<1x256xf32, #tpu.memory_space<vmem>>
    tpu.wait_dma2 semaphore(%arg6 : memref<!tpu.dma_semaphore, #tpu.memory_space<semaphore_mem>>) src(%114 : memref<1x256xf32, #tpu.memory_space<any>>) dst(%115 : memref<1x256xf32, #tpu.memory_space<vmem>>)
    %c0_i32_150 = arith.constant 0 : i32
    %116 = tpu.memref_slice %arg2[%10, %c0_i32_150] : memref<1024x256xf32, #tpu.memory_space<any>> -> memref<1x256xf32, #tpu.memory_space<any>>
    %c10_i32_151 = arith.constant 10 : i32
    %c0_i32_152 = arith.constant 0 : i32
    %117 = tpu.memref_slice %arg5[%c10_i32_151, %c0_i32_152] : memref<32x256xf32, #tpu.memory_space<vmem>> -> memref<1x256xf32, #tpu.memory_space<vmem>>
    tpu.wait_dma2 semaphore(%arg6 : memref<!tpu.dma_semaphore, #tpu.memory_space<semaphore_mem>>) src(%116 : memref<1x256xf32, #tpu.memory_space<any>>) dst(%117 : memref<1x256xf32, #tpu.memory_space<vmem>>)
    %c0_i32_153 = arith.constant 0 : i32
    %118 = tpu.memref_slice %arg2[%11, %c0_i32_153] : memref<1024x256xf32, #tpu.memory_space<any>> -> memref<1x256xf32, #tpu.memory_space<any>>
    %c11_i32_154 = arith.constant 11 : i32
    %c0_i32_155 = arith.constant 0 : i32
    %119 = tpu.memref_slice %arg5[%c11_i32_154, %c0_i32_155] : memref<32x256xf32, #tpu.memory_space<vmem>> -> memref<1x256xf32, #tpu.memory_space<vmem>>
    tpu.wait_dma2 semaphore(%arg6 : memref<!tpu.dma_semaphore, #tpu.memory_space<semaphore_mem>>) src(%118 : memref<1x256xf32, #tpu.memory_space<any>>) dst(%119 : memref<1x256xf32, #tpu.memory_space<vmem>>)
    %c0_i32_156 = arith.constant 0 : i32
    %120 = tpu.memref_slice %arg2[%12, %c0_i32_156] : memref<1024x256xf32, #tpu.memory_space<any>> -> memref<1x256xf32, #tpu.memory_space<any>>
    %c12_i32_157 = arith.constant 12 : i32
    %c0_i32_158 = arith.constant 0 : i32
    %121 = tpu.memref_slice %arg5[%c12_i32_157, %c0_i32_158] : memref<32x256xf32, #tpu.memory_space<vmem>> -> memref<1x256xf32, #tpu.memory_space<vmem>>
    tpu.wait_dma2 semaphore(%arg6 : memref<!tpu.dma_semaphore, #tpu.memory_space<semaphore_mem>>) src(%120 : memref<1x256xf32, #tpu.memory_space<any>>) dst(%121 : memref<1x256xf32, #tpu.memory_space<vmem>>)
    %c0_i32_159 = arith.constant 0 : i32
    %122 = tpu.memref_slice %arg2[%13, %c0_i32_159] : memref<1024x256xf32, #tpu.memory_space<any>> -> memref<1x256xf32, #tpu.memory_space<any>>
    %c13_i32_160 = arith.constant 13 : i32
    %c0_i32_161 = arith.constant 0 : i32
    %123 = tpu.memref_slice %arg5[%c13_i32_160, %c0_i32_161] : memref<32x256xf32, #tpu.memory_space<vmem>> -> memref<1x256xf32, #tpu.memory_space<vmem>>
    tpu.wait_dma2 semaphore(%arg6 : memref<!tpu.dma_semaphore, #tpu.memory_space<semaphore_mem>>) src(%122 : memref<1x256xf32, #tpu.memory_space<any>>) dst(%123 : memref<1x256xf32, #tpu.memory_space<vmem>>)
    %c0_i32_162 = arith.constant 0 : i32
    %124 = tpu.memref_slice %arg2[%14, %c0_i32_162] : memref<1024x256xf32, #tpu.memory_space<any>> -> memref<1x256xf32, #tpu.memory_space<any>>
    %c14_i32_163 = arith.constant 14 : i32
    %c0_i32_164 = arith.constant 0 : i32
    %125 = tpu.memref_slice %arg5[%c14_i32_163, %c0_i32_164] : memref<32x256xf32, #tpu.memory_space<vmem>> -> memref<1x256xf32, #tpu.memory_space<vmem>>
    tpu.wait_dma2 semaphore(%arg6 : memref<!tpu.dma_semaphore, #tpu.memory_space<semaphore_mem>>) src(%124 : memref<1x256xf32, #tpu.memory_space<any>>) dst(%125 : memref<1x256xf32, #tpu.memory_space<vmem>>)
    %c0_i32_165 = arith.constant 0 : i32
    %126 = tpu.memref_slice %arg2[%15, %c0_i32_165] : memref<1024x256xf32, #tpu.memory_space<any>> -> memref<1x256xf32, #tpu.memory_space<any>>
    %c15_i32_166 = arith.constant 15 : i32
    %c0_i32_167 = arith.constant 0 : i32
    %127 = tpu.memref_slice %arg5[%c15_i32_166, %c0_i32_167] : memref<32x256xf32, #tpu.memory_space<vmem>> -> memref<1x256xf32, #tpu.memory_space<vmem>>
    tpu.wait_dma2 semaphore(%arg6 : memref<!tpu.dma_semaphore, #tpu.memory_space<semaphore_mem>>) src(%126 : memref<1x256xf32, #tpu.memory_space<any>>) dst(%127 : memref<1x256xf32, #tpu.memory_space<vmem>>)
    %c0_i32_168 = arith.constant 0 : i32
    %128 = tpu.memref_slice %arg2[%16, %c0_i32_168] : memref<1024x256xf32, #tpu.memory_space<any>> -> memref<1x256xf32, #tpu.memory_space<any>>
    %c16_i32_169 = arith.constant 16 : i32
    %c0_i32_170 = arith.constant 0 : i32
    %129 = tpu.memref_slice %arg5[%c16_i32_169, %c0_i32_170] : memref<32x256xf32, #tpu.memory_space<vmem>> -> memref<1x256xf32, #tpu.memory_space<vmem>>
    tpu.wait_dma2 semaphore(%arg6 : memref<!tpu.dma_semaphore, #tpu.memory_space<semaphore_mem>>) src(%128 : memref<1x256xf32, #tpu.memory_space<any>>) dst(%129 : memref<1x256xf32, #tpu.memory_space<vmem>>)
    %c0_i32_171 = arith.constant 0 : i32
    %130 = tpu.memref_slice %arg2[%17, %c0_i32_171] : memref<1024x256xf32, #tpu.memory_space<any>> -> memref<1x256xf32, #tpu.memory_space<any>>
    %c17_i32_172 = arith.constant 17 : i32
    %c0_i32_173 = arith.constant 0 : i32
    %131 = tpu.memref_slice %arg5[%c17_i32_172, %c0_i32_173] : memref<32x256xf32, #tpu.memory_space<vmem>> -> memref<1x256xf32, #tpu.memory_space<vmem>>
    tpu.wait_dma2 semaphore(%arg6 : memref<!tpu.dma_semaphore, #tpu.memory_space<semaphore_mem>>) src(%130 : memref<1x256xf32, #tpu.memory_space<any>>) dst(%131 : memref<1x256xf32, #tpu.memory_space<vmem>>)
    %c0_i32_174 = arith.constant 0 : i32
    %132 = tpu.memref_slice %arg2[%18, %c0_i32_174] : memref<1024x256xf32, #tpu.memory_space<any>> -> memref<1x256xf32, #tpu.memory_space<any>>
    %c18_i32_175 = arith.constant 18 : i32
    %c0_i32_176 = arith.constant 0 : i32
    %133 = tpu.memref_slice %arg5[%c18_i32_175, %c0_i32_176] : memref<32x256xf32, #tpu.memory_space<vmem>> -> memref<1x256xf32, #tpu.memory_space<vmem>>
    tpu.wait_dma2 semaphore(%arg6 : memref<!tpu.dma_semaphore, #tpu.memory_space<semaphore_mem>>) src(%132 : memref<1x256xf32, #tpu.memory_space<any>>) dst(%133 : memref<1x256xf32, #tpu.memory_space<vmem>>)
    %c0_i32_177 = arith.constant 0 : i32
    %134 = tpu.memref_slice %arg2[%19, %c0_i32_177] : memref<1024x256xf32, #tpu.memory_space<any>> -> memref<1x256xf32, #tpu.memory_space<any>>
    %c19_i32_178 = arith.constant 19 : i32
    %c0_i32_179 = arith.constant 0 : i32
    %135 = tpu.memref_slice %arg5[%c19_i32_178, %c0_i32_179] : memref<32x256xf32, #tpu.memory_space<vmem>> -> memref<1x256xf32, #tpu.memory_space<vmem>>
    tpu.wait_dma2 semaphore(%arg6 : memref<!tpu.dma_semaphore, #tpu.memory_space<semaphore_mem>>) src(%134 : memref<1x256xf32, #tpu.memory_space<any>>) dst(%135 : memref<1x256xf32, #tpu.memory_space<vmem>>)
    %c0_i32_180 = arith.constant 0 : i32
    %136 = tpu.memref_slice %arg2[%20, %c0_i32_180] : memref<1024x256xf32, #tpu.memory_space<any>> -> memref<1x256xf32, #tpu.memory_space<any>>
    %c20_i32_181 = arith.constant 20 : i32
    %c0_i32_182 = arith.constant 0 : i32
    %137 = tpu.memref_slice %arg5[%c20_i32_181, %c0_i32_182] : memref<32x256xf32, #tpu.memory_space<vmem>> -> memref<1x256xf32, #tpu.memory_space<vmem>>
    tpu.wait_dma2 semaphore(%arg6 : memref<!tpu.dma_semaphore, #tpu.memory_space<semaphore_mem>>) src(%136 : memref<1x256xf32, #tpu.memory_space<any>>) dst(%137 : memref<1x256xf32, #tpu.memory_space<vmem>>)
    %c0_i32_183 = arith.constant 0 : i32
    %138 = tpu.memref_slice %arg2[%21, %c0_i32_183] : memref<1024x256xf32, #tpu.memory_space<any>> -> memref<1x256xf32, #tpu.memory_space<any>>
    %c21_i32_184 = arith.constant 21 : i32
    %c0_i32_185 = arith.constant 0 : i32
    %139 = tpu.memref_slice %arg5[%c21_i32_184, %c0_i32_185] : memref<32x256xf32, #tpu.memory_space<vmem>> -> memref<1x256xf32, #tpu.memory_space<vmem>>
    tpu.wait_dma2 semaphore(%arg6 : memref<!tpu.dma_semaphore, #tpu.memory_space<semaphore_mem>>) src(%138 : memref<1x256xf32, #tpu.memory_space<any>>) dst(%139 : memref<1x256xf32, #tpu.memory_space<vmem>>)
    %c0_i32_186 = arith.constant 0 : i32
    %140 = tpu.memref_slice %arg2[%22, %c0_i32_186] : memref<1024x256xf32, #tpu.memory_space<any>> -> memref<1x256xf32, #tpu.memory_space<any>>
    %c22_i32_187 = arith.constant 22 : i32
    %c0_i32_188 = arith.constant 0 : i32
    %141 = tpu.memref_slice %arg5[%c22_i32_187, %c0_i32_188] : memref<32x256xf32, #tpu.memory_space<vmem>> -> memref<1x256xf32, #tpu.memory_space<vmem>>
    tpu.wait_dma2 semaphore(%arg6 : memref<!tpu.dma_semaphore, #tpu.memory_space<semaphore_mem>>) src(%140 : memref<1x256xf32, #tpu.memory_space<any>>) dst(%141 : memref<1x256xf32, #tpu.memory_space<vmem>>)
    %c0_i32_189 = arith.constant 0 : i32
    %142 = tpu.memref_slice %arg2[%23, %c0_i32_189] : memref<1024x256xf32, #tpu.memory_space<any>> -> memref<1x256xf32, #tpu.memory_space<any>>
    %c23_i32_190 = arith.constant 23 : i32
    %c0_i32_191 = arith.constant 0 : i32
    %143 = tpu.memref_slice %arg5[%c23_i32_190, %c0_i32_191] : memref<32x256xf32, #tpu.memory_space<vmem>> -> memref<1x256xf32, #tpu.memory_space<vmem>>
    tpu.wait_dma2 semaphore(%arg6 : memref<!tpu.dma_semaphore, #tpu.memory_space<semaphore_mem>>) src(%142 : memref<1x256xf32, #tpu.memory_space<any>>) dst(%143 : memref<1x256xf32, #tpu.memory_space<vmem>>)
    %c0_i32_192 = arith.constant 0 : i32
    %144 = tpu.memref_slice %arg2[%24, %c0_i32_192] : memref<1024x256xf32, #tpu.memory_space<any>> -> memref<1x256xf32, #tpu.memory_space<any>>
    %c24_i32_193 = arith.constant 24 : i32
    %c0_i32_194 = arith.constant 0 : i32
    %145 = tpu.memref_slice %arg5[%c24_i32_193, %c0_i32_194] : memref<32x256xf32, #tpu.memory_space<vmem>> -> memref<1x256xf32, #tpu.memory_space<vmem>>
    tpu.wait_dma2 semaphore(%arg6 : memref<!tpu.dma_semaphore, #tpu.memory_space<semaphore_mem>>) src(%144 : memref<1x256xf32, #tpu.memory_space<any>>) dst(%145 : memref<1x256xf32, #tpu.memory_space<vmem>>)
    %c0_i32_195 = arith.constant 0 : i32
    %146 = tpu.memref_slice %arg2[%25, %c0_i32_195] : memref<1024x256xf32, #tpu.memory_space<any>> -> memref<1x256xf32, #tpu.memory_space<any>>
    %c25_i32_196 = arith.constant 25 : i32
    %c0_i32_197 = arith.constant 0 : i32
    %147 = tpu.memref_slice %arg5[%c25_i32_196, %c0_i32_197] : memref<32x256xf32, #tpu.memory_space<vmem>> -> memref<1x256xf32, #tpu.memory_space<vmem>>
    tpu.wait_dma2 semaphore(%arg6 : memref<!tpu.dma_semaphore, #tpu.memory_space<semaphore_mem>>) src(%146 : memref<1x256xf32, #tpu.memory_space<any>>) dst(%147 : memref<1x256xf32, #tpu.memory_space<vmem>>)
    %c0_i32_198 = arith.constant 0 : i32
    %148 = tpu.memref_slice %arg2[%26, %c0_i32_198] : memref<1024x256xf32, #tpu.memory_space<any>> -> memref<1x256xf32, #tpu.memory_space<any>>
    %c26_i32_199 = arith.constant 26 : i32
    %c0_i32_200 = arith.constant 0 : i32
    %149 = tpu.memref_slice %arg5[%c26_i32_199, %c0_i32_200] : memref<32x256xf32, #tpu.memory_space<vmem>> -> memref<1x256xf32, #tpu.memory_space<vmem>>
    tpu.wait_dma2 semaphore(%arg6 : memref<!tpu.dma_semaphore, #tpu.memory_space<semaphore_mem>>) src(%148 : memref<1x256xf32, #tpu.memory_space<any>>) dst(%149 : memref<1x256xf32, #tpu.memory_space<vmem>>)
    %c0_i32_201 = arith.constant 0 : i32
    %150 = tpu.memref_slice %arg2[%27, %c0_i32_201] : memref<1024x256xf32, #tpu.memory_space<any>> -> memref<1x256xf32, #tpu.memory_space<any>>
    %c27_i32_202 = arith.constant 27 : i32
    %c0_i32_203 = arith.constant 0 : i32
    %151 = tpu.memref_slice %arg5[%c27_i32_202, %c0_i32_203] : memref<32x256xf32, #tpu.memory_space<vmem>> -> memref<1x256xf32, #tpu.memory_space<vmem>>
    tpu.wait_dma2 semaphore(%arg6 : memref<!tpu.dma_semaphore, #tpu.memory_space<semaphore_mem>>) src(%150 : memref<1x256xf32, #tpu.memory_space<any>>) dst(%151 : memref<1x256xf32, #tpu.memory_space<vmem>>)
    %c0_i32_204 = arith.constant 0 : i32
    %152 = tpu.memref_slice %arg2[%28, %c0_i32_204] : memref<1024x256xf32, #tpu.memory_space<any>> -> memref<1x256xf32, #tpu.memory_space<any>>
    %c28_i32_205 = arith.constant 28 : i32
    %c0_i32_206 = arith.constant 0 : i32
    %153 = tpu.memref_slice %arg5[%c28_i32_205, %c0_i32_206] : memref<32x256xf32, #tpu.memory_space<vmem>> -> memref<1x256xf32, #tpu.memory_space<vmem>>
    tpu.wait_dma2 semaphore(%arg6 : memref<!tpu.dma_semaphore, #tpu.memory_space<semaphore_mem>>) src(%152 : memref<1x256xf32, #tpu.memory_space<any>>) dst(%153 : memref<1x256xf32, #tpu.memory_space<vmem>>)
    %c0_i32_207 = arith.constant 0 : i32
    %154 = tpu.memref_slice %arg2[%29, %c0_i32_207] : memref<1024x256xf32, #tpu.memory_space<any>> -> memref<1x256xf32, #tpu.memory_space<any>>
    %c29_i32_208 = arith.constant 29 : i32
    %c0_i32_209 = arith.constant 0 : i32
    %155 = tpu.memref_slice %arg5[%c29_i32_208, %c0_i32_209] : memref<32x256xf32, #tpu.memory_space<vmem>> -> memref<1x256xf32, #tpu.memory_space<vmem>>
    tpu.wait_dma2 semaphore(%arg6 : memref<!tpu.dma_semaphore, #tpu.memory_space<semaphore_mem>>) src(%154 : memref<1x256xf32, #tpu.memory_space<any>>) dst(%155 : memref<1x256xf32, #tpu.memory_space<vmem>>)
    %c0_i32_210 = arith.constant 0 : i32
    %156 = tpu.memref_slice %arg2[%30, %c0_i32_210] : memref<1024x256xf32, #tpu.memory_space<any>> -> memref<1x256xf32, #tpu.memory_space<any>>
    %c30_i32_211 = arith.constant 30 : i32
    %c0_i32_212 = arith.constant 0 : i32
    %157 = tpu.memref_slice %arg5[%c30_i32_211, %c0_i32_212] : memref<32x256xf32, #tpu.memory_space<vmem>> -> memref<1x256xf32, #tpu.memory_space<vmem>>
    tpu.wait_dma2 semaphore(%arg6 : memref<!tpu.dma_semaphore, #tpu.memory_space<semaphore_mem>>) src(%156 : memref<1x256xf32, #tpu.memory_space<any>>) dst(%157 : memref<1x256xf32, #tpu.memory_space<vmem>>)
    %c0_i32_213 = arith.constant 0 : i32
    %158 = tpu.memref_slice %arg2[%31, %c0_i32_213] : memref<1024x256xf32, #tpu.memory_space<any>> -> memref<1x256xf32, #tpu.memory_space<any>>
    %c31_i32_214 = arith.constant 31 : i32
    %c0_i32_215 = arith.constant 0 : i32
    %159 = tpu.memref_slice %arg5[%c31_i32_214, %c0_i32_215] : memref<32x256xf32, #tpu.memory_space<vmem>> -> memref<1x256xf32, #tpu.memory_space<vmem>>
    tpu.wait_dma2 semaphore(%arg6 : memref<!tpu.dma_semaphore, #tpu.memory_space<semaphore_mem>>) src(%158 : memref<1x256xf32, #tpu.memory_space<any>>) dst(%159 : memref<1x256xf32, #tpu.memory_space<vmem>>)
    %c0_216 = arith.constant 0 : index
    %c0_217 = arith.constant 0 : index
    %160 = vector.load %arg5[%c0_216, %c0_217] : memref<32x256xf32, #tpu.memory_space<vmem>>, vector<8x256xf32>
    %c8 = arith.constant 8 : index
    %c0_218 = arith.constant 0 : index
    %161 = vector.load %arg5[%c8, %c0_218] : memref<32x256xf32, #tpu.memory_space<vmem>>, vector<8x256xf32>
    %162 = arith.addf %160, %161 : vector<8x256xf32>
    %c16 = arith.constant 16 : index
    %c0_219 = arith.constant 0 : index
    %163 = vector.load %arg5[%c16, %c0_219] : memref<32x256xf32, #tpu.memory_space<vmem>>, vector<8x256xf32>
    %164 = arith.addf %162, %163 : vector<8x256xf32>
    %c24 = arith.constant 24 : index
    %c0_220 = arith.constant 0 : index
    %165 = vector.load %arg5[%c24, %c0_220] : memref<32x256xf32, #tpu.memory_space<vmem>>, vector<8x256xf32>
    %166 = arith.addf %164, %165 : vector<8x256xf32>
    %cst = arith.constant 2.500000e-01 : f32
    %167 = vector.broadcast %cst : f32 to vector<8x256xf32>
    %168 = arith.mulf %166, %167 : vector<8x256xf32>
    %c0_221 = arith.constant 0 : index
    %c0_222 = arith.constant 0 : index
    %169 = vector.load %arg3[%c0_221, %c0_222] : memref<1024x256xf32, #tpu.memory_space<vmem>>, vector<1024x256xf32>
    %cst_223 = arith.constant dense<0.000000e+00> : vector<8x1024xf32>
    %170 = tpu.matmul %168, %169, %cst_223 {dimension_numbers = #tpu.dot_dimension_numbers<[1], [1], [0], [0], [0, 0, 1, 0], [], []>} : vector<8x256xf32>, vector<1024x256xf32>, vector<8x1024xf32> -> vector<8x1024xf32>
    %c0_224 = arith.constant 0 : index
    %c0_225 = arith.constant 0 : index
    %171 = vector.load %arg4[%c0_224, %c0_225] : memref<8x1024xf32, #tpu.memory_space<vmem>>, vector<8x1024xf32>
    tpu.vector_store %arg4[%c0_224, %c0_225], %170 {strides = array<i32>} : memref<8x1024xf32, #tpu.memory_space<vmem>>, vector<8x1024xf32>,
    return
  }
  func.func @transform_1(%arg0: i32, %arg1: memref<8x4xi32, #tpu.memory_space<smem>>) -> (i32, i32) {
    %c0_i32 = arith.constant 0 : i32
    %c0_i32_0 = arith.constant 0 : i32
    return %arg0, %c0_i32 : i32, i32
  }
  func.func @transform_2(%arg0: i32, %arg1: memref<8x4xi32, #tpu.memory_space<smem>>) -> (i32, i32) {
    %c0_i32 = arith.constant 0 : i32
    %c0_i32_0 = arith.constant 0 : i32
    return %c0_i32, %arg0 : i32, i32
  }
}

</mosaic_0001>

<bundles_post_ra>
// kernel: tpu_custom_call.1
= control target key start
LH: loop header
LB: loop body
LE: loop exit
PB: predicated region body
PF: predicated region fallthrough
CT: control target
= control target key end

     0   :  { %s3128_s0 = inlined_call_operand.vmem [shape: s32[8,4], index: 0, kind: input, shape index: {}]   ;;  %s3129_s1 = inlined_call_operand.hbm [shape: f32[1024,256], index: 1, kind: input, shape index: {}]   ;;  %s3130_s2 = inlined_call_operand.hbm [shape: f32[1024,256], index: 2, kind: input, shape index: {}]   ;;  %s3131_s3 = inlined_call_operand.hbm [shape: f32[8,1024], index: 3, kind: output, shape index: {}]  }
   0x1   :  { %s8_s14 = sshll.u32 %s3128_s0, 4  ;;  %s9_s14 = int_to_ptr.vmem [resolvable:$true] %s8_s14 }
   0x2   :  { %s1615_s15 = scalar_lea.vmem %s9_s14, 128  ;;  %p1620_p1 = scmp.lt.s32.totalorder %s9_s14, %s9_s14 }
   0x3   :  { %p1616_p0 = scmp.ne.s32.totalorder %s9_s14, %s1615_s15  ;;  %p1621_p2 = scmp.lt.s32.totalorder %s1615_s15, %s1615_s15 }
   0x5   :  { %p1622_p3 = por %p1621_p2, %p1620_p1 }
   0x7   :  { %p1623_p4 = pnand %p1622_p3, %p1616_p0 }
   0x9   :  { %1626 = shalt.err (!%p1623_p4)  }
   0xa   :  { %s2447_s16 = smov [#allocation5]  }
   0xb   :  { %11 = dma.vmem_to_smem %s9_s14, 128, %s2447_s16, [#allocation4] }
   0xc   :  { %2439 = dma.done.wait [#allocation4], 128 }
   0xd   :  { %2440 = vsyncadd [#allocation4], 4294967168 }
   0xe   :  { %13 = sfence }
   0xf   :  { %14 = vsyncpa [#allocation7], 0 }
  0x10   :  { %15 = vsyncpa [#allocation8], 0  ;;  %s2448_s17 = smov [#allocation6]   ;;  %s1627_s20 = scalar_lea.hbm %s3130_s2, 32768 }
  0x11   :  { %s21_s18 = sshll.u32 %s2448_s17, 4  ;;  %p1628_p5 = scmp.ne.s32.totalorder %s3130_s2, %s1627_s20  ;;  %s22_s18 = int_to_ptr.vmem [resolvable:$true] %s21_s18 }
  0x12   :  { %p1631_p6 = scmp.lt.u32.totalorder %s1627_s20, %s3130_s2 }
  0x14   :  { %p1633_p7 = pnand %p1631_p6, %p1628_p5 }
  0x16   :  { %1636 = shalt.err (!%p1633_p7)
}
  0x17   :  { %s1637_s25 = scalar_lea.vmem %s22_s18, 32768  ;;  %p1642_p9 = scmp.lt.s32.totalorder %s22_s18, %s22_s18 }
  0x18   :  { %p1638_p8 = scmp.ne.s32.totalorder %s22_s18, %s1637_s25  ;;  %p1643_p10 = scmp.lt.s32.totalorder %s1637_s25, %s1637_s25 }
  0x1a   :  { %p1644_p11 = por %p1643_p10, %p1642_p9 }
  0x1c   :  { %p1645_p12 = pnand %p1644_p11, %p1638_p8 }
  0x1e   :  { %1648 = shalt.err (!%p1645_p12)
}
  0x1f   :  { %s2449_s26 = smov 256   ;;  %s2450_s27 = smov 16  }
  0x20   :  { %27 = dma.hbm_to_vmem [thread:$0]  %s3130_s2, 32768, %s22_s18, [#allocation7], %s2449_s26, %s2449_s26, %s2450_s27  }
  0x21   :  { %2441 = dma.done.wait [#allocation7], 32768  }
  0x22   :  { %2442 = vsyncadd [#allocation7], 4294934528  ;;  %s31_s30 = sld [smem:[#allocation5]]  ;;  %s2451_s4 = smov [#allocation2]  }
  0x23   :  { %s70_s5 = sshll.u32 %s2451_s4, 4  ;;  %s2523_s6 = sld [smem:[#allocation5 + $0x80]]  ;;  %s2521_s5 = int_to_ptr.vmem [resolvable:$true] %s70_s5 }
  0x24   :  { %s2452_s7 = smov [#allocation2 + $0x1]   ;;  %s2525_s9 = sld [smem:[#allocation5 + $0x100]] }
  0x25   :  { %s82_s8 = sshll.u32 %s2452_s7, 4  ;;  %s2453_s10 = smov [#allocation2 + $0x2]   ;;  %s2527_s8 = int_to_ptr.vmem [resolvable:$true] %s82_s8 }
  0x26   :  { %s94_s11 = sshll.u32 %s2453_s10, 4  ;;  %s2529_s2 = sld [smem:[#allocation5 + $0x180]]  ;;  %s2531_s11 = int_to_ptr.vmem [resolvable:$true] %s94_s11 }
  0x27   :  { %s2541_s25 = scalar_lea.hbm %s3129_s1, 32768 }
  0x28   :  { %s63_s12 = sshrl.u32 %s31_s30, 3  ;;  %s64_s13 = sand.u32 7, %s31_s30  }
  0x29   :  { %s1255_s14 = sshll.u32 %s63_s12, 4  ;;  %s74_s16 = sshrl.u32 %s2523_s6, 3 }
  0x2a   :  { %s66_s15 = sadd.s32 %s1255_s14, %s64_s13  ;;  %s75_s18 = sand.u32 7, %s2523_s6  }
  0x2b   :  { %s1256_s17 = sshll.u32 %s66_s15, 4  ;;  %s1257_s21 = sshll.u32 %s74_s16, 4 }
  0x2c   :  { %s68_s20 = scalar_lea.hbm %s3129_s1, %s1256_s17 }
  0x2d   :  { %s1649_s22 = scalar_lea.hbm %s68_s20, 32  ;;  %p1652_p0 = scmp.lt.u32.totalorder %s68_s20, %s3129_s1 }
  0x2e   :  { %p1650_p13 = scmp.ne.s32.totalorder %s68_s20, %s1649_s22  ;;  %p1653_p1 = scmp.lt.u32.totalorder %s2541_s25, %s1649_s22 }
  0x2f   :  { %p1655_p3 = scmp.lt.u32.totalorder %s1649_s22, %s68_s20 }
  0x30   :  { %p1654_p2 = por %p1653_p1, %p1652_p0 }
  0x32   :  { %p1656_p4 = por %p1655_p3, %p1654_p2 }
  0x34   :  { %p1657_p5 = pnand %p1656_p4, %p1650_p13 }
  0x36   :  { %1660 = shalt.err (!%p1657_p5)  }
  0x37   :  { %s1661_s28 = scalar_lea.vmem %s2521_s5, 32  ;;  %s2550_s29 = scalar_lea.vmem %s2521_s5, 1024 }
  0x38   :  { %p1662_p6 = scmp.ne.s32.totalorder %s2521_s5, %s1661_s28  ;;  %p1666_p7 = scmp.lt.s32.totalorder %s2521_s5, %s2521_s5 }
  0x39   :  { %p1667_p8 = scmp.lt.s32.totalorder %s2550_s29, %s1661_s28 }
  0x3b   :  { %p1668_p9 = por %p1667_p8, %p1666_p7 }
  0x3d   :  { %p1669_p10 = pnand %p1668_p9, %p1662_p6 }
  0x3f   :  { %1672 = shalt.err (!%p1669_p10)  }
  0x40   :  { %s2454_s30 = smov 128   ;;  %s2455_s4 = smov 1  }
  0x41   :  { %73 = dma.hbm_to_vmem [thread:$0]  %s68_s20, 32, %s2521_s5, [#allocation3], %s2454_s30, %s2454_s30, %s2455_s4 }
  0x42   :  { %s77_s6 = sadd.s32 %s1257_s21, %s75_s18  ;;  %s86_s7 = sshrl.u32 %s2525_s9, 3 }
  0x43   :  { %s1258_s10 = sshll.u32 %s77_s6, 4  ;;  %s87_s12 = sand.u32 7, %s2525_s9  }
  0x44   :  { %s79_s15 = scalar_lea.hbm %s3129_s1, %s1258_s10  ;;  %s1259_s16 = sshll.u32 %s86_s7, 4 }
  0x45   :  { %s1673_s17 = scalar_lea.hbm %s79_s15, 32  ;;  %p1676_p12 = scmp.lt.u32.totalorder %s79_s15, %s3129_s1 }
  0x46   :  { %p1674_p11 = scmp.ne.s32.totalorder %s79_s15, %s1673_s17  ;;  %p1677_p13 = scmp.lt.u32.totalorder %s2541_s25, %s1673_s17 }
  0x47   :  { %p1679_p1 = scmp.lt.u32.totalorder %s1673_s17, %s79_s15 }
  0x48   :  { %p1678_p0 = por %p1677_p13, %p1676_p12 }
  0x4a   :  { %p1680_p2 = por %p1679_p1, %p1678_p0 }
  0x4c   :  { %p1681_p3 = pnand %p1680_p2, %p1674_p11 }
  0x4e   :  { %1684 = shalt.err (!%p1681_p3)  }
  0x4f   :  { %s1685_s9 = scalar_lea.vmem %s2527_s8, 32  ;;  %p1690_p5 = scmp.lt.s32.totalorder %s2527_s8, %s2521_s5 }
  0x50   :  { %p1686_p4 = scmp.ne.s32.totalorder %s2527_s8, %s1685_s9  ;;  %p1691_p6 = scmp.lt.s32.totalorder %s2550_s29, %s1685_s9 }
  0x52   :  { %p1692_p7 = por %p1691_p6, %p1690_p5 }
  0x54   :  { %p1693_p8 = pnand %p1692_p7, %p1686_p4 }
  0x56   :  { %1696 = shalt.err (!%p1693_p8)  }
  0x57   :  { %85 = dma.hbm_to_vmem [thread:$0]  %s79_s15, 32, %s2527_s8, [#allocation3], %s2454_s30, %s2454_s30, %s2455_s4 }
  0x58   :  { %s89_s18 = sadd.s32 %s1259_s16, %s87_s12  ;;  %s98_s20 = sshrl.u32 %s2529_s2, 3 }
  0x59   :  { %s1260_s21 = sshll.u32 %s89_s18, 4  ;;  %s99_s22 = sand.u32 7, %s2529_s2  }
  0x5a   :  { %s91_s26 = scalar_lea.hbm %s3129_s1, %s1260_s21  ;;  %s1261_s27 = sshll.u32 %s98_s20, 4 }
  0x5b   :  { %s1697_s28 = scalar_lea.hbm %s91_s26, 32  ;;  %p1700_p10 = scmp.lt.u32.totalorder %s91_s26, %s3129_s1 }
  0x5c   :  { %p1698_p9 = scmp.ne.s32.totalorder %s91_s26, %s1697_s28  ;;  %p1701_p11 = scmp.lt.u32.totalorder %s2541_s25, %s1697_s28 }
  0x5d   :  { %p1703_p13 = scmp.lt.u32.totalorder %s1697_s28, %s91_s26 }
  0x5e   :  { %p1702_p12 = por %p1701_p11, %p1700_p10 }
  0x60   :  { %p1704_p0 = por %p1703_p13, %p1702_p12 }
  0x62   :  { %p1705_p1 = pnand %p1704_p0, %p1698_p9 }
  0x64   :  { %1708 = shalt.err (!%p1705_p1)  }
  0x65   :  { %s1709_s8 = scalar_lea.vmem %s2531_s11, 32  ;;  %p1714_p3 = scmp.lt.s32.totalorder %s2531_s11, %s2521_s5 }
  0x66   :  { %p1710_p2 = scmp.ne.s32.totalorder %s2531_s11, %s1709_s8  ;;  %p1715_p4 = scmp.lt.s32.totalorder %s2550_s29, %s1709_s8 }
  0x68   :  { %p1716_p5 = por %p1715_p4, %p1714_p3 }
  0x6a   :  { %p1717_p6 = pnand %p1716_p5, %p1710_p2 }
  0x6c   :  { %1720 = shalt.err (!%p1717_p6)  }
  0x6d   :  { %97 = dma.hbm_to_vmem [thread:$0]  %s91_s26, 32, %s2531_s11, [#allocation3], %s2454_s30, %s2454_s30, %s2455_s4 }
  0x6e   :  { %s101_s2 = sadd.s32 %s1261_s27, %s99_s22  ;;  %s2456_s12 = smov [#allocation2 + $0x3]  }
  0x6f   :  { %s1262_s10 = sshll.u32 %s101_s2, 4  ;;  %s106_s13 = sshll.u32 %s2456_s12, 4  ;;  %s107_s13 = int_to_ptr.vmem [resolvable:$true] %s106_s13 }
  0x70   :  { %s103_s16 = scalar_lea.hbm %s3129_s1, %s1262_s10 }
  0x71   :  { %s1721_s17 = scalar_lea.hbm %s103_s16, 32  ;;  %p1724_p8 = scmp.lt.u32.totalorder %s103_s16, %s3129_s1 }
  0x72   :  { %p1722_p7 = scmp.ne.s32.totalorder %s103_s16, %s1721_s17  ;;  %p1725_p9 = scmp.lt.u32.totalorder %s2541_s25, %s1721_s17 }
  0x73   :  { %p1727_p11 = scmp.lt.u32.totalorder %s1721_s17, %s103_s16 }
  0x74   :  { %p1726_p10 = por %p1725_p9, %p1724_p8 }
  0x76   :  { %p1728_p12 = por %p1727_p11, %p1726_p10 }
  0x78   :  { %p1729_p13 = pnand %p1728_p12, %p1722_p7 }
  0x7a   :  { %1732 = shalt.err (!%p1729_p13)  }
  0x7b   :  { %s1733_s11 = scalar_lea.vmem %s107_s13, 32  ;;  %p1738_p1 = scmp.lt.s32.totalorder %s107_s13, %s2521_s5 }
  0x7c   :  { %p1734_p0 = scmp.ne.s32.totalorder %s107_s13, %s1733_s11  ;;  %p1739_p2 = scmp.lt.s32.totalorder %s2550_s29, %s1733_s11 }
  0x7e   :  { %p1740_p3 = por %p1739_p2, %p1738_p1 }
  0x80   :  { %p1741_p4 = pnand %p1740_p3, %p1734_p0 }
  0x82   :  { %1744 = shalt.err (!%p1741_p4)  }
  0x83   :  { %109 = dma.hbm_to_vmem [thread:$0]  %s103_s16, 32, %s107_s13, [#allocation3], %s2454_s30, %s2454_s30, %s2455_s4 }
  0x84   :  { %s1227_s9 = sld [smem:[#allocation5 + $0x200]]  ;;  %s2457_s18 = smov [#allocation2 + $0x4]  }
  0x85   :  { %s118_s20 = sshll.u32 %s2457_s18, 4  ;;  %s1228_s21 = sld [smem:[#allocation5 + $0x280]]  ;;  %s2607_s20 = int_to_ptr.vmem [resolvable:$true] %s118_s20 }
  0x86   :  { %s2458_s22 = smov [#allocation2 + $0x5]   ;;  %s2609_s24 = sld [smem:[#allocation5 + $0x300]] }
  0x87   :  { %s130_s23 = sshll.u32 %s2458_s22, 4  ;;  %s2459_s26 = smov [#allocation2 + $0x6]   ;;  %s2611_s23 = int_to_ptr.vmem [resolvable:$true] %s130_s23 }
  0x88   :  { %s2613_s27 = sshll.u32 %s2459_s26, 4  ;;  %s2615_s28 = sld [smem:[#allocation5 + $0x380]]  ;;  %s143_s27 = int_to_ptr.vmem [resolvable:$true] %s2613_s27 }
  0x8a   :  { %s110_s6 = sshrl.u32 %s1227_s9, 3  ;;  %s111_s7 = sand.u32 7, %s1227_s9  }
  0x8b   :  { %s1263_s8 = sshll.u32 %s110_s6, 4  ;;  %s122_s2 = sshrl.u32 %s1228_s21, 3 }
  0x8c   :  { %s113_s10 = sadd.s32 %s1263_s8, %s111_s7  ;;  %s123_s12 = sand.u32 7, %s1228_s21  }
  0x8d   :  { %s1264_s13 = sshll.u32 %s113_s10, 4  ;;  %s1265_s14 = sshll.u32 %s122_s2, 4 }
  0x8e   :  { %s115_s17 = scalar_lea.hbm %s3129_s1, %s1264_s13  ;;  %s125_s19 = sadd.s32 %s1265_s14, %s123_s12 }
  0x8f   :  { %s1745_s0 = scalar_lea.hbm %s115_s17, 32  ;;  %p1748_p6 = scmp.lt.u32.totalorder %s115_s17, %s3129_s1 }
  0x90   :  { %p1746_p5 = scmp.ne.s32.totalorder %s115_s17, %s1745_s0  ;;  %p1749_p7 = scmp.lt.u32.totalorder %s2541_s25, %s1745_s0 }
  0x91   :  { %p1751_p9 = scmp.lt.u32.totalorder %s1745_s0, %s115_s17 }
  0x92   :  { %p1750_p8 = por %p1749_p7, %p1748_p6 }
  0x94   :  { %p1752_p10 = por %p1751_p9, %p1750_p8 }
  0x96   :  { %p1753_p11 = pnand %p1752_p10, %p1746_p5 }
  0x98   :  { %1756 = shalt.err (!%p1753_p11)  }
  0x99   :  { %s1757_s9 = scalar_lea.vmem %s2607_s20, 32  ;;  %p1762_p13 = scmp.lt.s32.totalorder %s2607_s20, %s2521_s5 }
  0x9a   :  { %p1758_p12 = scmp.ne.s32.totalorder %s2607_s20, %s1757_s9  ;;  %p1763_p0 = scmp.lt.s32.totalorder %s2550_s29, %s1757_s9 }
  0x9c   :  { %p1764_p1 = por %p1763_p0, %p1762_p13 }
  0x9e   :  { %p1765_p2 = pnand %p1764_p1, %p1758_p12 }
  0xa0   :  { %1768 = shalt.err (!%p1765_p2)  }
  0xa1   :  { %121 = dma.hbm_to_vmem [thread:$0]  %s115_s17, 32, %s2607_s20, [#allocation3], %s2454_s30, %s2454_s30, %s2455_s4 }
  0xa2   :  { %s1266_s21 = sshll.u32 %s125_s19, 4  ;;  %s134_s22 = sshrl.u32 %s2609_s24, 3 }
  0xa3   :  { %s127_s7 = scalar_lea.hbm %s3129_s1, %s1266_s21  ;;  %s135_s8 = sand.u32 7, %s2609_s24  }
  0xa4   :  { %s1769_s2 = scalar_lea.hbm %s127_s7, 32  ;;  %p1772_p4 = scmp.lt.u32.totalorder %s127_s7, %s3129_s1 }
  0xa5   :  { %p1770_p3 = scmp.ne.s32.totalorder %s127_s7, %s1769_s2  ;;  %p1773_p5 = scmp.lt.u32.totalorder %s2541_s25, %s1769_s2 }
  0xa6   :  { %p1775_p7 = scmp.lt.u32.totalorder %s1769_s2, %s127_s7 }
  0xa7   :  { %p1774_p6 = por %p1773_p5, %p1772_p4 }
  0xa9   :  { %p1776_p8 = por %p1775_p7, %p1774_p6 }
  0xab   :  { %p1777_p9 = pnand %p1776_p8, %p1770_p3 }
  0xad   :  { %1780 = shalt.err (!%p1777_p9)  }
  0xae   :  { %s1781_s20 = scalar_lea.vmem %s2611_s23, 32  ;;  %p1786_p11 = scmp.lt.s32.totalorder %s2611_s23, %s2521_s5 }
  0xaf   :  { %p1782_p10 = scmp.ne.s32.totalorder %s2611_s23, %s1781_s20  ;;  %p1787_p12 = scmp.lt.s32.totalorder %s2550_s29, %s1781_s20 }
  0xb1   :  { %p1788_p13 = por %p1787_p12, %p1786_p11 }
  0xb3   :  { %p1789_p0 = pnand %p1788_p13, %p1782_p10 }
  0xb5   :  { %1792 = shalt.err (!%p1789_p0)  }
  0xb6   :  { %133 = dma.hbm_to_vmem [thread:$0]  %s127_s7, 32, %s2611_s23, [#allocation3], %s2454_s30, %s2454_s30, %s2455_s4 }
  0xb7   :  { %s1267_s24 = sshll.u32 %s134_s22, 4  ;;  %s146_s14 = sshrl.u32 %s2615_s28, 3 }
  0xb8   :  { %s137_s13 = sadd.s32 %s1267_s24, %s135_s8  ;;  %s147_s16 = sand.u32 7, %s2615_s28  }
  0xb9   :  { %s1268_s15 = sshll.u32 %s137_s13, 4  ;;  %s1269_s11 = sshll.u32 %s146_s14, 4 }
  0xba   :  { %s139_s0 = scalar_lea.hbm %s3129_s1, %s1268_s15 }
  0xbb   :  { %s1793_s18 = scalar_lea.hbm %s139_s0, 32  ;;  %p1796_p2 = scmp.lt.u32.totalorder %s139_s0, %s3129_s1 }
  0xbc   :  { %p1794_p1 = scmp.ne.s32.totalorder %s139_s0, %s1793_s18  ;;  %p1797_p3 = scmp.lt.u32.totalorder %s2541_s25, %s1793_s18 }
  0xbd   :  { %p1799_p5 = scmp.lt.u32.totalorder %s1793_s18, %s139_s0 }
  0xbe   :  { %p1798_p4 = por %p1797_p3, %p1796_p2 }
  0xc0   :  { %p1800_p6 = por %p1799_p5, %p1798_p4 }
  0xc2   :  { %p1801_p7 = pnand %p1800_p6, %p1794_p1 }
  0xc4   :  { %1804 = shalt.err (!%p1801_p7)  }
  0xc5   :  { %s1805_s23 = scalar_lea.vmem %s143_s27, 32  ;;  %p1810_p9 = scmp.lt.s32.totalorder %s143_s27, %s2521_s5 }
  0xc6   :  { %p1806_p8 = scmp.ne.s32.totalorder %s143_s27, %s1805_s23  ;;  %p1811_p10 = scmp.lt.s32.totalorder %s2550_s29, %s1805_s23 }
  0xc8   :  { %p1812_p11 = por %p1811_p10, %p1810_p9 }
  0xca   :  { %p1813_p12 = pnand %p1812_p11, %p1806_p8 }
  0xcc   :  { %1816 = shalt.err (!%p1813_p12)  }
  0xcd   :  { %145 = dma.hbm_to_vmem [thread:$0]  %s139_s0, 32, %s143_s27, [#allocation3], %s2454_s30, %s2454_s30, %s2455_s4 }
  0xce   :  { %s149_s28 = sadd.s32 %s1269_s11, %s147_s16  ;;  %s2460_s26 = smov [#allocation2 + $0x7]  }
  0xcf   :  { %s1270_s22 = sshll.u32 %s149_s28, 4  ;;  %s154_s6 = sshll.u32 %s2460_s26, 4  ;;  %s155_s6 = int_to_ptr.vmem [resolvable:$true] %s154_s6 }
  0xd0   :  { %s151_s2 = scalar_lea.hbm %s3129_s1, %s1270_s22 }
  0xd1   :  { %s1817_s10 = scalar_lea.hbm %s151_s2, 32  ;;  %p1820_p0 = scmp.lt.u32.totalorder %s151_s2, %s3129_s1 }
  0xd2   :  { %p1818_p13 = scmp.ne.s32.totalorder %s151_s2, %s1817_s10  ;;  %p1821_p1 = scmp.lt.u32.totalorder %s2541_s25, %s1817_s10 }
  0xd3   :  { %p1823_p3 = scmp.lt.u32.totalorder %s1817_s10, %s151_s2 }
  0xd4   :  { %p1822_p2 = por %p1821_p1, %p1820_p0 }
  0xd6   :  { %p1824_p4 = por %p1823_p3, %p1822_p2 }
  0xd8   :  { %p1825_p5 = pnand %p1824_p4, %p1818_p13 }
  0xda   :  { %1828 = shalt.err (!%p1825_p5)  }
  0xdb   :  { %s1829_s27 = scalar_lea.vmem %s155_s6, 32  ;;  %p1834_p7 = scmp.lt.s32.totalorder %s155_s6, %s2521_s5 }
  0xdc   :  { %p1830_p6 = scmp.ne.s32.totalorder %s155_s6, %s1829_s27  ;;  %p1835_p8 = scmp.lt.s32.totalorder %s2550_s29, %s1829_s27 }
  0xde   :  { %p1836_p9 = por %p1835_p8, %p1834_p7 }
  0xe0   :  { %p1837_p10 = pnand %p1836_p9, %p1830_p6 }
  0xe2   :  { %1840 = shalt.err (!%p1837_p10)  }
  0xe3   :  { %157 = dma.hbm_to_vmem [thread:$0]  %s151_s2, 32, %s155_s6, [#allocation3], %s2454_s30, %s2454_s30, %s2455_s4 }
  0xe4   :  { %s1231_s24 = sld [smem:[#allocation5 + $0x1]]  ;;  %s2461_s13 = smov [#allocation2 + $0x10]  }
  0xe5   :  { %s166_s14 = sshll.u32 %s2461_s13, 4  ;;  %s1232_s15 = sld [smem:[#allocation5 + $0x81]]  ;;  %s2678_s14 = int_to_ptr.vmem [resolvable:$true] %s166_s14 }
  0xe6   :  { %s2462_s16 = smov [#allocation2 + $0x11]   ;;  %s2680_s19 = sld [smem:[#allocation5 + $0x101]] }
  0xe7   :  { %s178_s17 = sshll.u32 %s2462_s16, 4  ;;  %s2463_s0 = smov [#allocation2 + $0x12]   ;;  %s2682_s17 = int_to_ptr.vmem [resolvable:$true] %s178_s17 }
  0xe8   :  { %s2684_s11 = sshll.u32 %s2463_s0, 4  ;;  %s2686_s18 = sld [smem:[#allocation5 + $0x181]]  ;;  %s191_s11 = int_to_ptr.vmem [resolvable:$true] %s2684_s11 }
  0xea   :  { %s158_s9 = sshrl.u32 %s1231_s24, 3  ;;  %s159_s21 = sand.u32 7, %s1231_s24  }
  0xeb   :  { %s1271_s23 = sshll.u32 %s158_s9, 4  ;;  %s170_s28 = sshrl.u32 %s1232_s15, 3 }
  0xec   :  { %s161_s22 = sadd.s32 %s1271_s23, %s159_s21  ;;  %s171_s26 = sand.u32 7, %s1232_s15  }
  0xed   :  { %s1272_s6 = sshll.u32 %s161_s22, 4  ;;  %s1273_s7 = sshll.u32 %s170_s28, 4 }
  0xee   :  { %s163_s10 = scalar_lea.hbm %s3129_s1, %s1272_s6  ;;  %s173_s12 = sadd.s32 %s1273_s7, %s171_s26 }
  0xef   :  { %s1841_s20 = scalar_lea.hbm %s163_s10, 32  ;;  %p1844_p12 = scmp.lt.u32.totalorder %s163_s10, %s3129_s1 }
  0xf0   :  { %p1842_p11 = scmp.ne.s32.totalorder %s163_s10, %s1841_s20  ;;  %p1845_p13 = scmp.lt.u32.totalorder %s2541_s25, %s1841_s20 }
  0xf1   :  { %p1847_p1 = scmp.lt.u32.totalorder %s1841_s20, %s163_s10 }
  0xf2   :  { %p1846_p0 = por %p1845_p13, %p1844_p12 }
  0xf4   :  { %p1848_p2 = por %p1847_p1, %p1846_p0 }
  0xf6   :  { %p1849_p3 = pnand %p1848_p2, %p1842_p11 }
  0xf8   :  { %1852 = shalt.err (!%p1849_p3)  }
  0xf9   :  { %s1853_s24 = scalar_lea.vmem %s2678_s14, 32  ;;  %p1858_p5 = scmp.lt.s32.totalorder %s2678_s14, %s2521_s5 }
  0xfa   :  { %p1854_p4 = scmp.ne.s32.totalorder %s2678_s14, %s1853_s24  ;;  %p1859_p6 = scmp.lt.s32.totalorder %s2550_s29, %s1853_s24 }
  0xfc   :  { %p1860_p7 = por %p1859_p6, %p1858_p5 }
  0xfe   :  { %p1861_p8 = pnand %p1860_p7, %p1854_p4 }
 0x100   :  { %1864 = shalt.err (!%p1861_p8)  }
 0x101   :  { %169 = dma.hbm_to_vmem [thread:$0]  %s163_s10, 32, %s2678_s14, [#allocation3], %s2454_s30, %s2454_s30, %s2455_s4 }
 0x102   :  { %s1274_s15 = sshll.u32 %s173_s12, 4  ;;  %s182_s16 = sshrl.u32 %s2680_s19, 3 }
 0x103   :  { %s175_s21 = scalar_lea.hbm %s3129_s1, %s1274_s15  ;;  %s183_s23 = sand.u32 7, %s2680_s19  }
 0x104   :  { %s1865_s28 = scalar_lea.hbm %s175_s21, 32  ;;  %p1868_p10 = scmp.lt.u32.totalorder %s175_s21, %s3129_s1 }
 0x105   :  { %p1866_p9 = scmp.ne.s32.totalorder %s175_s21, %s1865_s28  ;;  %p1869_p11 = scmp.lt.u32.totalorder %s2541_s25, %s1865_s28 }
 0x106   :  { %p1871_p13 = scmp.lt.u32.totalorder %s1865_s28, %s175_s21 }
 0x107   :  { %p1870_p12 = por %p1869_p11, %p1868_p10 }
 0x109   :  { %p1872_p0 = por %p1871_p13, %p1870_p12 }
 0x10b   :  { %p1873_p1 = pnand %p1872_p0, %p1866_p9 }
 0x10d   :  { %1876 = shalt.err (!%p1873_p1)  }
 0x10e   :  { %s1877_s14 = scalar_lea.vmem %s2682_s17, 32  ;;  %p1882_p3 = scmp.lt.s32.totalorder %s2682_s17, %s2521_s5 }
 0x10f   :  { %p1878_p2 = scmp.ne.s32.totalorder %s2682_s17, %s1877_s14  ;;  %p1883_p4 = scmp.lt.s32.totalorder %s2550_s29, %s1877_s14 }
 0x111   :  { %p1884_p5 = por %p1883_p4, %p1882_p3 }
 0x113   :  { %p1885_p6 = pnand %p1884_p5, %p1878_p2 }
 0x115   :  { %1888 = shalt.err (!%p1885_p6)  }
 0x116   :  { %181 = dma.hbm_to_vmem [thread:$0]  %s175_s21, 32, %s2682_s17, [#allocation3], %s2454_s30, %s2454_s30, %s2455_s4 }
 0x117   :  { %s1275_s19 = sshll.u32 %s182_s16, 4  ;;  %s194_s7 = sshrl.u32 %s2686_s18, 3 }
 0x118   :  { %s185_s6 = sadd.s32 %s1275_s19, %s183_s23  ;;  %s195_s2 = sand.u32 7, %s2686_s18  }
 0x119   :  { %s1276_s8 = sshll.u32 %s185_s6, 4  ;;  %s1277_s27 = sshll.u32 %s194_s7, 4 }
 0x11a   :  { %s187_s20 = scalar_lea.hbm %s3129_s1, %s1276_s8 }
 0x11b   :  { %s1889_s13 = scalar_lea.hbm %s187_s20, 32  ;;  %p1892_p8 = scmp.lt.u32.totalorder %s187_s20, %s3129_s1 }
 0x11c   :  { %p1890_p7 = scmp.ne.s32.totalorder %s187_s20, %s1889_s13  ;;  %p1893_p9 = scmp.lt.u32.totalorder %s2541_s25, %s1889_s13 }
 0x11d   :  { %p1895_p11 = scmp.lt.u32.totalorder %s1889_s13, %s187_s20 }
 0x11e   :  { %p1894_p10 = por %p1893_p9, %p1892_p8 }
 0x120   :  { %p1896_p12 = por %p1895_p11, %p1894_p10 }
 0x122   :  { %p1897_p13 = pnand %p1896_p12, %p1890_p7 }
 0x124   :  { %1900 = shalt.err (!%p1897_p13)  }
 0x125   :  { %s1901_s17 = scalar_lea.vmem %s191_s11, 32  ;;  %p1906_p1 = scmp.lt.s32.totalorder %s191_s11, %s2521_s5 }
 0x126   :  { %p1902_p0 = scmp.ne.s32.totalorder %s191_s11, %s1901_s17  ;;  %p1907_p2 = scmp.lt.s32.totalorder %s2550_s29, %s1901_s17 }
 0x128   :  { %p1908_p3 = por %p1907_p2, %p1906_p1 }
 0x12a   :  { %p1909_p4 = pnand %p1908_p3, %p1902_p0 }
 0x12c   :  { %1912 = shalt.err (!%p1909_p4)  }
 0x12d   :  { %193 = dma.hbm_to_vmem [thread:$0]  %s187_s20, 32, %s191_s11, [#allocation3], %s2454_s30, %s2454_s30, %s2455_s4 }
 0x12e   :  { %s197_s18 = sadd.s32 %s1277_s27, %s195_s2  ;;  %s2464_s0 = smov [#allocation2 + $0x13]  }
 0x12f   :  { %s1278_s16 = sshll.u32 %s197_s18, 4  ;;  %s202_s9 = sshll.u32 %s2464_s0, 4  ;;  %s203_s9 = int_to_ptr.vmem [resolvable:$true] %s202_s9 }
 0x130   :  { %s199_s28 = scalar_lea.hbm %s3129_s1, %s1278_s16 }
 0x131   :  { %s1913_s22 = scalar_lea.hbm %s199_s28, 32  ;;  %p1916_p6 = scmp.lt.u32.totalorder %s199_s28, %s3129_s1 }
 0x132   :  { %p1914_p5 = scmp.ne.s32.totalorder %s199_s28, %s1913_s22  ;;  %p1917_p7 = scmp.lt.u32.totalorder %s2541_s25, %s1913_s22 }
 0x133   :  { %p1919_p9 = scmp.lt.u32.totalorder %s1913_s22, %s199_s28 }
 0x134   :  { %p1918_p8 = por %p1917_p7, %p1916_p6 }
 0x136   :  { %p1920_p10 = por %p1919_p9, %p1918_p8 }
 0x138   :  { %p1921_p11 = pnand %p1920_p10, %p1914_p5 }
 0x13a   :  { %1924 = shalt.err (!%p1921_p11)  }
 0x13b   :  { %s1925_s11 = scalar_lea.vmem %s203_s9, 32  ;;  %p1930_p13 = scmp.lt.s32.totalorder %s203_s9, %s2521_s5 }
 0x13c   :  { %p1926_p12 = scmp.ne.s32.totalorder %s203_s9, %s1925_s11  ;;  %p1931_p0 = scmp.lt.s32.totalorder %s2550_s29, %s1925_s11 }
 0x13e   :  { %p1932_p1 = por %p1931_p0, %p1930_p13 }
 0x140   :  { %p1933_p2 = pnand %p1932_p1, %p1926_p12 }
 0x142   :  { %1936 = shalt.err (!%p1933_p2)  }
 0x143   :  { %205 = dma.hbm_to_vmem [thread:$0]  %s199_s28, 32, %s203_s9, [#allocation3], %s2454_s30, %s2454_s30, %s2455_s4 }
 0x144   :  { %s1235_s19 = sld [smem:[#allocation5 + $0x201]]  ;;  %s2465_s6 = smov [#allocation2 + $0x14]  }
 0x145   :  { %s214_s7 = sshll.u32 %s2465_s6, 4  ;;  %s1236_s8 = sld [smem:[#allocation5 + $0x281]]  ;;  %s2749_s7 = int_to_ptr.vmem [resolvable:$true] %s214_s7 }
 0x146   :  { %s2466_s2 = smov [#allocation2 + $0x15]   ;;  %s2751_s12 = sld [smem:[#allocation5 + $0x301]] }
 0x147   :  { %s226_s10 = sshll.u32 %s2466_s2, 4  ;;  %s2467_s20 = smov [#allocation2 + $0x16]   ;;  %s2753_s10 = int_to_ptr.vmem [resolvable:$true] %s226_s10 }
 0x148   :  { %s2755_s27 = sshll.u32 %s2467_s20, 4  ;;  %s2757_s13 = sld [smem:[#allocation5 + $0x381]]  ;;  %s239_s27 = int_to_ptr.vmem [resolvable:$true] %s2755_s27 }
 0x14a   :  { %s206_s24 = sshrl.u32 %s1235_s19, 3  ;;  %s207_s15 = sand.u32 7, %s1235_s19  }
 0x14b   :  { %s1279_s17 = sshll.u32 %s206_s24, 4  ;;  %s218_s18 = sshrl.u32 %s1236_s8, 3 }
 0x14c   :  { %s209_s16 = sadd.s32 %s1279_s17, %s207_s15  ;;  %s219_s0 = sand.u32 7, %s1236_s8  }
 0x14d   :  { %s1280_s9 = sshll.u32 %s209_s16, 4  ;;  %s1281_s21 = sshll.u32 %s218_s18, 4 }
 0x14e   :  { %s211_s22 = scalar_lea.hbm %s3129_s1, %s1280_s9  ;;  %s221_s26 = sadd.s32 %s1281_s21, %s219_s0 }
 0x14f   :  { %s1937_s14 = scalar_lea.hbm %s211_s22, 32  ;;  %p1940_p4 = scmp.lt.u32.totalorder %s211_s22, %s3129_s1 }
 0x150   :  { %p1938_p3 = scmp.ne.s32.totalorder %s211_s22, %s1937_s14  ;;  %p1941_p5 = scmp.lt.u32.totalorder %s2541_s25, %s1937_s14 }
 0x151   :  { %p1943_p7 = scmp.lt.u32.totalorder %s1937_s14, %s211_s22 }
 0x152   :  { %p1942_p6 = por %p1941_p5, %p1940_p4 }
 0x154   :  { %p1944_p8 = por %p1943_p7, %p1942_p6 }
 0x156   :  { %p1945_p9 = pnand %p1944_p8, %p1938_p3 }
 0x158   :  { %1948 = shalt.err (!%p1945_p9)  }
 0x159   :  { %s1949_s19 = scalar_lea.vmem %s2749_s7, 32  ;;  %p1954_p11 = scmp.lt.s32.totalorder %s2749_s7, %s2521_s5 }
 0x15a   :  { %p1950_p10 = scmp.ne.s32.totalorder %s2749_s7, %s1949_s19  ;;  %p1955_p12 = scmp.lt.s32.totalorder %s2550_s29, %s1949_s19 }
 0x15c   :  { %p1956_p13 = por %p1955_p12, %p1954_p11 }
 0x15e   :  { %p1957_p0 = pnand %p1956_p13, %p1950_p10 }
 0x160   :  { %1960 = shalt.err (!%p1957_p0)  }
 0x161   :  { %217 = dma.hbm_to_vmem [thread:$0]  %s211_s22, 32, %s2749_s7, [#allocation3], %s2454_s30, %s2454_s30, %s2455_s4 }
 0x162   :  { %s1282_s8 = sshll.u32 %s221_s26, 4  ;;  %s230_s2 = sshrl.u32 %s2751_s12, 3 }
 0x163   :  { %s223_s15 = scalar_lea.hbm %s3129_s1, %s1282_s8  ;;  %s231_s17 = sand.u32 7, %s2751_s12  }
 0x164   :  { %s1961_s18 = scalar_lea.hbm %s223_s15, 32  ;;  %p1964_p2 = scmp.lt.u32.totalorder %s223_s15, %s3129_s1 }
 0x165   :  { %p1962_p1 = scmp.ne.s32.totalorder %s223_s15, %s1961_s18  ;;  %p1965_p3 = scmp.lt.u32.totalorder %s2541_s25, %s1961_s18 }
 0x166   :  { %p1967_p5 = scmp.lt.u32.totalorder %s1961_s18, %s223_s15 }
 0x167   :  { %p1966_p4 = por %p1965_p3, %p1964_p2 }
 0x169   :  { %p1968_p6 = por %p1967_p5, %p1966_p4 }
 0x16b   :  { %p1969_p7 = pnand %p1968_p6, %p1962_p1 }
 0x16d   :  { %1972 = shalt.err (!%p1969_p7)  }
 0x16e   :  { %s1973_s7 = scalar_lea.vmem %s2753_s10, 32  ;;  %p1978_p9 = scmp.lt.s32.totalorder %s2753_s10, %s2521_s5 }
 0x16f   :  { %p1974_p8 = scmp.ne.s32.totalorder %s2753_s10, %s1973_s7  ;;  %p1979_p10 = scmp.lt.s32.totalorder %s2550_s29, %s1973_s7 }
 0x171   :  { %p1980_p11 = por %p1979_p10, %p1978_p9 }
 0x173   :  { %p1981_p12 = pnand %p1980_p11, %p1974_p8 }
 0x175   :  { %1984 = shalt.err (!%p1981_p12)  }
 0x176   :  { %229 = dma.hbm_to_vmem [thread:$0]  %s223_s15, 32, %s2753_s10, [#allocation3], %s2454_s30, %s2454_s30, %s2455_s4 }
 0x177   :  { %s1283_s12 = sshll.u32 %s230_s2, 4  ;;  %s242_s21 = sshrl.u32 %s2757_s13, 3 }
 0x178   :  { %s233_s9 = sadd.s32 %s1283_s12, %s231_s17  ;;  %s243_s28 = sand.u32 7, %s2757_s13  }
 0x179   :  { %s1284_s23 = sshll.u32 %s233_s9, 4  ;;  %s1285_s11 = sshll.u32 %s242_s21, 4 }
 0x17a   :  { %s235_s14 = scalar_lea.hbm %s3129_s1, %s1284_s23 }
 0x17b   :  { %s1985_s6 = scalar_lea.hbm %s235_s14, 32  ;;  %p1988_p0 = scmp.lt.u32.totalorder %s235_s14, %s3129_s1 }
 0x17c   :  { %p1986_p13 = scmp.ne.s32.totalorder %s235_s14, %s1985_s6  ;;  %p1989_p1 = scmp.lt.u32.totalorder %s2541_s25, %s1985_s6 }
 0x17d   :  { %p1991_p3 = scmp.lt.u32.totalorder %s1985_s6, %s235_s14 }
 0x17e   :  { %p1990_p2 = por %p1989_p1, %p1988_p0 }
 0x180   :  { %p1992_p4 = por %p1991_p3, %p1990_p2 }
 0x182   :  { %p1993_p5 = pnand %p1992_p4, %p1986_p13 }
 0x184   :  { %1996 = shalt.err (!%p1993_p5)  }
 0x185   :  { %s1997_s10 = scalar_lea.vmem %s239_s27, 32  ;;  %p2002_p7 = scmp.lt.s32.totalorder %s239_s27, %s2521_s5 }
 0x186   :  { %p1998_p6 = scmp.ne.s32.totalorder %s239_s27, %s1997_s10  ;;  %p2003_p8 = scmp.lt.s32.totalorder %s2550_s29, %s1997_s10 }
 0x188   :  { %p2004_p9 = por %p2003_p8, %p2002_p7 }
 0x18a   :  { %p2005_p10 = pnand %p2004_p9, %p1998_p6 }
 0x18c   :  { %2008 = shalt.err (!%p2005_p10)  }
 0x18d   :  { %241 = dma.hbm_to_vmem [thread:$0]  %s235_s14, 32, %s239_s27, [#allocation3], %s2454_s30, %s2454_s30, %s2455_s4 }
 0x18e   :  { %s245_s13 = sadd.s32 %s1285_s11, %s243_s28  ;;  %s2468_s20 = smov [#allocation2 + $0x17]  }
 0x18f   :  { %s1286_s2 = sshll.u32 %s245_s13, 4  ;;  %s250_s24 = sshll.u32 %s2468_s20, 4  ;;  %s251_s24 = int_to_ptr.vmem [resolvable:$true] %s250_s24 }
 0x190   :  { %s247_s18 = scalar_lea.hbm %s3129_s1, %s1286_s2 }
 0x191   :  { %s2009_s16 = scalar_lea.hbm %s247_s18, 32  ;;  %p2012_p12 = scmp.lt.u32.totalorder %s247_s18, %s3129_s1 }
 0x192   :  { %p2010_p11 = scmp.ne.s32.totalorder %s247_s18, %s2009_s16  ;;  %p2013_p13 = scmp.lt.u32.totalorder %s2541_s25, %s2009_s16 }
 0x193   :  { %p2015_p1 = scmp.lt.u32.totalorder %s2009_s16, %s247_s18 }
 0x194   :  { %p2014_p0 = por %p2013_p13, %p2012_p12 }
 0x196   :  { %p2016_p2 = por %p2015_p1, %p2014_p0 }
 0x198   :  { %p2017_p3 = pnand %p2016_p2, %p2010_p11 }
 0x19a   :  { %2020 = shalt.err (!%p2017_p3)  }
 0x19b   :  { %s2021_s27 = scalar_lea.vmem %s251_s24, 32  ;;  %p2026_p5 = scmp.lt.s32.totalorder %s251_s24, %s2521_s5 }
 0x19c   :  { %p2022_p4 = scmp.ne.s32.totalorder %s251_s24, %s2021_s27  ;;  %p2027_p6 = scmp.lt.s32.totalorder %s2550_s29, %s2021_s27 }
 0x19e   :  { %p2028_p7 = por %p2027_p6, %p2026_p5 }
 0x1a0   :  { %p2029_p8 = pnand %p2028_p7, %p2022_p4 }
 0x1a2   :  { %2032 = shalt.err (!%p2029_p8)  }
 0x1a3   :  { %253 = dma.hbm_to_vmem [thread:$0]  %s247_s18, 32, %s251_s24, [#allocation3], %s2454_s30, %s2454_s30, %s2455_s4 }
 0x1a4   :  { %s1239_s12 = sld [smem:[#allocation5 + $0x2]]  ;;  %s2469_s9 = smov [#allocation2 + $0x20]  }
 0x1a5   :  { %s262_s21 = sshll.u32 %s2469_s9, 4  ;;  %s1240_s23 = sld [smem:[#allocation5 + $0x82]]  ;;  %s2820_s21 = int_to_ptr.vmem [resolvable:$true] %s262_s21 }
 0x1a6   :  { %s2470_s28 = smov [#allocation2 + $0x21]   ;;  %s2822_s26 = sld [smem:[#allocation5 + $0x102]] }
 0x1a7   :  { %s274_s22 = sshll.u32 %s2470_s28, 4  ;;  %s2471_s14 = smov [#allocation2 + $0x22]   ;;  %s2824_s22 = int_to_ptr.vmem [resolvable:$true] %s274_s22 }
 0x1a8   :  { %s2826_s11 = sshll.u32 %s2471_s14, 4  ;;  %s2828_s6 = sld [smem:[#allocation5 + $0x182]]  ;;  %s287_s11 = int_to_ptr.vmem [resolvable:$true] %s2826_s11 }
 0x1aa   :  { %s254_s19 = sshrl.u32 %s1239_s12, 3  ;;  %s255_s8 = sand.u32 7, %s1239_s12  }
 0x1ab   :  { %s1287_s10 = sshll.u32 %s254_s19, 4  ;;  %s266_s13 = sshrl.u32 %s1240_s23, 3 }
 0x1ac   :  { %s257_s2 = sadd.s32 %s1287_s10, %s255_s8  ;;  %s267_s20 = sand.u32 7, %s1240_s23  }
 0x1ad   :  { %s1288_s24 = sshll.u32 %s257_s2, 4  ;;  %s1289_s15 = sshll.u32 %s266_s13, 4 }
 0x1ae   :  { %s259_s16 = scalar_lea.hbm %s3129_s1, %s1288_s24  ;;  %s269_s0 = sadd.s32 %s1289_s15, %s267_s20 }
 0x1af   :  { %s2033_s7 = scalar_lea.hbm %s259_s16, 32  ;;  %p2036_p10 = scmp.lt.u32.totalorder %s259_s16, %s3129_s1 }
 0x1b0   :  { %p2034_p9 = scmp.ne.s32.totalorder %s259_s16, %s2033_s7  ;;  %p2037_p11 = scmp.lt.u32.totalorder %s2541_s25, %s2033_s7 }
 0x1b1   :  { %p2039_p13 = scmp.lt.u32.totalorder %s2033_s7, %s259_s16 }
 0x1b2   :  { %p2038_p12 = por %p2037_p11, %p2036_p10 }
 0x1b4   :  { %p2040_p0 = por %p2039_p13, %p2038_p12 }
 0x1b6   :  { %p2041_p1 = pnand %p2040_p0, %p2034_p9 }
 0x1b8   :  { %2044 = shalt.err (!%p2041_p1)  }
 0x1b9   :  { %s2045_s12 = scalar_lea.vmem %s2820_s21, 32  ;;  %p2050_p3 = scmp.lt.s32.totalorder %s2820_s21, %s2521_s5 }
 0x1ba   :  { %p2046_p2 = scmp.ne.s32.totalorder %s2820_s21, %s2045_s12  ;;  %p2051_p4 = scmp.lt.s32.totalorder %s2550_s29, %s2045_s12 }
 0x1bc   :  { %p2052_p5 = por %p2051_p4, %p2050_p3 }
 0x1be   :  { %p2053_p6 = pnand %p2052_p5, %p2046_p2 }
 0x1c0   :  { %2056 = shalt.err (!%p2053_p6)  }
 0x1c1   :  { %265 = dma.hbm_to_vmem [thread:$0]  %s259_s16, 32, %s2820_s21, [#allocation3], %s2454_s30, %s2454_s30, %s2455_s4 }
 0x1c2   :  { %s1290_s23 = sshll.u32 %s269_s0, 4  ;;  %s278_s28 = sshrl.u32 %s2822_s26, 3 }
 0x1c3   :  { %s271_s8 = scalar_lea.hbm %s3129_s1, %s1290_s23  ;;  %s279_s10 = sand.u32 7, %s2822_s26  }
 0x1c4   :  { %s2057_s13 = scalar_lea.hbm %s271_s8, 32  ;;  %p2060_p8 = scmp.lt.u32.totalorder %s271_s8, %s3129_s1 }
 0x1c5   :  { %p2058_p7 = scmp.ne.s32.totalorder %s271_s8, %s2057_s13  ;;  %p2061_p9 = scmp.lt.u32.totalorder %s2541_s25, %s2057_s13 }
 0x1c6   :  { %p2063_p11 = scmp.lt.u32.totalorder %s2057_s13, %s271_s8 }
 0x1c7   :  { %p2062_p10 = por %p2061_p9, %p2060_p8 }
 0x1c9   :  { %p2064_p12 = por %p2063_p11, %p2062_p10 }
 0x1cb   :  { %p2065_p13 = pnand %p2064_p12, %p2058_p7 }
 0x1cd   :  { %2068 = shalt.err (!%p2065_p13)  }
 0x1ce   :  { %s2069_s21 = scalar_lea.vmem %s2824_s22, 32  ;;  %p2074_p1 = scmp.lt.s32.totalorder %s2824_s22, %s2521_s5 }
 0x1cf   :  { %p2070_p0 = scmp.ne.s32.totalorder %s2824_s22, %s2069_s21  ;;  %p2075_p2 = scmp.lt.s32.totalorder %s2550_s29, %s2069_s21 }
 0x1d1   :  { %p2076_p3 = por %p2075_p2, %p2074_p1 }
 0x1d3   :  { %p2077_p4 = pnand %p2076_p3, %p2070_p0 }
 0x1d5   :  { %2080 = shalt.err (!%p2077_p4)  }
 0x1d6   :  { %277 = dma.hbm_to_vmem [thread:$0]  %s271_s8, 32, %s2824_s22, [#allocation3], %s2454_s30, %s2454_s30, %s2455_s4 }
 0x1d7   :  { %s1291_s26 = sshll.u32 %s278_s28, 4  ;;  %s290_s15 = sshrl.u32 %s2828_s6, 3 }
 0x1d8   :  { %s281_s24 = sadd.s32 %s1291_s26, %s279_s10  ;;  %s291_s18 = sand.u32 7, %s2828_s6  }
 0x1d9   :  { %s1292_s17 = sshll.u32 %s281_s24, 4  ;;  %s1293_s27 = sshll.u32 %s290_s15, 4 }
 0x1da   :  { %s283_s7 = scalar_lea.hbm %s3129_s1, %s1292_s17 }
 0x1db   :  { %s2081_s9 = scalar_lea.hbm %s283_s7, 32  ;;  %p2084_p6 = scmp.lt.u32.totalorder %s283_s7, %s3129_s1 }
 0x1dc   :  { %p2082_p5 = scmp.ne.s32.totalorder %s283_s7, %s2081_s9  ;;  %p2085_p7 = scmp.lt.u32.totalorder %s2541_s25, %s2081_s9 }
 0x1dd   :  { %p2087_p9 = scmp.lt.u32.totalorder %s2081_s9, %s283_s7 }
 0x1de   :  { %p2086_p8 = por %p2085_p7, %p2084_p6 }
 0x1e0   :  { %p2088_p10 = por %p2087_p9, %p2086_p8 }
 0x1e2   :  { %p2089_p11 = pnand %p2088_p10, %p2082_p5 }
 0x1e4   :  { %2092 = shalt.err (!%p2089_p11)  }
 0x1e5   :  { %s2093_s22 = scalar_lea.vmem %s287_s11, 32  ;;  %p2098_p13 = scmp.lt.s32.totalorder %s287_s11, %s2521_s5 }
 0x1e6   :  { %p2094_p12 = scmp.ne.s32.totalorder %s287_s11, %s2093_s22  ;;  %p2099_p0 = scmp.lt.s32.totalorder %s2550_s29, %s2093_s22 }
 0x1e8   :  { %p2100_p1 = por %p2099_p0, %p2098_p13 }
 0x1ea   :  { %p2101_p2 = pnand %p2100_p1, %p2094_p12 }
 0x1ec   :  { %2104 = shalt.err (!%p2101_p2)  }
 0x1ed   :  { %289 = dma.hbm_to_vmem [thread:$0]  %s283_s7, 32, %s287_s11, [#allocation3], %s2454_s30, %s2454_s30, %s2455_s4 }
 0x1ee   :  { %s293_s6 = sadd.s32 %s1293_s27, %s291_s18  ;;  %s2472_s14 = smov [#allocation2 + $0x23]  }
 0x1ef   :  { %s1294_s28 = sshll.u32 %s293_s6, 4  ;;  %s298_s19 = sshll.u32 %s2472_s14, 4  ;;  %s299_s19 = int_to_ptr.vmem [resolvable:$true] %s298_s19 }
 0x1f0   :  { %s295_s13 = scalar_lea.hbm %s3129_s1, %s1294_s28 }
 0x1f1   :  { %s2105_s2 = scalar_lea.hbm %s295_s13, 32  ;;  %p2108_p4 = scmp.lt.u32.totalorder %s295_s13, %s3129_s1 }
 0x1f2   :  { %p2106_p3 = scmp.ne.s32.totalorder %s295_s13, %s2105_s2  ;;  %p2109_p5 = scmp.lt.u32.totalorder %s2541_s25, %s2105_s2 }
 0x1f3   :  { %p2111_p7 = scmp.lt.u32.totalorder %s2105_s2, %s295_s13 }
 0x1f4   :  { %p2110_p6 = por %p2109_p5, %p2108_p4 }
 0x1f6   :  { %p2112_p8 = por %p2111_p7, %p2110_p6 }
 0x1f8   :  { %p2113_p9 = pnand %p2112_p8, %p2106_p3 }
 0x1fa   :  { %2116 = shalt.err (!%p2113_p9)  }
 0x1fb   :  { %s2117_s11 = scalar_lea.vmem %s299_s19, 32  ;;  %p2122_p11 = scmp.lt.s32.totalorder %s299_s19, %s2521_s5 }
 0x1fc   :  { %p2118_p10 = scmp.ne.s32.totalorder %s299_s19, %s2117_s11  ;;  %p2123_p12 = scmp.lt.s32.totalorder %s2550_s29, %s2117_s11 }
 0x1fe   :  { %p2124_p13 = por %p2123_p12, %p2122_p11 }
 0x200   :  { %p2125_p0 = pnand %p2124_p13, %p2118_p10 }
 0x202   :  { %2128 = shalt.err (!%p2125_p0)  }
 0x203   :  { %301 = dma.hbm_to_vmem [thread:$0]  %s295_s13, 32, %s299_s19, [#allocation3], %s2454_s30, %s2454_s30, %s2455_s4 }
 0x204   :  { %s1243_s26 = sld [smem:[#allocation5 + $0x202]]  ;;  %s2473_s24 = smov [#allocation2 + $0x24]  }
 0x205   :  { %s310_s15 = sshll.u32 %s2473_s24, 4  ;;  %s1244_s17 = sld [smem:[#allocation5 + $0x282]]  ;;  %s2891_s15 = int_to_ptr.vmem [resolvable:$true] %s310_s15 }
 0x206   :  { %s2474_s18 = smov [#allocation2 + $0x25]   ;;  %s2893_s0 = sld [smem:[#allocation5 + $0x302]] }
 0x207   :  { %s322_s16 = sshll.u32 %s2474_s18, 4  ;;  %s2475_s7 = smov [#allocation2 + $0x26]   ;;  %s2895_s16 = int_to_ptr.vmem [resolvable:$true] %s322_s16 }
 0x208   :  { %s2897_s27 = sshll.u32 %s2475_s7, 4  ;;  %s2899_s9 = sld [smem:[#allocation5 + $0x382]]  ;;  %s335_s27 = int_to_ptr.vmem [resolvable:$true] %s2897_s27 }
 0x20a   :  { %s302_s12 = sshrl.u32 %s1243_s26, 3  ;;  %s303_s23 = sand.u32 7, %s1243_s26  }
 0x20b   :  { %s1295_s22 = sshll.u32 %s302_s12, 4  ;;  %s314_s6 = sshrl.u32 %s1244_s17, 3 }
 0x20c   :  { %s305_s28 = sadd.s32 %s1295_s22, %s303_s23  ;;  %s315_s14 = sand.u32 7, %s1244_s17  }
 0x20d   :  { %s1296_s19 = sshll.u32 %s305_s28, 4  ;;  %s1297_s8 = sshll.u32 %s314_s6, 4 }
 0x20e   :  { %s307_s2 = scalar_lea.hbm %s3129_s1, %s1296_s19  ;;  %s317_s20 = sadd.s32 %s1297_s8, %s315_s14 }
 0x20f   :  { %s2129_s21 = scalar_lea.hbm %s307_s2, 32  ;;  %p2132_p2 = scmp.lt.u32.totalorder %s307_s2, %s3129_s1 }
 0x210   :  { %p2130_p1 = scmp.ne.s32.totalorder %s307_s2, %s2129_s21  ;;  %p2133_p3 = scmp.lt.u32.totalorder %s2541_s25, %s2129_s21 }
 0x211   :  { %p2135_p5 = scmp.lt.u32.totalorder %s2129_s21, %s307_s2 }
 0x212   :  { %p2134_p4 = por %p2133_p3, %p2132_p2 }
 0x214   :  { %p2136_p6 = por %p2135_p5, %p2134_p4 }
 0x216   :  { %p2137_p7 = pnand %p2136_p6, %p2130_p1 }
 0x218   :  { %2140 = shalt.err (!%p2137_p7)  }
 0x219   :  { %s2141_s26 = scalar_lea.vmem %s2891_s15, 32  ;;  %p2146_p9 = scmp.lt.s32.totalorder %s2891_s15, %s2521_s5 }
 0x21a   :  { %p2142_p8 = scmp.ne.s32.totalorder %s2891_s15, %s2141_s26  ;;  %p2147_p10 = scmp.lt.s32.totalorder %s2550_s29, %s2141_s26 }
 0x21c   :  { %p2148_p11 = por %p2147_p10, %p2146_p9 }
 0x21e   :  { %p2149_p12 = pnand %p2148_p11, %p2142_p8 }
 0x220   :  { %2152 = shalt.err (!%p2149_p12)  }
 0x221   :  { %313 = dma.hbm_to_vmem [thread:$0]  %s307_s2, 32, %s2891_s15, [#allocation3], %s2454_s30, %s2454_s30, %s2455_s4 }
 0x222   :  { %s1298_s17 = sshll.u32 %s317_s20, 4  ;;  %s326_s18 = sshrl.u32 %s2893_s0, 3 }
 0x223   :  { %s319_s23 = scalar_lea.hbm %s3129_s1, %s1298_s17  ;;  %s327_s22 = sand.u32 7, %s2893_s0  }
 0x224   :  { %s2153_s6 = scalar_lea.hbm %s319_s23, 32  ;;  %p2156_p0 = scmp.lt.u32.totalorder %s319_s23, %s3129_s1 }
 0x225   :  { %p2154_p13 = scmp.ne.s32.totalorder %s319_s23, %s2153_s6  ;;  %p2157_p1 = scmp.lt.u32.totalorder %s2541_s25, %s2153_s6 }
 0x226   :  { %p2159_p3 = scmp.lt.u32.totalorder %s2153_s6, %s319_s23 }
 0x227   :  { %p2158_p2 = por %p2157_p1, %p2156_p0 }
 0x229   :  { %p2160_p4 = por %p2159_p3, %p2158_p2 }
 0x22b   :  { %p2161_p5 = pnand %p2160_p4, %p2154_p13 }
 0x22d   :  { %2164 = shalt.err (!%p2161_p5)  }
 0x22e   :  { %s2165_s15 = scalar_lea.vmem %s2895_s16, 32  ;;  %p2170_p7 = scmp.lt.s32.totalorder %s2895_s16, %s2521_s5 }
 0x22f   :  { %p2166_p6 = scmp.ne.s32.totalorder %s2895_s16, %s2165_s15  ;;  %p2171_p8 = scmp.lt.s32.totalorder %s2550_s29, %s2165_s15 }
 0x231   :  { %p2172_p9 = por %p2171_p8, %p2170_p7 }
 0x233   :  { %p2173_p10 = pnand %p2172_p9, %p2166_p6 }
 0x235   :  { %2176 = shalt.err (!%p2173_p10)  }
 0x236   :  { %325 = dma.hbm_to_vmem [thread:$0]  %s319_s23, 32, %s2895_s16, [#allocation3], %s2454_s30, %s2454_s30, %s2455_s4 }
 0x237   :  { %s1299_s0 = sshll.u32 %s326_s18, 4  ;;  %s338_s8 = sshrl.u32 %s2899_s9, 3 }
 0x238   :  { %s329_s19 = sadd.s32 %s1299_s0, %s327_s22  ;;  %s339_s13 = sand.u32 7, %s2899_s9  }
 0x239   :  { %s1300_s10 = sshll.u32 %s329_s19, 4  ;;  %s1301_s11 = sshll.u32 %s338_s8, 4 }
 0x23a   :  { %s331_s21 = scalar_lea.hbm %s3129_s1, %s1300_s10 }
 0x23b   :  { %s2177_s24 = scalar_lea.hbm %s331_s21, 32  ;;  %p2180_p12 = scmp.lt.u32.totalorder %s331_s21, %s3129_s1 }
 0x23c   :  { %p2178_p11 = scmp.ne.s32.totalorder %s331_s21, %s2177_s24  ;;  %p2181_p13 = scmp.lt.u32.totalorder %s2541_s25, %s2177_s24 }
 0x23d   :  { %p2183_p1 = scmp.lt.u32.totalorder %s2177_s24, %s331_s21 }
 0x23e   :  { %p2182_p0 = por %p2181_p13, %p2180_p12 }
 0x240   :  { %p2184_p2 = por %p2183_p1, %p2182_p0 }
 0x242   :  { %p2185_p3 = pnand %p2184_p2, %p2178_p11 }
 0x244   :  { %2188 = shalt.err (!%p2185_p3)  }
 0x245   :  { %s2189_s16 = scalar_lea.vmem %s335_s27, 32  ;;  %p2194_p5 = scmp.lt.s32.totalorder %s335_s27, %s2521_s5 }
 0x246   :  { %p2190_p4 = scmp.ne.s32.totalorder %s335_s27, %s2189_s16  ;;  %p2195_p6 = scmp.lt.s32.totalorder %s2550_s29, %s2189_s16 }
 0x248   :  { %p2196_p7 = por %p2195_p6, %p2194_p5 }
 0x24a   :  { %p2197_p8 = pnand %p2196_p7, %p2190_p4 }
 0x24c   :  { %2200 = shalt.err (!%p2197_p8)  }
 0x24d   :  { %337 = dma.hbm_to_vmem [thread:$0]  %s331_s21, 32, %s335_s27, [#allocation3], %s2454_s30, %s2454_s30, %s2455_s4 }
 0x24e   :  { %s341_s9 = sadd.s32 %s1301_s11, %s339_s13  ;;  %s2476_s7 = smov [#allocation2 + $0x27]  }
 0x24f   :  { %s1302_s18 = sshll.u32 %s341_s9, 4  ;;  %s346_s12 = sshll.u32 %s2476_s7, 4  ;;  %s347_s12 = int_to_ptr.vmem [resolvable:$true] %s346_s12 }
 0x250   :  { %s343_s6 = scalar_lea.hbm %s3129_s1, %s1302_s18 }
 0x251   :  { %s2201_s28 = scalar_lea.hbm %s343_s6, 32  ;;  %p2204_p10 = scmp.lt.u32.totalorder %s343_s6, %s3129_s1 }
 0x252   :  { %p2202_p9 = scmp.ne.s32.totalorder %s343_s6, %s2201_s28  ;;  %p2205_p11 = scmp.lt.u32.totalorder %s2541_s25, %s2201_s28 }
 0x253   :  { %p2207_p13 = scmp.lt.u32.totalorder %s2201_s28, %s343_s6 }
 0x254   :  { %p2206_p12 = por %p2205_p11, %p2204_p10 }
 0x256   :  { %p2208_p0 = por %p2207_p13, %p2206_p12 }
 0x258   :  { %p2209_p1 = pnand %p2208_p0, %p2202_p9 }
 0x25a   :  { %2212 = shalt.err (!%p2209_p1)  }
 0x25b   :  { %s2213_s27 = scalar_lea.vmem %s347_s12, 32  ;;  %p2218_p3 = scmp.lt.s32.totalorder %s347_s12, %s2521_s5 }
 0x25c   :  { %p2214_p2 = scmp.ne.s32.totalorder %s347_s12, %s2213_s27  ;;  %p2219_p4 = scmp.lt.s32.totalorder %s2550_s29, %s2213_s27 }
 0x25e   :  { %p2220_p5 = por %p2219_p4, %p2218_p3 }
 0x260   :  { %p2221_p6 = pnand %p2220_p5, %p2214_p2 }
 0x262   :  { %2224 = shalt.err (!%p2221_p6)  }
 0x263   :  { %349 = dma.hbm_to_vmem [thread:$0]  %s343_s6, 32, %s347_s12, [#allocation3], %s2454_s30, %s2454_s30, %s2455_s4 }
 0x264   :  { %s1247_s0 = sld [smem:[#allocation5 + $0x3]]  ;;  %s2477_s19 = smov [#allocation2 + $0x30]  }
 0x265   :  { %s358_s8 = sshll.u32 %s2477_s19, 4  ;;  %s1248_s10 = sld [smem:[#allocation5 + $0x83]]  ;;  %s2962_s8 = int_to_ptr.vmem [resolvable:$true] %s358_s8 }
 0x266   :  { %s2478_s13 = smov [#allocation2 + $0x31]   ;;  %s2964_s20 = sld [smem:[#allocation5 + $0x103]] }
 0x267   :  { %s370_s2 = sshll.u32 %s2478_s13, 4  ;;  %s2479_s21 = smov [#allocation2 + $0x32]   ;;  %s2966_s2 = int_to_ptr.vmem [resolvable:$true] %s370_s2 }
 0x268   :  { %s2968_s11 = sshll.u32 %s2479_s21, 4  ;;  %s2970_s24 = sld [smem:[#allocation5 + $0x183]]  ;;  %s383_s11 = int_to_ptr.vmem [resolvable:$true] %s2968_s11 }
 0x26a   :  { %s350_s26 = sshrl.u32 %s1247_s0, 3  ;;  %s351_s17 = sand.u32 7, %s1247_s0  }
 0x26b   :  { %s1303_s16 = sshll.u32 %s350_s26, 4  ;;  %s362_s9 = sshrl.u32 %s1248_s10, 3 }
 0x26c   :  { %s353_s18 = sadd.s32 %s1303_s16, %s351_s17  ;;  %s363_s7 = sand.u32 7, %s1248_s10  }
 0x26d   :  { %s1304_s12 = sshll.u32 %s353_s18, 4  ;;  %s1305_s23 = sshll.u32 %s362_s9, 4 }
 0x26e   :  { %s355_s28 = scalar_lea.hbm %s3129_s1, %s1304_s12  ;;  %s365_s14 = sadd.s32 %s1305_s23, %s363_s7 }
 0x26f   :  { %s2225_s15 = scalar_lea.hbm %s355_s28, 32  ;;  %p2228_p8 = scmp.lt.u32.totalorder %s355_s28, %s3129_s1 }
 0x270   :  { %p2226_p7 = scmp.ne.s32.totalorder %s355_s28, %s2225_s15  ;;  %p2229_p9 = scmp.lt.u32.totalorder %s2541_s25, %s2225_s15 }
 0x271   :  { %p2231_p11 = scmp.lt.u32.totalorder %s2225_s15, %s355_s28 }
 0x272   :  { %p2230_p10 = por %p2229_p9, %p2228_p8 }
 0x274   :  { %p2232_p12 = por %p2231_p11, %p2230_p10 }
 0x276   :  { %p2233_p13 = pnand %p2232_p12, %p2226_p7 }
 0x278   :  { %2236 = shalt.err (!%p2233_p13)  }
 0x279   :  { %s2237_s0 = scalar_lea.vmem %s2962_s8, 32  ;;  %p2242_p1 = scmp.lt.s32.totalorder %s2962_s8, %s2521_s5 }
 0x27a   :  { %p2238_p0 = scmp.ne.s32.totalorder %s2962_s8, %s2237_s0  ;;  %p2243_p2 = scmp.lt.s32.totalorder %s2550_s29, %s2237_s0 }
 0x27c   :  { %p2244_p3 = por %p2243_p2, %p2242_p1 }
 0x27e   :  { %p2245_p4 = pnand %p2244_p3, %p2238_p0 }
 0x280   :  { %2248 = shalt.err (!%p2245_p4)  }
 0x281   :  { %361 = dma.hbm_to_vmem [thread:$0]  %s355_s28, 32, %s2962_s8, [#allocation3], %s2454_s30, %s2454_s30, %s2455_s4 }
 0x282   :  { %s1306_s10 = sshll.u32 %s365_s14, 4  ;;  %s374_s13 = sshrl.u32 %s2964_s20, 3 }
 0x283   :  { %s367_s17 = scalar_lea.hbm %s3129_s1, %s1306_s10  ;;  %s375_s16 = sand.u32 7, %s2964_s20  }
 0x284   :  { %s2249_s9 = scalar_lea.hbm %s367_s17, 32  ;;  %p2252_p6 = scmp.lt.u32.totalorder %s367_s17, %s3129_s1 }
 0x285   :  { %p2250_p5 = scmp.ne.s32.totalorder %s367_s17, %s2249_s9  ;;  %p2253_p7 = scmp.lt.u32.totalorder %s2541_s25, %s2249_s9 }
 0x286   :  { %p2255_p9 = scmp.lt.u32.totalorder %s2249_s9, %s367_s17 }
 0x287   :  { %p2254_p8 = por %p2253_p7, %p2252_p6 }
 0x289   :  { %p2256_p10 = por %p2255_p9, %p2254_p8 }
 0x28b   :  { %p2257_p11 = pnand %p2256_p10, %p2250_p5 }
 0x28d   :  { %2260 = shalt.err (!%p2257_p11)  }
 0x28e   :  { %s2261_s8 = scalar_lea.vmem %s2966_s2, 32  ;;  %p2266_p13 = scmp.lt.s32.totalorder %s2966_s2, %s2521_s5 }
 0x28f   :  { %p2262_p12 = scmp.ne.s32.totalorder %s2966_s2, %s2261_s8  ;;  %p2267_p0 = scmp.lt.s32.totalorder %s2550_s29, %s2261_s8 }
 0x291   :  { %p2268_p1 = por %p2267_p0, %p2266_p13 }
 0x293   :  { %p2269_p2 = pnand %p2268_p1, %p2262_p12 }
 0x295   :  { %2272 = shalt.err (!%p2269_p2)  }
 0x296   :  { %373 = dma.hbm_to_vmem [thread:$0]  %s367_s17, 32, %s2966_s2, [#allocation3], %s2454_s30, %s2454_s30, %s2455_s4 }
 0x297   :  { %s1307_s20 = sshll.u32 %s374_s13, 4  ;;  %s386_s23 = sshrl.u32 %s2970_s24, 3 }
 0x298   :  { %s377_s12 = sadd.s32 %s1307_s20, %s375_s16  ;;  %s387_s6 = sand.u32 7, %s2970_s24  }
 0x299   :  { %s1308_s22 = sshll.u32 %s377_s12, 4  ;;  %s1309_s27 = sshll.u32 %s386_s23, 4 }
 0x29a   :  { %s379_s15 = scalar_lea.hbm %s3129_s1, %s1308_s22 }
 0x29b   :  { %s2273_s19 = scalar_lea.hbm %s379_s15, 32  ;;  %p2276_p4 = scmp.lt.u32.totalorder %s379_s15, %s3129_s1 }
 0x29c   :  { %p2274_p3 = scmp.ne.s32.totalorder %s379_s15, %s2273_s19  ;;  %p2277_p5 = scmp.lt.u32.totalorder %s2541_s25, %s2273_s19 }
 0x29d   :  { %p2279_p7 = scmp.lt.u32.totalorder %s2273_s19, %s379_s15 }
 0x29e   :  { %p2278_p6 = por %p2277_p5, %p2276_p4 }
 0x2a0   :  { %p2280_p8 = por %p2279_p7, %p2278_p6 }
 0x2a2   :  { %p2281_p9 = pnand %p2280_p8, %p2274_p3 }
 0x2a4   :  { %2284 = shalt.err (!%p2281_p9)  }
 0x2a5   :  { %s2285_s2 = scalar_lea.vmem %s383_s11, 32  ;;  %p2290_p11 = scmp.lt.s32.totalorder %s383_s11, %s2521_s5 }
 0x2a6   :  { %p2286_p10 = scmp.ne.s32.totalorder %s383_s11, %s2285_s2  ;;  %p2291_p12 = scmp.lt.s32.totalorder %s2550_s29, %s2285_s2 }
 0x2a8   :  { %p2292_p13 = por %p2291_p12, %p2290_p11 }
 0x2aa   :  { %p2293_p0 = pnand %p2292_p13, %p2286_p10 }
 0x2ac   :  { %2296 = shalt.err (!%p2293_p0)  }
 0x2ad   :  { %385 = dma.hbm_to_vmem [thread:$0]  %s379_s15, 32, %s383_s11, [#allocation3], %s2454_s30, %s2454_s30, %s2455_s4 }
 0x2ae   :  { %s389_s24 = sadd.s32 %s1309_s27, %s387_s6  ;;  %s2480_s21 = smov [#allocation2 + $0x33]  }
 0x2af   :  { %s1310_s13 = sshll.u32 %s389_s24, 4  ;;  %s394_s26 = sshll.u32 %s2480_s21, 4  ;;  %s395_s26 = int_to_ptr.vmem [resolvable:$true] %s394_s26 }
 0x2b0   :  { %s391_s9 = scalar_lea.hbm %s3129_s1, %s1310_s13 }
 0x2b1   :  { %s2297_s18 = scalar_lea.hbm %s391_s9, 32  ;;  %p2300_p2 = scmp.lt.u32.totalorder %s391_s9, %s3129_s1 }
 0x2b2   :  { %p2298_p1 = scmp.ne.s32.totalorder %s391_s9, %s2297_s18  ;;  %p2301_p3 = scmp.lt.u32.totalorder %s2541_s25, %s2297_s18 }
 0x2b3   :  { %p2303_p5 = scmp.lt.u32.totalorder %s2297_s18, %s391_s9 }
 0x2b4   :  { %p2302_p4 = por %p2301_p3, %p2300_p2 }
 0x2b6   :  { %p2304_p6 = por %p2303_p5, %p2302_p4 }
 0x2b8   :  { %p2305_p7 = pnand %p2304_p6, %p2298_p1 }
 0x2ba   :  { %2308 = shalt.err (!%p2305_p7)  }
 0x2bb   :  { %s2309_s11 = scalar_lea.vmem %s395_s26, 32  ;;  %p2314_p9 = scmp.lt.s32.totalorder %s395_s26, %s2521_s5 }
 0x2bc   :  { %p2310_p8 = scmp.ne.s32.totalorder %s395_s26, %s2309_s11  ;;  %p2315_p10 = scmp.lt.s32.totalorder %s2550_s29, %s2309_s11 }
 0x2be   :  { %p2316_p11 = por %p2315_p10, %p2314_p9 }
 0x2c0   :  { %p2317_p12 = pnand %p2316_p11, %p2310_p8 }
 0x2c2   :  { %2320 = shalt.err (!%p2317_p12)  }
 0x2c3   :  { %397 = dma.hbm_to_vmem [thread:$0]  %s391_s9, 32, %s395_s26, [#allocation3], %s2454_s30, %s2454_s30, %s2455_s4 }
 0x2c4   :  { %s1251_s20 = sld [smem:[#allocation5 + $0x203]]  ;;  %s2481_s12 = smov [#allocation2 + $0x34]  }
 0x2c5   :  { %s406_s23 = sshll.u32 %s2481_s12, 4  ;;  %s1252_s22 = sld [smem:[#allocation5 + $0x283]]  ;;  %s3033_s23 = int_to_ptr.vmem [resolvable:$true] %s406_s23 }
 0x2c6   :  { %s2482_s6 = smov [#allocation2 + $0x35]   ;;  %s3035_s14 = sld [smem:[#allocation5 + $0x303]] }
 0x2c7   :  { %s418_s28 = sshll.u32 %s2482_s6, 4  ;;  %s2483_s15 = smov [#allocation2 + $0x36]   ;;  %s3037_s28 = int_to_ptr.vmem [resolvable:$true] %s418_s28 }
 0x2c8   :  { %s3039_s27 = sshll.u32 %s2483_s15, 4  ;;  %s3041_s19 = sld [smem:[#allocation5 + $0x383]]  ;;  %s431_s27 = int_to_ptr.vmem [resolvable:$true] %s3039_s27 }
 0x2ca   :  { %s398_s0 = sshrl.u32 %s1251_s20, 3  ;;  %s399_s10 = sand.u32 7, %s1251_s20  }
 0x2cb   :  { %s1311_s2 = sshll.u32 %s398_s0, 4  ;;  %s410_s24 = sshrl.u32 %s1252_s22, 3 }
 0x2cc   :  { %s401_s13 = sadd.s32 %s1311_s2, %s399_s10  ;;  %s411_s21 = sand.u32 7, %s1252_s22  }
 0x2cd   :  { %s1312_s26 = sshll.u32 %s401_s13, 4  ;;  %s1313_s17 = sshll.u32 %s410_s24, 4 }
 0x2ce   :  { %s403_s18 = scalar_lea.hbm %s3129_s1, %s1312_s26  ;;  %s413_s7 = sadd.s32 %s1313_s17, %s411_s21 }
 0x2cf   :  { %s2321_s8 = scalar_lea.hbm %s403_s18, 32  ;;  %p2324_p0 = scmp.lt.u32.totalorder %s403_s18, %s3129_s1 }
 0x2d0   :  { %p2322_p13 = scmp.ne.s32.totalorder %s403_s18, %s2321_s8  ;;  %p2325_p1 = scmp.lt.u32.totalorder %s2541_s25, %s2321_s8 }
 0x2d1   :  { %p2327_p3 = scmp.lt.u32.totalorder %s2321_s8, %s403_s18 }
 0x2d2   :  { %p2326_p2 = por %p2325_p1, %p2324_p0 }
 0x2d4   :  { %p2328_p4 = por %p2327_p3, %p2326_p2 }
 0x2d6   :  { %p2329_p5 = pnand %p2328_p4, %p2322_p13 }
 0x2d8   :  { %2332 = shalt.err (!%p2329_p5)  }
 0x2d9   :  { %s2333_s20 = scalar_lea.vmem %s3033_s23, 32  ;;  %p2338_p7 = scmp.lt.s32.totalorder %s3033_s23, %s2521_s5 }
 0x2da   :  { %p2334_p6 = scmp.ne.s32.totalorder %s3033_s23, %s2333_s20  ;;  %p2339_p8 = scmp.lt.s32.totalorder %s2550_s29, %s2333_s20 }
 0x2dc   :  { %p2340_p9 = por %p2339_p8, %p2338_p7 }
 0x2de   :  { %p2341_p10 = pnand %p2340_p9, %p2334_p6 }
 0x2e0   :  { %2344 = shalt.err (!%p2341_p10)  }
 0x2e1   :  { %409 = dma.hbm_to_vmem [thread:$0]  %s403_s18, 32, %s3033_s23, [#allocation3], %s2454_s30, %s2454_s30, %s2455_s4 }
 0x2e2   :  { %s1314_s22 = sshll.u32 %s413_s7, 4  ;;  %s422_s6 = sshrl.u32 %s3035_s14, 3 }
 0x2e3   :  { %s415_s10 = scalar_lea.hbm %s3129_s1, %s1314_s22  ;;  %s423_s2 = sand.u32 7, %s3035_s14  }
 0x2e4   :  { %s2345_s24 = scalar_lea.hbm %s415_s10, 32  ;;  %p2348_p12 = scmp.lt.u32.totalorder %s415_s10, %s3129_s1 }
 0x2e5   :  { %p2346_p11 = scmp.ne.s32.totalorder %s415_s10, %s2345_s24  ;;  %p2349_p13 = scmp.lt.u32.totalorder %s2541_s25, %s2345_s24 }
 0x2e6   :  { %p2351_p1 = scmp.lt.u32.totalorder %s2345_s24, %s415_s10 }
 0x2e7   :  { %p2350_p0 = por %p2349_p13, %p2348_p12 }
 0x2e9   :  { %p2352_p2 = por %p2351_p1, %p2350_p0 }
 0x2eb   :  { %p2353_p3 = pnand %p2352_p2, %p2346_p11 }
 0x2ed   :  { %2356 = shalt.err (!%p2353_p3)  }
 0x2ee   :  { %s2357_s23 = scalar_lea.vmem %s3037_s28, 32  ;;  %p2362_p5 = scmp.lt.s32.totalorder %s3037_s28, %s2521_s5 }
 0x2ef   :  { %p2358_p4 = scmp.ne.s32.totalorder %s3037_s28, %s2357_s23  ;;  %p2363_p6 = scmp.lt.s32.totalorder %s2550_s29, %s2357_s23 }
 0x2f1   :  { %p2364_p7 = por %p2363_p6, %p2362_p5 }
 0x2f3   :  { %p2365_p8 = pnand %p2364_p7, %p2358_p4 }
 0x2f5   :  { %2368 = shalt.err (!%p2365_p8)  }
 0x2f6   :  { %421 = dma.hbm_to_vmem [thread:$0]  %s415_s10, 32, %s3037_s28, [#allocation3], %s2454_s30, %s2454_s30, %s2455_s4 }
 0x2f7   :  { %s1315_s14 = sshll.u32 %s422_s6, 4  ;;  %s434_s17 = sshrl.u32 %s3041_s19, 3 }
 0x2f8   :  { %s425_s26 = sadd.s32 %s1315_s14, %s423_s2  ;;  %s435_s9 = sand.u32 7, %s3041_s19  }
 0x2f9   :  { %s1316_s16 = sshll.u32 %s425_s26, 4  ;;  %s1317_s11 = sshll.u32 %s434_s17, 4 }
 0x2fa   :  { %s427_s8 = scalar_lea.hbm %s3129_s1, %s1316_s16 }
 0x2fb   :  { %s2369_s12 = scalar_lea.hbm %s427_s8, 32  ;;  %p2372_p10 = scmp.lt.u32.totalorder %s427_s8, %s3129_s1 }
 0x2fc   :  { %p2370_p9 = scmp.ne.s32.totalorder %s427_s8, %s2369_s12  ;;  %p2373_p11 = scmp.lt.u32.totalorder %s2541_s25, %s2369_s12 }
 0x2fd   :  { %p2375_p13 = scmp.lt.u32.totalorder %s2369_s12, %s427_s8 }
 0x2fe   :  { %p2374_p12 = por %p2373_p11, %p2372_p10 }
 0x300   :  { %p2376_p0 = por %p2375_p13, %p2374_p12 }
 0x302   :  { %p2377_p1 = pnand %p2376_p0, %p2370_p9 }
 0x304   :  { %2380 = shalt.err (!%p2377_p1)  }
 0x305   :  { %s2381_s28 = scalar_lea.vmem %s431_s27, 32  ;;  %p2386_p3 = scmp.lt.s32.totalorder %s431_s27, %s2521_s5 }
 0x306   :  { %p2382_p2 = scmp.ne.s32.totalorder %s431_s27, %s2381_s28  ;;  %p2387_p4 = scmp.lt.s32.totalorder %s2550_s29, %s2381_s28 }
 0x308   :  { %p2388_p5 = por %p2387_p4, %p2386_p3 }
 0x30a   :  { %p2389_p6 = pnand %p2388_p5, %p2382_p2 }
 0x30c   :  { %2392 = shalt.err (!%p2389_p6)  }
 0x30d   :  { %433 = dma.hbm_to_vmem [thread:$0]  %s427_s8, 32, %s431_s27, [#allocation3], %s2454_s30, %s2454_s30, %s2455_s4 }
 0x30e   :  { %s437_s19 = sadd.s32 %s1317_s11, %s435_s9  ;;  %s2484_s15 = smov [#allocation2 + $0x37]  }
 0x30f   :  { %s1318_s6 = sshll.u32 %s437_s19, 4  ;;  %s442_s0 = sshll.u32 %s2484_s15, 4  ;;  %s443_s0 = int_to_ptr.vmem [resolvable:$true] %s442_s0 }
 0x310   :  { %s439_s24 = scalar_lea.hbm %s3129_s1, %s1318_s6 }
 0x311   :  { %s2393_s13 = scalar_lea.hbm %s439_s24, 32  ;;  %p2396_p8 = scmp.lt.u32.totalorder %s439_s24, %s3129_s1 }
 0x312   :  { %p2394_p7 = scmp.ne.s32.totalorder %s439_s24, %s2393_s13  ;;  %p2397_p9 = scmp.lt.u32.totalorder %s2541_s25, %s2393_s13 }
 0x313   :  { %p2399_p11 = scmp.lt.u32.totalorder %s2393_s13, %s439_s24 }
 0x314   :  { %p2398_p10 = por %p2397_p9, %p2396_p8 }
 0x316   :  { %p2400_p12 = por %p2399_p11, %p2398_p10 }
 0x318   :  { %p2401_p13 = pnand %p2400_p12, %p2394_p7 }
 0x31a   :  { %2404 = shalt.err (!%p2401_p13)  }
 0x31b   :  { %s2405_s27 = scalar_lea.vmem %s443_s0, 32  ;;  %p2410_p1 = scmp.lt.s32.totalorder %s443_s0, %s2521_s5 }
 0x31c   :  { %p2406_p0 = scmp.ne.s32.totalorder %s443_s0, %s2405_s27  ;;  %p2411_p2 = scmp.lt.s32.totalorder %s2550_s29, %s2405_s27 }
 0x31e   :  { %p2412_p3 = por %p2411_p2, %p2410_p1 }
 0x320   :  { %p2413_p4 = pnand %p2412_p3, %p2406_p0 }
 0x322   :  { %2416 = shalt.err (!%p2413_p4)  }
 0x323   :  { %445 = dma.hbm_to_vmem [thread:$0]  %s439_s24, 32, %s443_s0, [#allocation3], %s2454_s30, %s2454_s30, %s2455_s4 }
 0x324   :  { %2443 = dma.done.wait [#allocation3], 1024 }
 0x325   :  { %2444 = vsyncadd [#allocation3], 4294966272  ;;  %v528_v0 = vld [vmem:[#allocation6 + $0x8] sm:$0xff]  ;;  %v530_v1 = vld [vmem:[#allocation6 + $0x18] sm:$0xff]  ;;  %s2485_s1 = smov [#allocation9]  }
 0x326   :  { %v592_v2 = vld [vmem:[#allocation6 + $0x208] sm:$0xff]  ;;  %v1320_v3 = vpack.c.bf16 %v530_v1, %v528_v0  ;;  %v594_v4 = vld [vmem:[#allocation6 + $0x218] sm:$0xff]  ;;  %v527_v5 = vld [vmem:[#allocation6] sm:$0xff]  ;;  %s1081_s5 = sshll.u32 %s2485_s1, 4  ;;  %s1082_s5 = int_to_ptr.vmem [resolvable:$true] %s1081_s5 }
 0x327   :  { %v529_v6 = vld [vmem:[#allocation6 + $0x10] sm:$0xff]  ;;  %v1384_v7 = vpack.c.bf16 %v594_v4, %v592_v2  ;;  %v591_v9 = vld [vmem:[#allocation6 + $0x200] sm:$0xff]  ;;  %v532_v11 = vld [vmem:[#allocation6 + $0x28] sm:$0xff]  ;;  %s2417_s25 = scalar_lea.vmem %s1082_s5, 1024  ;;  %p2422_p6 = scmp.lt.s32.totalorder %s1082_s5, %s1082_s5 }
 0x328   :  { %v1322_v8 = vpack.c.bf16 %v529_v6, %v527_v5  ;;  %v593_v10 = vld [vmem:[#allocation6 + $0x210] sm:$0xff]  ;;  %1321 = vmatprep.subr.bf16.mxu0 %v1320_v3  ;;  %v534_v13 = vld [vmem:[#allocation6 + $0x38] sm:$0xff]  ;;  %v596_v14 = vld [vmem:[#allocation6 + $0x228] sm:$0xff]  ;;  %p2418_p5 = scmp.ne.s32.totalorder %s1082_s5, %s2417_s25  ;;  %p2423_p7 = scmp.lt.s32.totalorder %s2417_s25, %s2417_s25 }
 0x329   :  { %v1386_v12 = vpack.c.bf16 %v593_v10, %v591_v9  ;;  %v598_v15 = vld [vmem:[#allocation6 + $0x238] sm:$0xff]  ;;  %1385 = vmatprep.subr.bf16.mxu1 %v1384_v7  ;;  %v1324_v16 = vpack.c.bf16 %v534_v13, %v532_v11  ;;  %v531_v18 = vld [vmem:[#allocation6 + $0x20] sm:$0xff]  ;;  %v533_v19 = vld [vmem:[#allocation6 + $0x30] sm:$0xff] }
 0x32a   :  { %1323 = vmatpush1.bf16.xpose.msra.mxu0 %v1322_v8  ;;  %v1388_v17 = vpack.c.bf16 %v598_v15, %v596_v14  ;;  %v595_v20 = vld [vmem:[#allocation6 + $0x220] sm:$0xff]  ;;  %v597_v21 = vld [vmem:[#allocation6 + $0x230] sm:$0xff]  ;;  %v536_v22 = vld [vmem:[#allocation6 + $0x48] sm:$0xff]  ;;  %v1326_v26 = vpack.c.bf16 %v533_v19, %v531_v18  ;;  %p2424_p8 = por %p2423_p7, %p2422_p6 }
 0x32b   :  { %1387 = vmatpush1.bf16.xpose.msra.mxu1 %v1386_v12  ;;  %1325 = vmatprep.subr.bf16.mxu0 %v1324_v16  ;;  %v538_v23 = vld [vmem:[#allocation6 + $0x58] sm:$0xff]  ;;  %v600_v24 = vld [vmem:[#allocation6 + $0x248] sm:$0xff]  ;;  %v1390_v27 = vpack.c.bf16 %v597_v21, %v595_v20  ;;  %v535_v30 = vld [vmem:[#allocation6 + $0x40] sm:$0xff] }
 0x32c   :  { %1389 = vmatprep.subr.bf16.mxu1 %v1388_v17  ;;  %v602_v25 = vld [vmem:[#allocation6 + $0x258] sm:$0xff]  ;;  %v1328_v28 = vpack.c.bf16 %v538_v23, %v536_v22  ;;  %v537_v31 = vld [vmem:[#allocation6 + $0x50] sm:$0xff]  ;;  %v599_v32 = vld [vmem:[#allocation6 + $0x240] sm:$0xff]  ;;  %p2425_p9 = pnand %p2424_p8, %p2418_p5 }
 0x32d   :  { %v1392_v29 = vpack.c.bf16 %v602_v25, %v600_v24  ;;  %v601_v33 = vld [vmem:[#allocation6 + $0x250] sm:$0xff]  ;;  %v540_v34 = vld [vmem:[#allocation6 + $0x68] sm:$0xff]  ;;  %v542_v35 = vld [vmem:[#allocation6 + $0x78] sm:$0xff]  ;;  %v1330_v38 = vpack.c.bf16 %v537_v31, %v535_v30 }
 0x32e   :  { %v604_v36 = vld [vmem:[#allocation6 + $0x268] sm:$0xff]  ;;  %v606_v37 = vld [vmem:[#allocation6 + $0x278] sm:$0xff]  ;;  %v1394_v39 = vpack.c.bf16 %v601_v33, %v599_v32  ;;  %v1332_v40 = vpack.c.bf16 %v542_v35, %v540_v34  ;;  %v539_v42 = vld [vmem:[#allocation6 + $0x60] sm:$0xff] }
 0x32f   :  { %v1396_v41 = vpack.c.bf16 %v606_v37, %v604_v36  ;;  %v541_v43 = vld [vmem:[#allocation6 + $0x70] sm:$0xff]  ;;  %v603_v44 = vld [vmem:[#allocation6 + $0x260] sm:$0xff]  ;;  %v544_v46 = vld [vmem:[#allocation6 + $0x88] sm:$0xff] }
 0x330   :  { %v605_v45 = vld [vmem:[#allocation6 + $0x270] sm:$0xff]  ;;  %v546_v47 = vld [vmem:[#allocation6 + $0x98] sm:$0xff]  ;;  %v608_v48 = vld [vmem:[#allocation6 + $0x288] sm:$0xff]  ;;  %v1334_v50 = vpack.c.bf16 %v541_v43, %v539_v42 }
 0x331   :  { %v610_v49 = vld [vmem:[#allocation6 + $0x298] sm:$0xff]  ;;  %v1398_v51 = vpack.c.bf16 %v605_v45, %v603_v44  ;;  %v1336_v52 = vpack.c.bf16 %v546_v47, %v544_v46  ;;  %v543_v54 = vld [vmem:[#allocation6 + $0x80] sm:$0xff]  ;;  %v545_v55 = vld [vmem:[#allocation6 + $0x90] sm:$0xff] }
 0x332   :  { %1327 = vmatpush1.bf16.xpose.msra.mxu0 %v1326_v26  ;;  %v1400_v53 = vpack.c.bf16 %v610_v49, %v608_v48  ;;  %v607_v56 = vld [vmem:[#allocation6 + $0x280] sm:$0xff]  ;;  %v609_v57 = vld [vmem:[#allocation6 + $0x290] sm:$0xff]  ;;  %v548_v58 = vld [vmem:[#allocation6 + $0xa8] sm:$0xff]  ;;  %v1338_v62 = vpack.c.bf16 %v545_v55, %v543_v54 }
 0x333   :  { %1391 = vmatpush1.bf16.xpose.msra.mxu1 %v1390_v27  ;;  %1329 = vmatprep.subr.bf16.mxu0 %v1328_v28  ;;  %v550_v59 = vld [vmem:[#allocation6 + $0xb8] sm:$0xff]  ;;  %v612_v60 = vld [vmem:[#allocation6 + $0x2a8] sm:$0xff]  ;;  %v1402_v63 = vpack.c.bf16 %v609_v57, %v607_v56  ;;  %v547_v2 = vld [vmem:[#allocation6 + $0xa0] sm:$0xff] }
 0x334   :  { %1393 = vmatprep.subr.bf16.mxu1 %v1392_v29  ;;  %v614_v61 = vld [vmem:[#allocation6 + $0x2b8] sm:$0xff]  ;;  %v1340_v0 = vpack.c.bf16 %v550_v59, %v548_v58  ;;  %v549_v3 = vld [vmem:[#allocation6 + $0xb0] sm:$0xff]  ;;  %v611_v4 = vld [vmem:[#allocation6 + $0x2a0] sm:$0xff] }
 0x335   :  { %v1404_v1 = vpack.c.bf16 %v614_v61, %v612_v60  ;;  %v613_v5 = vld [vmem:[#allocation6 + $0x2b0] sm:$0xff]  ;;  %v552_v6 = vld [vmem:[#allocation6 + $0xc8] sm:$0xff]  ;;  %v554_v7 = vld [vmem:[#allocation6 + $0xd8] sm:$0xff]  ;;  %v1342_v10 = vpack.c.bf16 %v549_v3, %v547_v2 }
 0x336   :  { %v616_v8 = vld [vmem:[#allocation6 + $0x2c8] sm:$0xff]  ;;  %v618_v9 = vld [vmem:[#allocation6 + $0x2d8] sm:$0xff]  ;;  %v1406_v11 = vpack.c.bf16 %v613_v5, %v611_v4  ;;  %v1344_v12 = vpack.c.bf16 %v554_v7, %v552_v6  ;;  %v551_v17 = vld [vmem:[#allocation6 + $0xc0] sm:$0xff] }
 0x337   :  { %v1408_v13 = vpack.c.bf16 %v618_v9, %v616_v8  ;;  %v512_v14 = vld [vmem:[#allocation2 + $0x8] sm:$0xff]  ;;  %v514_v15 = vld [vmem:[#allocation2 + $0x18] sm:$0xff]  ;;  %v553_v19 = vld [vmem:[#allocation6 + $0xd0] sm:$0xff] }
 0x338   :  { %v518_v16 = vld [vmem:[#allocation2 + $0x28] sm:$0xff]  ;;  %v516_v18 = vadd.f32 %v514_v15, %v512_v14  ;;  %v615_v20 = vld [vmem:[#allocation6 + $0x2c0] sm:$0xff]  ;;  %v522_v21 = vld [vmem:[#allocation2 + $0x38] sm:$0xff]  ;;  %v1346_v28 = vpack.c.bf16 %v553_v19, %v551_v17 }
 0x339   :  { %v617_v22 = vld [vmem:[#allocation6 + $0x2d0] sm:$0xff]  ;;  %v556_v23 = vld [vmem:[#allocation6 + $0xe8] sm:$0xff]  ;;  %v558_v24 = vld [vmem:[#allocation6 + $0xf8] sm:$0xff] }
 0x33a   :  { %1331 = vmatpush1.bf16.xpose.msra.mxu0 %v1330_v38  ;;  %v520_v25 = vadd.f32 %v518_v16, %v516_v18  ;;  %v620_v26 = vld [vmem:[#allocation6 + $0x2e8] sm:$0xff]  ;;  %v622_v27 = vld [vmem:[#allocation6 + $0x2f8] sm:$0xff]  ;;  %v1410_v30 = vpack.c.bf16 %v617_v22, %v615_v20  ;;  %v1348_v31 = vpack.c.bf16 %v558_v24, %v556_v23  ;;  %v555_v34 = vld [vmem:[#allocation6 + $0xe0] sm:$0xff] }
 0x33b   :  { %1395 = vmatpush1.bf16.xpose.msra.mxu1 %v1394_v39  ;;  %1333 = vmatprep.subr.bf16.mxu0 %v1332_v40  ;;  %v1412_v32 = vpack.c.bf16 %v622_v27, %v620_v26  ;;  %v557_v35 = vld [vmem:[#allocation6 + $0xf0] sm:$0xff]  ;;  %v619_v36 = vld [vmem:[#allocation6 + $0x2e0] sm:$0xff]  ;;  %v560_v38 = vld [vmem:[#allocation6 + $0x108] sm:$0xff] }
 0x33c   :  { %1397 = vmatprep.subr.bf16.mxu1 %v1396_v41  ;;  %v524_v29 = vadd.f32 %v522_v21, %v520_v25  ;;  %v621_v37 = vld [vmem:[#allocation6 + $0x2f0] sm:$0xff]  ;;  %v562_v39 = vld [vmem:[#allocation6 + $0x118] sm:$0xff]  ;;  %v624_v40 = vld [vmem:[#allocation6 + $0x308] sm:$0xff]  ;;  %v1350_v42 = vpack.c.bf16 %v557_v35, %v555_v34 }
 0x33d   :  { %v626_v41 = vld [vmem:[#allocation6 + $0x318] sm:$0xff]  ;;  %v1414_v43 = vpack.c.bf16 %v621_v37, %v619_v36  ;;  %v1352_v44 = vpack.c.bf16 %v562_v39, %v560_v38  ;;  %v559_v46 = vld [vmem:[#allocation6 + $0x100] sm:$0xff]  ;;  %v561_v47 = vld [vmem:[#allocation6 + $0x110] sm:$0xff] }
 0x33e   :  { %v3104_v33 = vmul.f32 0.25, %v524_v29  ;;  %v1416_v45 = vpack.c.bf16 %v626_v41, %v624_v40  ;;  %v623_v48 = vld [vmem:[#allocation6 + $0x300] sm:$0xff]  ;;  %v625_v49 = vld [vmem:[#allocation6 + $0x310] sm:$0xff]  ;;  %v1354_v54 = vpack.c.bf16 %v561_v47, %v559_v46  ;;  %v576_v22 = vld [vmem:[#allocation6 + $0x188] sm:$0xff] }
 0x33f   :  { %v1418_v55 = vpack.c.bf16 %v625_v49, %v623_v48  ;;  %v563_v58 = vld [vmem:[#allocation6 + $0x120] sm:$0xff]  ;;  %v565_v59 = vld [vmem:[#allocation6 + $0x130] sm:$0xff]  ;;  %v578_v23 = vld [vmem:[#allocation6 + $0x198] sm:$0xff] }
 0x340   :  { %847 = vmatprep.mubr.f32.mxu0 %v3104_v33  ;;  %918 = vmatprep.mubr.f32.mxu1 %v3104_v33  ;;  %v627_v60 = vld [vmem:[#allocation6 + $0x320] sm:$0xff]  ;;  %v629_v61 = vld [vmem:[#allocation6 + $0x330] sm:$0xff]  ;;  %v1358_v2 = vpack.c.bf16 %v565_v59, %v563_v58  ;;  %v640_v24 = vld [vmem:[#allocation6 + $0x388] sm:$0xff] }
 0x341   :  { %v1422_v3 = vpack.c.bf16 %v629_v61, %v627_v60  ;;  %v567_v6 = vld [vmem:[#allocation6 + $0x140] sm:$0xff]  ;;  %v569_v7 = vld [vmem:[#allocation6 + $0x150] sm:$0xff]  ;;  %v642_v25 = vld [vmem:[#allocation6 + $0x398] sm:$0xff] }
 0x342   :  { %1335 = vmatpush1.bf16.xpose.msra.mxu0 %v1334_v50  ;;  %v564_v50 = vld [vmem:[#allocation6 + $0x128] sm:$0xff]  ;;  %v631_v8 = vld [vmem:[#allocation6 + $0x340] sm:$0xff]  ;;  %v633_v9 = vld [vmem:[#allocation6 + $0x350] sm:$0xff]  ;;  %v1362_v14 = vpack.c.bf16 %v569_v7, %v567_v6  ;;  %v1432_v29 = vpack.c.bf16 %v642_v25, %v640_v24 }
 0x343   :  { %1399 = vmatpush1.bf16.xpose.msra.mxu1 %v1398_v51  ;;  %1337 = vmatprep.subr.bf16.mxu0 %v1336_v52  ;;  %v566_v51 = vld [vmem:[#allocation6 + $0x138] sm:$0xff]  ;;  %v628_v52 = vld [vmem:[#allocation6 + $0x328] sm:$0xff]  ;;  %v1426_v15 = vpack.c.bf16 %v633_v9, %v631_v8  ;;  %v571_v18 = vld [vmem:[#allocation6 + $0x160] sm:$0xff] }
 0x344   :  { %1401 = vmatprep.subr.bf16.mxu1 %v1400_v53  ;;  %v630_v53 = vld [vmem:[#allocation6 + $0x338] sm:$0xff]  ;;  %v1356_v56 = vpack.c.bf16 %v566_v51, %v564_v50  ;;  %v573_v19 = vld [vmem:[#allocation6 + $0x170] sm:$0xff]  ;;  %v635_v20 = vld [vmem:[#allocation6 + $0x360] sm:$0xff] }
 0x345   :  { %v1420_v57 = vpack.c.bf16 %v630_v53, %v628_v52  ;;  %v637_v21 = vld [vmem:[#allocation6 + $0x370] sm:$0xff]  ;;  %v1366_v26 = vpack.c.bf16 %v573_v19, %v571_v18  ;;  %v580_v35 = vld [vmem:[#allocation6 + $0x1a8] sm:$0xff]  ;;  %v582_v36 = vld [vmem:[#allocation6 + $0x1b8] sm:$0xff] }
 0x346   :  { %v1430_v27 = vpack.c.bf16 %v637_v21, %v635_v20  ;;  %v641_v34 = vld [vmem:[#allocation6 + $0x390] sm:$0xff]  ;;  %v644_v37 = vld [vmem:[#allocation6 + $0x3a8] sm:$0xff]  ;;  %v646_v38 = vld [vmem:[#allocation6 + $0x3b8] sm:$0xff]  ;;  %v1372_v41 = vpack.c.bf16 %v582_v36, %v580_v35 }
 0x347   :  { %v645_v46 = vld [vmem:[#allocation6 + $0x3b0] sm:$0xff]  ;;  %v584_v47 = vld [vmem:[#allocation6 + $0x1c8] sm:$0xff]  ;;  %v586_v48 = vld [vmem:[#allocation6 + $0x1d8] sm:$0xff] }
 0x348   :  { %v648_v49 = vld [vmem:[#allocation6 + $0x3c8] sm:$0xff]  ;;  %v650_v50 = vld [vmem:[#allocation6 + $0x3d8] sm:$0xff]  ;;  %v1376_v53 = vpack.c.bf16 %v586_v48, %v584_v47  ;;  %v649_v58 = vld [vmem:[#allocation6 + $0x3d0] sm:$0xff] }
 0x349   :  { %v588_v59 = vld [vmem:[#allocation6 + $0x1e8] sm:$0xff]  ;;  %v590_v60 = vld [vmem:[#allocation6 + $0x1f8] sm:$0xff]  ;;  %v517_v6 = vld [vmem:[#allocation2 + $0x20] sm:$0xff] }
 0x34a   :  { %1339 = vmatpush1.bf16.xpose.msra.mxu0 %v1338_v62  ;;  %v568_v62 = vld [vmem:[#allocation6 + $0x148] sm:$0xff]  ;;  %v587_v7 = vld [vmem:[#allocation6 + $0x1e0] sm:$0xff]  ;;  %v589_v8 = vld [vmem:[#allocation6 + $0x1f0] sm:$0xff] }
 0x34b   :  { %1403 = vmatpush1.bf16.xpose.msra.mxu1 %v1402_v63  ;;  %1341 = vmatprep.subr.bf16.mxu0 %v1340_v0  ;;  %v570_v63 = vld [vmem:[#allocation6 + $0x158] sm:$0xff]  ;;  %v632_v0 = vld [vmem:[#allocation6 + $0x348] sm:$0xff]  ;;  %v651_v9 = vld [vmem:[#allocation6 + $0x3e0] sm:$0xff] }
 0x34c   :  { %1405 = vmatprep.subr.bf16.mxu1 %v1404_v1  ;;  %v634_v1 = vld [vmem:[#allocation6 + $0x358] sm:$0xff]  ;;  %v1360_v4 = vpack.c.bf16 %v570_v63, %v568_v62  ;;  %v652_v61 = vld [vmem:[#allocation6 + $0x3e8] sm:$0xff]  ;;  %v719_v24 = vld [vmem:[#allocation6 + $0x600] sm:$0xff] }
 0x34d   :  { %v1424_v5 = vpack.c.bf16 %v634_v1, %v632_v0  ;;  %v654_v62 = vld [vmem:[#allocation6 + $0x3f8] sm:$0xff]  ;;  %v511_v0 = vld [vmem:[#allocation2] sm:$0xff]  ;;  %v513_v1 = vld [vmem:[#allocation2 + $0x10] sm:$0xff] }
 0x34e   :  { %v721_v25 = vld [vmem:[#allocation6 + $0x610] sm:$0xff]  ;;  %v659_v36 = vld [vmem:[#allocation6 + $0x420] sm:$0xff] }
 0x34f   :  { %v663_v48 = vld [vmem:[#allocation6 + $0x440] sm:$0xff] }
 0x352   :  { %1343 = vmatpush1.bf16.xpose.msra.mxu0 %v1342_v10  ;;  %v572_v10 = vld [vmem:[#allocation6 + $0x168] sm:$0xff] }
 0x353   :  { %1407 = vmatpush1.bf16.xpose.msra.mxu1 %v1406_v11  ;;  %1345 = vmatprep.subr.bf16.mxu0 %v1344_v12  ;;  %v574_v11 = vld [vmem:[#allocation6 + $0x178] sm:$0xff]  ;;  %v636_v12 = vld [vmem:[#allocation6 + $0x368] sm:$0xff] }
 0x354   :  { %1409 = vmatprep.subr.bf16.mxu1 %v1408_v13  ;;  %v638_v13 = vld [vmem:[#allocation6 + $0x378] sm:$0xff]  ;;  %v1364_v16 = vpack.c.bf16 %v574_v11, %v572_v10  ;;  %v653_v10 = vld [vmem:[#allocation6 + $0x3f0] sm:$0xff]  ;;  %v656_v11 = vld [vmem:[#allocation6 + $0x408] sm:$0xff] }
 0x355   :  { %v1428_v17 = vpack.c.bf16 %v638_v13, %v636_v12  ;;  %v658_v12 = vld [vmem:[#allocation6 + $0x418] sm:$0xff]  ;;  %v1446_v18 = vpack.c.bf16 %v653_v10, %v651_v9  ;;  %v735_v9 = vld [vmem:[#allocation6 + $0x680] sm:$0xff]  ;;  %v737_v10 = vld [vmem:[#allocation6 + $0x690] sm:$0xff] }
 0x356   :  { %v1448_v19 = vpack.c.bf16 %v658_v12, %v656_v11  ;;  %v676_v11 = vld [vmem:[#allocation6 + $0x4a8] sm:$0xff]  ;;  %v678_v12 = vld [vmem:[#allocation6 + $0x4b8] sm:$0xff] }
 0x35a   :  { %1347 = vmatpush1.bf16.xpose.msra.mxu0 %v1346_v28  ;;  %v1368_v28 = vpack.c.bf16 %v578_v23, %v576_v22  ;;  %v655_v22 = vld [vmem:[#allocation6 + $0x400] sm:$0xff]  ;;  %v657_v23 = vld [vmem:[#allocation6 + $0x410] sm:$0xff] }
 0x35b   :  { %1411 = vmatpush1.bf16.xpose.msra.mxu1 %v1410_v30  ;;  %1349 = vmatprep.subr.bf16.mxu0 %v1348_v31  ;;  %v575_v30 = vld [vmem:[#allocation6 + $0x180] sm:$0xff]  ;;  %v577_v31 = vld [vmem:[#allocation6 + $0x190] sm:$0xff] }
 0x35c   :  { %1413 = vmatprep.subr.bf16.mxu1 %v1412_v32  ;;  %v639_v32 = vld [vmem:[#allocation6 + $0x380] sm:$0xff]  ;;  %v1370_v39 = vpack.c.bf16 %v577_v31, %v575_v30  ;;  %v726_v30 = vld [vmem:[#allocation6 + $0x638] sm:$0xff]  ;;  %v1450_v31 = vpack.c.bf16 %v657_v23, %v655_v22  ;;  %v741_v22 = vld [vmem:[#allocation6 + $0x6b0] sm:$0xff] }
 0x35d   :  { %v1434_v40 = vpack.c.bf16 %v641_v34, %v639_v32  ;;  %v1514_v32 = vpack.c.bf16 %v721_v25, %v719_v24  ;;  %v680_v23 = vld [vmem:[#allocation6 + $0x4c8] sm:$0xff]  ;;  %v682_v24 = vld [vmem:[#allocation6 + $0x4d8] sm:$0xff] }
 0x35e   :  { %v744_v25 = vld [vmem:[#allocation6 + $0x6c8] sm:$0xff] }
 0x362   :  { %1351 = vmatpush1.bf16.xpose.msra.mxu0 %v1350_v42  ;;  %v1436_v42 = vpack.c.bf16 %v646_v38, %v644_v37  ;;  %v661_v37 = vld [vmem:[#allocation6 + $0x430] sm:$0xff]  ;;  %v723_v38 = vld [vmem:[#allocation6 + $0x620] sm:$0xff] }
 0x363   :  { %1415 = vmatpush1.bf16.xpose.msra.mxu1 %v1414_v43  ;;  %1353 = vmatprep.subr.bf16.mxu0 %v1352_v44  ;;  %v579_v43 = vld [vmem:[#allocation6 + $0x1a0] sm:$0xff]  ;;  %v581_v44 = vld [vmem:[#allocation6 + $0x1b0] sm:$0xff] }
 0x364   :  { %1417 = vmatprep.subr.bf16.mxu1 %v1416_v45  ;;  %v643_v45 = vld [vmem:[#allocation6 + $0x3a0] sm:$0xff]  ;;  %v1374_v51 = vpack.c.bf16 %v581_v44, %v579_v43  ;;  %v730_v43 = vld [vmem:[#allocation6 + $0x658] sm:$0xff]  ;;  %v1454_v44 = vpack.c.bf16 %v661_v37, %v659_v36  ;;  %v745_v36 = vld [vmem:[#allocation6 + $0x6d0] sm:$0xff] }
 0x365   :  { %v1438_v52 = vpack.c.bf16 %v645_v46, %v643_v45  ;;  %v684_v37 = vld [vmem:[#allocation6 + $0x4e8] sm:$0xff] }
 0x36a   :  { %1355 = vmatpush1.bf16.xpose.msra.mxu0 %v1354_v54  ;;  %v1440_v54 = vpack.c.bf16 %v650_v50, %v648_v49  ;;  %v665_v49 = vld [vmem:[#allocation6 + $0x450] sm:$0xff]  ;;  %v727_v50 = vld [vmem:[#allocation6 + $0x640] sm:$0xff] }
 0x36b   :  { %1419 = vmatpush1.bf16.xpose.msra.mxu1 %v1418_v55  ;;  %1357 = vmatprep.subr.bf16.mxu0 %v1356_v56  ;;  %v583_v55 = vld [vmem:[#allocation6 + $0x1c0] sm:$0xff]  ;;  %v585_v56 = vld [vmem:[#allocation6 + $0x1d0] sm:$0xff] }
 0x36c   :  { %1421 = vmatprep.subr.bf16.mxu1 %v1420_v57  ;;  %v647_v57 = vld [vmem:[#allocation6 + $0x3c0] sm:$0xff]  ;;  %v1378_v63 = vpack.c.bf16 %v585_v56, %v583_v55  ;;  %v734_v55 = vld [vmem:[#allocation6 + $0x678] sm:$0xff]  ;;  %v1458_v56 = vpack.c.bf16 %v665_v49, %v663_v48  ;;  %v749_v48 = vld [vmem:[#allocation6 + $0x6f0] sm:$0xff] }
 0x36d   :  { %v688_v49 = vld [vmem:[#allocation6 + $0x508] sm:$0xff] }
 0x372   :  { %1359 = vmatpush1.bf16.xpose.msra.mxu0 %v1358_v2  ;;  %v1442_v2 = vpack.c.bf16 %v649_v58, %v647_v57 }
 0x373   :  { %1423 = vmatpush1.bf16.xpose.msra.mxu1 %v1422_v3  ;;  %1361 = vmatprep.subr.bf16.mxu0 %v1360_v4  ;;  %v1380_v3 = vpack.c.bf16 %v590_v60, %v588_v59  ;;  %v1444_v4 = vpack.c.bf16 %v654_v62, %v652_v61  ;;  %v667_v59 = vld [vmem:[#allocation6 + $0x460] sm:$0xff]  ;;  %v669_v60 = vld [vmem:[#allocation6 + $0x470] sm:$0xff] }
 0x374   :  { %1425 = vmatprep.subr.bf16.mxu1 %v1424_v5  ;;  %v515_v5 = vadd.f32 %v513_v1, %v511_v0  ;;  %v731_v61 = vld [vmem:[#allocation6 + $0x660] sm:$0xff]  ;;  %v733_v62 = vld [vmem:[#allocation6 + $0x670] sm:$0xff]  ;;  %v674_v0 = vld [vmem:[#allocation6 + $0x498] sm:$0xff] }
 0x375   :  { %v736_v1 = vld [vmem:[#allocation6 + $0x688] sm:$0xff] }
 0x376   :  { %v519_v13 = vadd.f32 %v517_v6, %v515_v5 }
 0x37a   :  { %1363 = vmatpush1.bf16.xpose.msra.mxu0 %v1362_v14  ;;  %v720_v14 = vld [vmem:[#allocation6 + $0x608] sm:$0xff] }
 0x37b   :  { %1427 = vmatpush1.bf16.xpose.msra.mxu1 %v1426_v15  ;;  %1365 = vmatprep.subr.bf16.mxu0 %v1364_v16  ;;  %v722_v15 = vld [vmem:[#allocation6 + $0x618] sm:$0xff]  ;;  %v1382_v16 = vpack.c.bf16 %v589_v8, %v587_v7  ;;  %v671_v7 = vld [vmem:[#allocation6 + $0x480] sm:$0xff]  ;;  %v673_v8 = vld [vmem:[#allocation6 + $0x490] sm:$0xff] }
 0x37c   :  { %1429 = vmatprep.subr.bf16.mxu1 %v1428_v17  ;;  %v521_v17 = vld [vmem:[#allocation2 + $0x30] sm:$0xff]  ;;  %v1512_v20 = vpack.c.bf16 %v722_v15, %v720_v14  ;;  %v742_v14 = vld [vmem:[#allocation6 + $0x6b8] sm:$0xff]  ;;  %v1466_v15 = vpack.c.bf16 %v673_v8, %v671_v7  ;;  %v696_v8 = vld [vmem:[#allocation6 + $0x548] sm:$0xff] }
 0x37d   :  { %v523_v21 = vadd.f32 %v521_v17, %v519_v13  ;;  %v740_v13 = vld [vmem:[#allocation6 + $0x6a8] sm:$0xff]  ;;  %v1468_v17 = vpack.c.bf16 %v678_v12, %v676_v11  ;;  %v757_v7 = vld [vmem:[#allocation6 + $0x730] sm:$0xff]  ;;  %v762_v11 = vld [vmem:[#allocation6 + $0x758] sm:$0xff] }
 0x382   :  { %1367 = vmatpush1.bf16.xpose.msra.mxu0 %v1366_v26  ;;  %v660_v26 = vld [vmem:[#allocation6 + $0x428] sm:$0xff] }
 0x383   :  { %1431 = vmatpush1.bf16.xpose.msra.mxu1 %v1430_v27  ;;  %1369 = vmatprep.subr.bf16.mxu0 %v1368_v28  ;;  %v662_v27 = vld [vmem:[#allocation6 + $0x438] sm:$0xff]  ;;  %v3108_v28 = vmul.f32 0.25, %v523_v21  ;;  %v739_v21 = vld [vmem:[#allocation6 + $0x6a0] sm:$0xff] }
 0x384   :  { %1433 = vmatprep.subr.bf16.mxu1 %v1432_v29  ;;  %v724_v29 = vld [vmem:[#allocation6 + $0x628] sm:$0xff]  ;;  %v1452_v34 = vpack.c.bf16 %v662_v27, %v660_v26  ;;  %v746_v26 = vld [vmem:[#allocation6 + $0x6d8] sm:$0xff] }
 0x385   :  { %v1516_v35 = vpack.c.bf16 %v726_v30, %v724_v29  ;;  %v1534_v29 = vpack.c.bf16 %v741_v22, %v739_v21  ;;  %v1472_v30 = vpack.c.bf16 %v682_v24, %v680_v23  ;;  %v702_v21 = vld [vmem:[#allocation6 + $0x578] sm:$0xff]  ;;  %v764_v22 = vld [vmem:[#allocation6 + $0x768] sm:$0xff] }
 0x386   :  { %v766_v23 = vld [vmem:[#allocation6 + $0x778] sm:$0xff] }
 0x38a   :  { %1371 = vmatpush1.bf16.xpose.msra.mxu0 %v1370_v39  ;;  %v725_v39 = vld [vmem:[#allocation6 + $0x630] sm:$0xff] }
 0x38b   :  { %1435 = vmatpush1.bf16.xpose.msra.mxu1 %v1434_v40  ;;  %1373 = vmatprep.subr.bf16.mxu0 %v1372_v41  ;;  %v664_v40 = vld [vmem:[#allocation6 + $0x448] sm:$0xff]  ;;  %v666_v41 = vld [vmem:[#allocation6 + $0x458] sm:$0xff]  ;;  %v1518_v45 = vpack.c.bf16 %v725_v39, %v723_v38 }
 0x38c   :  { %1437 = vmatprep.subr.bf16.mxu1 %v1436_v42  ;;  %v728_v42 = vld [vmem:[#allocation6 + $0x648] sm:$0xff]  ;;  %v1456_v46 = vpack.c.bf16 %v666_v41, %v664_v40  ;;  %v686_v38 = vld [vmem:[#allocation6 + $0x4f8] sm:$0xff] }
 0x38d   :  { %v1520_v47 = vpack.c.bf16 %v730_v43, %v728_v42  ;;  %v748_v39 = vld [vmem:[#allocation6 + $0x6e8] sm:$0xff]  ;;  %v750_v40 = vld [vmem:[#allocation6 + $0x6f8] sm:$0xff]  ;;  %v1476_v43 = vpack.c.bf16 %v686_v38, %v684_v37 }
 0x38e   :  { %v770_v37 = vld [vmem:[#allocation6 + $0x798] sm:$0xff] }
 0x392   :  { %1375 = vmatpush1.bf16.xpose.msra.mxu0 %v1374_v51  ;;  %v729_v51 = vld [vmem:[#allocation6 + $0x650] sm:$0xff] }
 0x393   :  { %1439 = vmatpush1.bf16.xpose.msra.mxu1 %v1438_v52  ;;  %1377 = vmatprep.subr.bf16.mxu0 %v1376_v53  ;;  %v668_v52 = vld [vmem:[#allocation6 + $0x468] sm:$0xff]  ;;  %v670_v53 = vld [vmem:[#allocation6 + $0x478] sm:$0xff]  ;;  %v1522_v57 = vpack.c.bf16 %v729_v51, %v727_v50 }
 0x394   :  { %1441 = vmatprep.subr.bf16.mxu1 %v1440_v54  ;;  %v732_v54 = vld [vmem:[#allocation6 + $0x668] sm:$0xff]  ;;  %v1460_v58 = vpack.c.bf16 %v670_v53, %v668_v52  ;;  %v690_v50 = vld [vmem:[#allocation6 + $0x518] sm:$0xff] }
 0x395   :  { %v752_v51 = vld [vmem:[#allocation6 + $0x708] sm:$0xff]  ;;  %v754_v52 = vld [vmem:[#allocation6 + $0x718] sm:$0xff] }
 0x39a   :  { %1379 = vmatpush1.bf16.xpose.msra.mxu0 %v1378_v63  ;;  %v672_v63 = vld [vmem:[#allocation6 + $0x488] sm:$0xff] }
 0x39b   :  { %1443 = vmatpush1.bf16.xpose.msra.mxu1 %v1442_v2  ;;  %1381 = vmatprep.subr.bf16.mxu0 %v1380_v3  ;;  %v738_v2 = vld [vmem:[#allocation6 + $0x698] sm:$0xff]  ;;  %v1462_v3 = vpack.c.bf16 %v669_v60, %v667_v59  ;;  %v1464_v5 = vpack.c.bf16 %v674_v0, %v672_v63  ;;  %v753_v59 = vld [vmem:[#allocation6 + $0x710] sm:$0xff]  ;;  %v692_v60 = vld [vmem:[#allocation6 + $0x528] sm:$0xff] }
 0x39c   :  { %1445 = vmatprep.subr.bf16.mxu1 %v1444_v4  ;;  %v1526_v4 = vpack.c.bf16 %v733_v62, %v731_v61  ;;  %v1528_v6 = vpack.c.bf16 %v738_v2, %v736_v1  ;;  %v694_v61 = vld [vmem:[#allocation6 + $0x538] sm:$0xff]  ;;  %v756_v62 = vld [vmem:[#allocation6 + $0x728] sm:$0xff] }
 0x39d   :  { %v758_v63 = vld [vmem:[#allocation6 + $0x738] sm:$0xff]  ;;  %v1484_v2 = vpack.c.bf16 %v694_v61, %v692_v60 }
 0x39e   :  { %v778_v60 = vld [vmem:[#allocation6 + $0x7d8] sm:$0xff] }
 0x3a2   :  { %1383 = vmatpush1.bf16.xpose.msra.mxu0 %v1382_v16  ;;  %v1530_v16 = vpack.c.bf16 %v737_v10, %v735_v9  ;;  %v698_v9 = vld [vmem:[#allocation6 + $0x558] sm:$0xff]  ;;  %v760_v10 = vld [vmem:[#allocation6 + $0x748] sm:$0xff] }
 0x3a3   :  { %1447 = vmatpush1.bf16.xpose.msra.mxu1 %v1446_v18  ;;  %1449 = vmatprep.subr.bf16.mxu0 %v1448_v19  ;;  %v1532_v18 = vpack.c.bf16 %v742_v14, %v740_v13  ;;  %v675_v19 = vld [vmem:[#allocation6 + $0x4a0] sm:$0xff]  ;;  %v1488_v14 = vpack.c.bf16 %v698_v9, %v696_v8  ;;  %v782_v8 = vld [vmem:[#allocation6 + $0x7f8] sm:$0xff] }
 0x3a4   :  { %1513 = vmatprep.subr.bf16.mxu1 %v1512_v20  ;;  %v677_v20 = vld [vmem:[#allocation6 + $0x4b0] sm:$0xff] }
 0x3a5   :  { %v1470_v27 = vpack.c.bf16 %v677_v20, %v675_v19  ;;  %v761_v19 = vld [vmem:[#allocation6 + $0x750] sm:$0xff]  ;;  %v700_v20 = vld [vmem:[#allocation6 + $0x568] sm:$0xff] }
 0x3a9   :  { %848 = vmatmul.mubr.f32.vlgmr.msra.gmra.mrb[0].mxu0 %v3108_v28 }
 0x3aa   :  { %919 = vmatmul.mubr.f32.vlgmr.msra.gmra.mrb[0].mxu1 %v3108_v28  ;;  %1451 = vmatpush1.bf16.xpose.msra.mxu0 %v1450_v31  ;;  %v1536_v31 = vpack.c.bf16 %v746_v26, %v744_v25  ;;  %v1492_v26 = vpack.c.bf16 %v702_v21, %v700_v20 }
 0x3ab   :  { %1515 = vmatpush1.bf16.xpose.msra.mxu1 %v1514_v32  ;;  %1453 = vmatprep.subr.bf16.mxu0 %v1452_v34  ;;  %v679_v32 = vld [vmem:[#allocation6 + $0x4c0] sm:$0xff]  ;;  %v681_v34 = vld [vmem:[#allocation6 + $0x4d0] sm:$0xff] }
 0x3ac   :  { %1517 = vmatprep.subr.bf16.mxu1 %v1516_v35  ;;  %989 = vmatprep.mubr.f32.mxu0 %v3104_v33  ;;  %v743_v35 = vld [vmem:[#allocation6 + $0x6c0] sm:$0xff]  ;;  %v1474_v41 = vpack.c.bf16 %v681_v34, %v679_v32  ;;  %v765_v32 = vld [vmem:[#allocation6 + $0x770] sm:$0xff]  ;;  %v704_v34 = vld [vmem:[#allocation6 + $0x588] sm:$0xff] }
 0x3ad   :  { %1060 = vmatprep.mubr.f32.mxu1 %v3104_v33  ;;  %v1524_v33 = vpack.c.bf16 %v734_v55, %v732_v54  ;;  %v1538_v42 = vpack.c.bf16 %v745_v36, %v743_v35  ;;  %v1480_v55 = vpack.c.bf16 %v690_v50, %v688_v49  ;;  %v706_v35 = vld [vmem:[#allocation6 + $0x598] sm:$0xff]  ;;  %v768_v36 = vld [vmem:[#allocation6 + $0x788] sm:$0xff] }
 0x3ae   :  { %v774_v49 = vld [vmem:[#allocation6 + $0x7b8] sm:$0xff] }
 0x3b2   :  { %1455 = vmatpush1.bf16.xpose.msra.mxu0 %v1454_v44  ;;  %v1540_v44 = vpack.c.bf16 %v750_v40, %v748_v39  ;;  %v1496_v40 = vpack.c.bf16 %v706_v35, %v704_v34 }
 0x3b3   :  { %1519 = vmatpush1.bf16.xpose.msra.mxu1 %v1518_v45  ;;  %1457 = vmatprep.subr.bf16.mxu0 %v1456_v46  ;;  %v683_v45 = vld [vmem:[#allocation6 + $0x4e0] sm:$0xff]  ;;  %v685_v46 = vld [vmem:[#allocation6 + $0x4f0] sm:$0xff] }
 0x3b4   :  { %1521 = vmatprep.subr.bf16.mxu1 %v1520_v47  ;;  %v747_v47 = vld [vmem:[#allocation6 + $0x6e0] sm:$0xff]  ;;  %v1478_v53 = vpack.c.bf16 %v685_v46, %v683_v45  ;;  %v769_v45 = vld [vmem:[#allocation6 + $0x790] sm:$0xff]  ;;  %v708_v46 = vld [vmem:[#allocation6 + $0x5a8] sm:$0xff] }
 0x3b5   :  { %v1542_v54 = vpack.c.bf16 %v749_v48, %v747_v47  ;;  %v710_v47 = vld [vmem:[#allocation6 + $0x5b8] sm:$0xff]  ;;  %v772_v48 = vld [vmem:[#allocation6 + $0x7a8] sm:$0xff] }
 0x3ba   :  { %1459 = vmatpush1.bf16.xpose.msra.mxu0 %v1458_v56  ;;  %v1544_v56 = vpack.c.bf16 %v754_v52, %v752_v51  ;;  %v1500_v52 = vpack.c.bf16 %v710_v47, %v708_v46 }
 0x3bb   :  { %1523 = vmatpush1.bf16.xpose.msra.mxu1 %v1522_v57  ;;  %1461 = vmatprep.subr.bf16.mxu0 %v1460_v58  ;;  %v687_v57 = vld [vmem:[#allocation6 + $0x500] sm:$0xff]  ;;  %v689_v58 = vld [vmem:[#allocation6 + $0x510] sm:$0xff] }
 0x3bc   :  { %1525 = vmatprep.subr.bf16.mxu1 %v1524_v33  ;;  %v751_v33 = vld [vmem:[#allocation6 + $0x700] sm:$0xff]  ;;  %v1482_v0 = vpack.c.bf16 %v689_v58, %v687_v57  ;;  %v773_v57 = vld [vmem:[#allocation6 + $0x7b0] sm:$0xff]  ;;  %v712_v58 = vld [vmem:[#allocation6 + $0x5c8] sm:$0xff] }
 0x3bd   :  { %v1546_v1 = vpack.c.bf16 %v753_v59, %v751_v33  ;;  %v714_v33 = vld [vmem:[#allocation6 + $0x5d8] sm:$0xff]  ;;  %v776_v59 = vld [vmem:[#allocation6 + $0x7c8] sm:$0xff] }
 0x3c2   :  { %1463 = vmatpush1.bf16.xpose.msra.mxu0 %v1462_v3  ;;  %v1548_v3 = vpack.c.bf16 %v758_v63, %v756_v62  ;;  %v1504_v63 = vpack.c.bf16 %v714_v33, %v712_v58 }
 0x3c3   :  { %1527 = vmatpush1.bf16.xpose.msra.mxu1 %v1526_v4  ;;  %1465 = vmatprep.subr.bf16.mxu0 %v1464_v5  ;;  %v691_v4 = vld [vmem:[#allocation6 + $0x520] sm:$0xff]  ;;  %v693_v5 = vld [vmem:[#allocation6 + $0x530] sm:$0xff] }
 0x3c4   :  { %1529 = vmatprep.subr.bf16.mxu1 %v1528_v6  ;;  %v755_v6 = vld [vmem:[#allocation6 + $0x720] sm:$0xff]  ;;  %v1486_v12 = vpack.c.bf16 %v693_v5, %v691_v4  ;;  %v777_v4 = vld [vmem:[#allocation6 + $0x7d0] sm:$0xff]  ;;  %v716_v5 = vld [vmem:[#allocation6 + $0x5e8] sm:$0xff] }
 0x3c5   :  { %v1550_v13 = vpack.c.bf16 %v757_v7, %v755_v6  ;;  %v718_v6 = vld [vmem:[#allocation6 + $0x5f8] sm:$0xff]  ;;  %v780_v7 = vld [vmem:[#allocation6 + $0x7e8] sm:$0xff] }
 0x3ca   :  { %1467 = vmatpush1.bf16.xpose.msra.mxu0 %v1466_v15  ;;  %v1552_v15 = vpack.c.bf16 %v762_v11, %v760_v10  ;;  %v1508_v11 = vpack.c.bf16 %v718_v6, %v716_v5 }
 0x3cb   :  { %1531 = vmatpush1.bf16.xpose.msra.mxu1 %v1530_v16  ;;  %1469 = vmatprep.subr.bf16.mxu0 %v1468_v17  ;;  %v695_v16 = vld [vmem:[#allocation6 + $0x540] sm:$0xff]  ;;  %v697_v17 = vld [vmem:[#allocation6 + $0x550] sm:$0xff] }
 0x3cc   :  { %1533 = vmatprep.subr.bf16.mxu1 %v1532_v18  ;;  %v759_v18 = vld [vmem:[#allocation6 + $0x740] sm:$0xff]  ;;  %v1490_v24 = vpack.c.bf16 %v697_v17, %v695_v16  ;;  %v781_v16 = vld [vmem:[#allocation6 + $0x7f0] sm:$0xff] }
 0x3cd   :  { %v1554_v25 = vpack.c.bf16 %v761_v19, %v759_v18 }
 0x3d2   :  { %1471 = vmatpush1.bf16.xpose.msra.mxu0 %v1470_v27  ;;  %v1556_v27 = vpack.c.bf16 %v766_v23, %v764_v22 }
 0x3d3   :  { %1535 = vmatpush1.bf16.xpose.msra.mxu1 %v1534_v29  ;;  %1473 = vmatprep.subr.bf16.mxu0 %v1472_v30  ;;  %v699_v29 = vld [vmem:[#allocation6 + $0x560] sm:$0xff]  ;;  %v701_v30 = vld [vmem:[#allocation6 + $0x570] sm:$0xff] }
 0x3d4   :  { %1537 = vmatprep.subr.bf16.mxu1 %v1536_v31  ;;  %v763_v31 = vld [vmem:[#allocation6 + $0x760] sm:$0xff]  ;;  %v1494_v38 = vpack.c.bf16 %v701_v30, %v699_v29 }
 0x3d5   :  { %v1558_v39 = vpack.c.bf16 %v765_v32, %v763_v31 }
 0x3da   :  { %1475 = vmatpush1.bf16.xpose.msra.mxu0 %v1474_v41  ;;  %v1560_v41 = vpack.c.bf16 %v770_v37, %v768_v36 }
 0x3db   :  { %1539 = vmatpush1.bf16.xpose.msra.mxu1 %v1538_v42  ;;  %1477 = vmatprep.subr.bf16.mxu0 %v1476_v43  ;;  %v703_v42 = vld [vmem:[#allocation6 + $0x580] sm:$0xff]  ;;  %v705_v43 = vld [vmem:[#allocation6 + $0x590] sm:$0xff] }
 0x3dc   :  { %1541 = vmatprep.subr.bf16.mxu1 %v1540_v44  ;;  %v767_v44 = vld [vmem:[#allocation6 + $0x780] sm:$0xff]  ;;  %v1498_v50 = vpack.c.bf16 %v705_v43, %v703_v42 }
 0x3dd   :  { %v1562_v51 = vpack.c.bf16 %v769_v45, %v767_v44 }
 0x3e2   :  { %1479 = vmatpush1.bf16.xpose.msra.mxu0 %v1478_v53  ;;  %v1564_v53 = vpack.c.bf16 %v774_v49, %v772_v48 }
 0x3e3   :  { %1543 = vmatpush1.bf16.xpose.msra.mxu1 %v1542_v54  ;;  %1481 = vmatprep.subr.bf16.mxu0 %v1480_v55  ;;  %v707_v54 = vld [vmem:[#allocation6 + $0x5a0] sm:$0xff]  ;;  %v709_v55 = vld [vmem:[#allocation6 + $0x5b0] sm:$0xff] }
 0x3e4   :  { %1545 = vmatprep.subr.bf16.mxu1 %v1544_v56  ;;  %v771_v56 = vld [vmem:[#allocation6 + $0x7a0] sm:$0xff]  ;;  %v1502_v61 = vpack.c.bf16 %v709_v55, %v707_v54 }
 0x3e5   :  { %v1566_v62 = vpack.c.bf16 %v773_v57, %v771_v56 }
 0x3ea   :  { %1483 = vmatpush1.bf16.xpose.msra.mxu0 %v1482_v0  ;;  %v1568_v0 = vpack.c.bf16 %v778_v60, %v776_v59 }
 0x3eb   :  { %1547 = vmatpush1.bf16.xpose.msra.mxu1 %v1546_v1  ;;  %1485 = vmatprep.subr.bf16.mxu0 %v1484_v2  ;;  %v711_v1 = vld [vmem:[#allocation6 + $0x5c0] sm:$0xff]  ;;  %v713_v2 = vld [vmem:[#allocation6 + $0x5d0] sm:$0xff] }
 0x3ec   :  { %1549 = vmatprep.subr.bf16.mxu1 %v1548_v3  ;;  %v775_v3 = vld [vmem:[#allocation6 + $0x7c0] sm:$0xff]  ;;  %v1506_v9 = vpack.c.bf16 %v713_v2, %v711_v1 }
 0x3ed   :  { %v1570_v10 = vpack.c.bf16 %v777_v4, %v775_v3 }
 0x3f2   :  { %1487 = vmatpush1.bf16.xpose.msra.mxu0 %v1486_v12  ;;  %v1572_v12 = vpack.c.bf16 %v782_v8, %v780_v7 }
 0x3f3   :  { %1551 = vmatpush1.bf16.xpose.msra.mxu1 %v1550_v13  ;;  %1489 = vmatprep.subr.bf16.mxu0 %v1488_v14  ;;  %v715_v13 = vld [vmem:[#allocation6 + $0x5e0] sm:$0xff]  ;;  %v717_v14 = vld [vmem:[#allocation6 + $0x5f0] sm:$0xff] }
 0x3f4   :  { %1553 = vmatprep.subr.bf16.mxu1 %v1552_v15  ;;  %v779_v15 = vld [vmem:[#allocation6 + $0x7e0] sm:$0xff]  ;;  %v1510_v17 = vpack.c.bf16 %v717_v14, %v715_v13 }
 0x3f5   :  { %v1574_v18 = vpack.c.bf16 %v781_v16, %v779_v15 }
 0x3fa   :  { %1491 = vmatpush1.bf16.xpose.msra.mxu0 %v1490_v24 }
 0x3fb   :  { %1555 = vmatpush1.bf16.xpose.msra.mxu1 %v1554_v25  ;;  %1493 = vmatprep.subr.bf16.mxu0 %v1492_v26 }
 0x3fc   :  { %1557 = vmatprep.subr.bf16.mxu1 %v1556_v27 }
 0x402   :  { %1495 = vmatpush1.bf16.xpose.msra.mxu0 %v1494_v38 }
 0x403   :  { %1559 = vmatpush1.bf16.xpose.msra.mxu1 %v1558_v39  ;;  %1497 = vmatprep.subr.bf16.mxu0 %v1496_v40 }
 0x404   :  { %1561 = vmatprep.subr.bf16.mxu1 %v1560_v41 }
 0x40a   :  { %1499 = vmatpush1.bf16.xpose.msra.mxu0 %v1498_v50 }
 0x40b   :  { %1563 = vmatpush1.bf16.xpose.msra.mxu1 %v1562_v51  ;;  %1501 = vmatprep.subr.bf16.mxu0 %v1500_v52 }
 0x40c   :  { %1565 = vmatprep.subr.bf16.mxu1 %v1564_v53 }
 0x412   :  { %1503 = vmatpush1.bf16.xpose.msra.mxu0 %v1502_v61 }
 0x413   :  { %1567 = vmatpush1.bf16.xpose.msra.mxu1 %v1566_v62  ;;  %1505 = vmatprep.subr.bf16.mxu0 %v1504_v63 }
 0x414   :  { %1569 = vmatprep.subr.bf16.mxu1 %v1568_v0 }
 0x41a   :  { %1507 = vmatpush1.bf16.xpose.msra.mxu0 %v1506_v9 }
 0x41b   :  { %1571 = vmatpush1.bf16.xpose.msra.mxu1 %v1570_v10  ;;  %1509 = vmatprep.subr.bf16.mxu0 %v1508_v11 }
 0x41c   :  { %1573 = vmatprep.subr.bf16.mxu1 %v1572_v12 }
 0x422   :  { %1511 = vmatpush1.bf16.xpose.msra.mxu0 %v1510_v17 }
 0x423   :  { %1575 = vmatpush1.bf16.xpose.msra.mxu1 %v1574_v18 }
 0x429   :  { %990 = vmatmul.mubr.f32.vlgmr.msra.gmra.mrb[2].mxu0 %v3108_v28 }
 0x42a   :  { %1061 = vmatmul.mubr.f32.vlgmr.msra.gmra.mrb[2].mxu1 %v3108_v28 }
 0x47c   :  { %v849_v19 = vpop.f32.mrb[0].mxu0 }
 0x47d   :  { %1067 = vst [vmem:[#allocation9] sm:$0xff] %v849_v19  ;;  %v920_v20 = vpop.f32.mrb[0].mxu1  ;;  %v851_v21 = vpop.f32.mrb[1].mxu0 }
 0x47e   :  { %1069 = vst [vmem:[#allocation9 + $0x10] sm:$0xff] %v920_v20  ;;  %1068 = vst [vmem:[#allocation9 + $0x8] sm:$0xff] %v851_v21  ;;  %v922_v22 = vpop.f32.mrb[1].mxu1 }
 0x47f   :  { %1070 = vst [vmem:[#allocation9 + $0x18] sm:$0xff] %v922_v22 }
 0x4fc   :  { %v991_v23 = vpop.f32.mrb[2].mxu0 }
 0x4fd   :  { %1071 = vst [vmem:[#allocation9 + $0x20] sm:$0xff] %v991_v23  ;;  %v1062_v24 = vpop.f32.mrb[2].mxu1  ;;  %v993_v25 = vpop.f32.mrb[3].mxu0 }
 0x4fe   :  { %1073 = vst [vmem:[#allocation9 + $0x30] sm:$0xff] %v1062_v24  ;;  %1072 = vst [vmem:[#allocation9 + $0x28] sm:$0xff] %v993_v25  ;;  %v1064_v26 = vpop.f32.mrb[3].mxu1 }
 0x4ff   :  { %1074 = vst [vmem:[#allocation9 + $0x38] sm:$0xff] %v1064_v26 }
 0x500   :  { %2428 = shalt.err (!%p2425_p9)
}
 0x501   :  { %s2429_s4 = scalar_lea.hbm %s3131_s3, 1024 }
 0x502   :  { %p2430_p10 = scmp.ne.s32.totalorder %s3131_s3, %s2429_s4  ;;  %p2433_p11 = scmp.lt.u32.totalorder %s2429_s4, %s3131_s3 }
 0x504   :  { %p2435_p12 = pnand %p2433_p11, %p2430_p10 }
 0x506   :  { %2438 = shalt.err (!%p2435_p12)
}
 0x507   :  { %1084 = dma.vmem_to_hbm [thread:$0]  %s1082_s5, 1024, %s3131_s3, [#allocation8]  }
 0x508   :  { %2445 = dma.done.wait [#allocation8], 1024  }
 0x509   :  { %2446 = vsyncadd [#allocation8], 4294966272 }
 0x50a   :  { %1088 = vsyncpa [#allocation7], 1 }
 0x50b   :  { %1089 = vsyncpa [#allocation8], 1 }
 0x50c   :  { %1090 = vsyncmov [#allocation3] }
 0x50f   :  { %s1091_s7 = vpop.sfrf %1090 }
 0x510   :  { %p1319_p13 = scmp.ne.s32.totalorder %s1091_s7, 0 }
 0x512   :  { %1095 = shalt.err (%p1319_p13)  }

</bundles_post_ra>
